<compile_context>
chip_gen: v7x
topology: tpu7x:2x2x1
jax: 0.10.0
libtpu: 0.0.40
codegen_flags: <defaults>
</compile_context>

<pallas_src>
import functools

import numpy as np
import jax
import jax.numpy as jnp
from jax.experimental import pallas as pl
from jax.experimental.pallas import tpu as pltpu


_VMEM_LIMIT_BYTES = 32 * 1024 * 1024   # <= scoped limit on v5e/v6e/v7x


# ---------------------------------------------------------------------------
# Static MIND-SSC 2-D neighbourhood (replicates mshift1/mshift2 construction)
# ---------------------------------------------------------------------------
def _mind2d_shifts(dilation):
    """Pixel-unit shift pairs equivalent to MINDSSC2d's mshift1/mshift2 convs."""
    pts = np.array([[0, 1], [1, 0], [2, 1], [1, 2]], dtype=np.int64)
    d2 = ((pts[:, None, :] - pts[None, :, :]) ** 2).sum(-1)
    shifts = []
    for i in range(4):                      # row-major == torch .view(-1) order
        for j in range(4):
            if i > j and d2[i, j] == 2:
                s1 = (int(pts[i, 0] - 1) * dilation, int(pts[i, 1] - 1) * dilation)
                s2 = (int(pts[j, 0] - 1) * dilation, int(pts[j, 1] - 1) * dilation)
                shifts.append((s1, s2))
    return tuple(shifts)                    # 4 pairs -> 4 MIND channels


def _tree_sum(terms):
    """Balanced (tree) add of a list of same-shaped arrays."""
    terms = list(terms)
    while len(terms) > 1:
        nxt = [terms[i] + terms[i + 1] for i in range(0, len(terms) - 1, 2)]
        if len(terms) % 2 == 1:
            nxt.append(terms[-1])
        terms = nxt
    return terms[0]


# ---------------------------------------------------------------------------
# Kernel A: fused shift-diff + replication pad + separable avg-pool
#           + channel min/mean, for one (true, pred) pair per grid step.
# ---------------------------------------------------------------------------
def _mind_front_kernel(img_ref, desc_ref, varsum_ref, dpad_ref, *,
                       h, w, pad, radius, shifts):
    """One batch pair per grid step.

    img_ref    : (1, 2, h+2*pad, w+2*pad)  edge-padded true/pred images (f32)
    desc_ref   : (1, 2, n_ch+1, h, w)      channels 0..n_ch-1 = ssd - min_c(ssd),
                                           channel n_ch       = mean_c - min_c
    varsum_ref : (1, 2, 1, 128)            per-image sum of mind_var (broadcast)
    dpad_ref   : (h+2r, w+2r)              VMEM scratch: replication-padded diff^2
    """
    r = radius
    taps = 2 * r + 1
    inv_area = 1.0 / float(taps * taps)
    n_ch = len(shifts)
    hpad = h + 2 * r

    for t in range(2):                                     # 0 = true, 1 = pred
        cmin = None
        csum = None
        for k, ((sy1, sx1), (sy2, sx2)) in enumerate(shifts):
            a = img_ref[0, t, pad + sy1:pad + sy1 + h, pad + sx1:pad + sx1 + w]
            b = img_ref[0, t, pad + sy2:pad + sy2 + h, pad + sx2:pad + sx2 + w]
            diff = (a - b) * (a - b)                       # (h, w)

            # Replication-pad diff^2 into the scratch with r-wide block stores.
            dpad_ref[r:r + h, r:r + w] = diff
            dpad_ref[0:r, r:r + w] = jnp.broadcast_to(diff[0:1, :], (r, w))
            dpad_ref[r + h:hpad, r:r + w] = jnp.broadcast_to(diff[h - 1:h, :], (r, w))
            left = dpad_ref[:, r:r + 1]                    # (hpad, 1)
            right = dpad_ref[:, r + w - 1:r + w]
            dpad_ref[:, 0:r] = jnp.broadcast_to(left, (hpad, r))
            dpad_ref[:, r + w:w + 2 * r] = jnp.broadcast_to(right, (hpad, r))

            # Separable (2r+1)x(2r+1) box mean: horizontal taps, then vertical.
            hsum = _tree_sum([dpad_ref[:, v:v + w] for v in range(taps)])
            box = _tree_sum([hsum[u:u + h, :] for u in range(taps)])
            ssd = box * inv_area                           # (h, w)

            desc_ref[0, t, k, :, :] = ssd                  # stream out
            cmin = ssd if k == 0 else jnp.minimum(cmin, ssd)
            csum = ssd if k == 0 else csum + ssd

        var = csum * (1.0 / float(n_ch)) - cmin            # mean_c - min_c

        # Second in-VMEM pass: num = ssd - min_c(ssd).
        for k in range(n_ch):
            desc_ref[0, t, k, :, :] = desc_ref[0, t, k, :, :] - cmin
        desc_ref[0, t, n_ch, :, :] = var

        # Per-image partial sum of mind_var (for the global clamp bounds).
        varsum_ref[0, t, 0, :] = jnp.zeros((128,), jnp.float32) + jnp.sum(var)


# ---------------------------------------------------------------------------
# Kernel B: clamp + exp(-num * 1/var) for true & pred + per-pair MSE partials
# ---------------------------------------------------------------------------
def _mind_finalize_kernel(means_ref, desc_ref, part_ref, *, n_ch):
    """One batch pair per grid step (parallel-safe: distinct output blocks).

    means_ref : SMEM (2,)                  clamp bases (global mean of mind_var)
    desc_ref  : (1, 2, n_ch+1, h*w)        lane-dense packed descriptors
    part_ref  : (1, 1, 128)                per-pair partial sum of squared diff
    """
    m_t = means_ref[0]
    m_p = means_ref[1]

    num_t = desc_ref[0, 0, 0:n_ch, :]                      # (n_ch, h*w)
    var_t = desc_ref[0, 0, n_ch:n_ch + 1, :]               # (1, h*w)
    num_p = desc_ref[0, 1, 0:n_ch, :]
    var_p = desc_ref[0, 1, n_ch:n_ch + 1, :]

    var_t = jnp.minimum(jnp.maximum(var_t, m_t * 1e-3), m_t * 1e3)
    var_p = jnp.minimum(jnp.maximum(var_p, m_p * 1e-3), m_p * 1e3)

    # One reciprocal per pixel, n_ch cheap multiplies (instead of n_ch divides).
    inv_t = pl.reciprocal(var_t, approx=False)
    inv_p = pl.reciprocal(var_p, approx=False)

    mind_t = jnp.exp(-(num_t * inv_t))                     # (n_ch, h*w)
    mind_p = jnp.exp(-(num_p * inv_p))

    d = mind_t - mind_p
    part_ref[...] = jnp.zeros_like(part_ref) + jnp.sum(d * d)


# ---------------------------------------------------------------------------
# MIND_loss.forward equivalent (2-D path)
# ---------------------------------------------------------------------------
def mind_loss(y_pred, y_true, radius=2, dilation=2):
    if y_pred.ndim != 4:
        # TODO(synk): 3-D (dim==5) MINDSSC3d path not implemented in Pallas.
        raise NotImplementedError("Only the 2-D (dim==4) path is implemented.")
    b, c, h, w = y_pred.shape
    assert c == 1, "MIND-SSC uses single-channel delta convs (C must be 1)."

    shifts = _mind2d_shifts(dilation)
    n_ch = len(shifts)
    pad = dilation
    hp, wp = h + 2 * pad, w + 2 * pad
    hw = h * w

    # Pair layout: (B, 2, H, W), axis 1 = {true, pred}.
    imgs = jnp.stack([y_true[:, 0], y_pred[:, 0]], axis=1).astype(jnp.float32)
    imgs_pad = jnp.pad(imgs, ((0, 0), (0, 0), (pad, pad), (pad, pad)), mode="edge")

    kern_a = functools.partial(_mind_front_kernel, h=h, w=w, pad=pad,
                               radius=radius, shifts=shifts)
    desc, varsum = pl.pallas_call(
        kern_a,
        out_shape=(jax.ShapeDtypeStruct((b, 2, n_ch + 1, h, w), jnp.float32),
                   jax.ShapeDtypeStruct((b, 2, 1, 128), jnp.float32)),
        grid=(b,),
        in_specs=[pl.BlockSpec((1, 2, hp, wp), lambda i: (i, 0, 0, 0))],
        out_specs=(pl.BlockSpec((1, 2, n_ch + 1, h, w),
                                lambda i: (i, 0, 0, 0, 0)),
                   pl.BlockSpec((1, 2, 1, 128), lambda i: (i, 0, 0, 0))),
        scratch_shapes=[pltpu.VMEM((h + 2 * radius, w + 2 * radius),
                                   jnp.float32)],
        compiler_params=pltpu.CompilerParams(
            dimension_semantics=("parallel",),
            vmem_limit_bytes=_VMEM_LIMIT_BYTES),
    )(imgs_pad)

    # torch's `.item()` clamp bounds: global mean of mind_var per descriptor,
    # assembled from the per-image partial sums emitted by kernel A.
    mean_t = jnp.sum(varsum[:, 0, 0, 0]) / float(b * hw)
    mean_p = jnp.sum(varsum[:, 1, 0, 0]) / float(b * hw)
    means = jnp.stack([mean_t, mean_p]).astype(jnp.float32)      # (2,) -> SMEM

    # Free row-major bitcast: put h*w on the last axis so kernel B is
    # lane-dense (h*w = 256 here, a multiple of 128).
    desc_flat = desc.reshape(b, 2, n_ch + 1, hw)

    kern_b = functools.partial(_mind_finalize_kernel, n_ch=n_ch)
    partials = pl.pallas_call(
        kern_b,
        out_shape=jax.ShapeDtypeStruct((b, 1, 128), jnp.float32),
        grid=(b,),
        in_specs=[
            pl.BlockSpec(memory_space=pltpu.MemorySpace.SMEM),         # means
            pl.BlockSpec((1, 2, n_ch + 1, hw), lambda i: (i, 0, 0, 0)),
        ],
        out_specs=pl.BlockSpec((1, 1, 128), lambda i: (i, 0, 0)),
        compiler_params=pltpu.CompilerParams(
            dimension_semantics=("parallel",),
            vmem_limit_bytes=_VMEM_LIMIT_BYTES),
    )(means, desc_flat)

    return jnp.sum(partials[:, 0, 0]) / float(b * n_ch * hw)


# ---------------------------------------------------------------------------
# Pure-JAX reference (correctness check only)
# ---------------------------------------------------------------------------
def _box_mean_edge_ref(x_bhw, radius):
    r = radius
    taps = 2 * r + 1
    _, h, w = x_bhw.shape
    xp = jnp.pad(x_bhw, ((0, 0), (r, r), (r, r)), mode="edge")
    acc = xp[:, 0:h, 0:w]
    for u in range(taps):
        for v in range(taps):
            if u == 0 and v == 0:
                continue
            acc = acc + xp[:, u:u + h, v:v + w]
    return acc * (1.0 / float(taps * taps))


def _mindssc2d_ref(img_b1hw, radius, dilation, shifts):
    img = img_b1hw[:, 0].astype(jnp.float32)
    _, h, w = img.shape
    p = dilation
    xp = jnp.pad(img, ((0, 0), (p, p), (p, p)), mode="edge")
    ssds = []
    for (sy1, sx1), (sy2, sx2) in shifts:
        a = xp[:, p + sy1:p + sy1 + h, p + sx1:p + sx1 + w]
        b = xp[:, p + sy2:p + sy2 + h, p + sx2:p + sx2 + w]
        ssds.append(_box_mean_edge_ref((a - b) ** 2, radius))
    ssd = jnp.stack(ssds, axis=1)                              # (B, 4, H, W)
    cmin = jnp.min(ssd, axis=1, keepdims=True)
    mind = ssd - cmin
    var = jnp.mean(mind, axis=1, keepdims=True)
    gm = jnp.mean(var)
    var = jnp.clip(var, gm * 1e-3, gm * 1e3)
    return jnp.exp(-mind / var)


def _ref_mind_loss(y_pred, y_true, radius=2, dilation=2):
    shifts = _mind2d_shifts(dilation)
    t = _mindssc2d_ref(y_true, radius, dilation, shifts)
    p = _mindssc2d_ref(y_pred, radius, dilation, shifts)
    return jnp.mean((t - p) ** 2)


# ---------------------------------------------------------------------------
if __name__ == "__main__":
    key = jax.random.PRNGKey(0)
    k1, k2 = jax.random.split(key)

    B, C, H, W = 2, 1, 16, 16
    y_true = jax.random.normal(k1, (B, C, H, W), jnp.float32)
    y_pred = y_true + 0.1 * jax.random.normal(k2, (B, C, H, W), jnp.float32)

    loss_fn = jax.jit(functools.partial(mind_loss, radius=2, dilation=2))
    loss = jax.block_until_ready(loss_fn(y_pred, y_true))

    ref = _ref_mind_loss(y_pred, y_true, radius=2, dilation=2)
    assert jnp.allclose(loss, ref, rtol=1e-4, atol=1e-6), (loss, ref)

    print("KERNEL_OK")
</pallas_src>

<mosaic_0001>
module attributes {stable_mosaic.version = 11 : i64} {
  func.func @_mind_finalize_kernel(%arg0: i32, %arg1: memref<2xf32, #tpu.memory_space<smem>>, %arg2: memref<1x2x5x256xf32, #tpu.memory_space<vmem>>, %arg3: memref<1x1x128xf32, #tpu.memory_space<vmem>>) attributes {dimension_semantics = [#tpu.dimension_semantics<parallel>], iteration_bounds = array<i64: 2>, scalar_prefetch = 0 : i64, scratch_operands = 0 : i64, tpu.core_type = #tpu.core_type<tc>, window_params = [{transform_indices = @transform_0, window_bounds = array<i64: 2>}, {transform_indices = @transform_1, window_bounds = array<i64: 1, 2, 5, 256>}, {transform_indices = @transform_2, window_bounds = array<i64: 1, 1, 128>}]} {
    %c0 = arith.constant 0 : index
    %0 = memref.load %arg1[%c0] : memref<2xf32, #tpu.memory_space<smem>>
    %c1 = arith.constant 1 : index
    %1 = memref.load %arg1[%c1] : memref<2xf32, #tpu.memory_space<smem>>
    %c0_0 = arith.constant 0 : index
    %c0_1 = arith.constant 0 : index
    %c0_2 = arith.constant 0 : index
    %c0_3 = arith.constant 0 : index
    %2 = vector.load %arg2[%c0_0, %c0_1, %c0_2, %c0_3] : memref<1x2x5x256xf32, #tpu.memory_space<vmem>>, vector<1x1x4x256xf32>
    %3 = vector.shape_cast %2 : vector<1x1x4x256xf32> to vector<4x256xf32>
    %c0_4 = arith.constant 0 : index
    %c0_5 = arith.constant 0 : index
    %c4 = arith.constant 4 : index
    %c0_6 = arith.constant 0 : index
    %4 = vector.load %arg2[%c0_4, %c0_5, %c4, %c0_6] : memref<1x2x5x256xf32, #tpu.memory_space<vmem>>, vector<1x1x1x256xf32>
    %5 = vector.shape_cast %4 : vector<1x1x1x256xf32> to vector<1x256xf32>
    %c0_7 = arith.constant 0 : index
    %c1_8 = arith.constant 1 : index
    %c0_9 = arith.constant 0 : index
    %c0_10 = arith.constant 0 : index
    %6 = vector.load %arg2[%c0_7, %c1_8, %c0_9, %c0_10] : memref<1x2x5x256xf32, #tpu.memory_space<vmem>>, vector<1x1x4x256xf32>
    %7 = vector.shape_cast %6 : vector<1x1x4x256xf32> to vector<4x256xf32>
    %c0_11 = arith.constant 0 : index
    %c1_12 = arith.constant 1 : index
    %c4_13 = arith.constant 4 : index
    %c0_14 = arith.constant 0 : index
    %8 = vector.load %arg2[%c0_11, %c1_12, %c4_13, %c0_14] : memref<1x2x5x256xf32, #tpu.memory_space<vmem>>, vector<1x1x1x256xf32>
    %9 = vector.shape_cast %8 : vector<1x1x1x256xf32> to vector<1x256xf32>
    %cst = arith.constant 1.000000e-03 : f32
    %10 = arith.mulf %0, %cst : f32
    %11 = vector.broadcast %10 : f32 to vector<1x256xf32>
    %12 = arith.maximumf %5, %11 : vector<1x256xf32>
    %cst_15 = arith.constant 1.000000e+03 : f32
    %13 = arith.mulf %0, %cst_15 : f32
    %14 = vector.broadcast %13 : f32 to vector<1x256xf32>
    %15 = arith.minimumf %12, %14 : vector<1x256xf32>
    %cst_16 = arith.constant 1.000000e-03 : f32
    %16 = arith.mulf %1, %cst_16 : f32
    %17 = vector.broadcast %16 : f32 to vector<1x256xf32>
    %18 = arith.maximumf %9, %17 : vector<1x256xf32>
    %cst_17 = arith.constant 1.000000e+03 : f32
    %19 = arith.mulf %1, %cst_17 : f32
    %20 = vector.broadcast %19 : f32 to vector<1x256xf32>
    %21 = arith.minimumf %18, %20 : vector<1x256xf32>
    %22 = tpu.reciprocal %15 : vector<1x256xf32> -> vector<1x256xf32>
    %23 = tpu.reciprocal %21 : vector<1x256xf32> -> vector<1x256xf32>
    %24 = vector.broadcast %22 : vector<1x256xf32> to vector<4x256xf32>
    %25 = arith.mulf %3, %24 : vector<4x256xf32>
    %cst_18 = arith.constant 0.000000e+00 : f32
    %26 = vector.broadcast %cst_18 : f32 to vector<4x256xf32>
    %27 = arith.subf %26, %25 : vector<4x256xf32>
    %28 = math.exp %27 : vector<4x256xf32>
    %29 = vector.broadcast %23 : vector<1x256xf32> to vector<4x256xf32>
    %30 = arith.mulf %7, %29 : vector<4x256xf32>
    %cst_19 = arith.constant 0.000000e+00 : f32
    %31 = vector.broadcast %cst_19 : f32 to vector<4x256xf32>
    %32 = arith.subf %31, %30 : vector<4x256xf32>
    %33 = math.exp %32 : vector<4x256xf32>
    %34 = arith.subf %28, %33 : vector<4x256xf32>
    %cst_20 = arith.constant 0.000000e+00 : f32
    %35 = vector.broadcast %cst_20 : f32 to vector<1x1x128xf32>
    %36 = arith.mulf %34, %34 : vector<4x256xf32>
    %37 = vector.shape_cast %36 : vector<4x256xf32> to vector<1x4x256xf32>
    %cst_21 = arith.constant dense<0.000000e+00> : vector<1xf32>
    %38 = vector.multi_reduction <add>, %37, %cst_21 [1, 2] : vector<1x4x256xf32> to vector<1xf32>
    %39 = vector.shape_cast %38 : vector<1xf32> to vector<1x1x1xf32>
    %40 = vector.extract %39[0, 0, 0] : f32 from vector<1x1x1xf32>
    %41 = vector.broadcast %40 : f32 to vector<1x1x128xf32>
    %42 = arith.addf %35, %41 : vector<1x1x128xf32>
    %c0_22 = arith.constant 0 : index
    %c0_23 = arith.constant 0 : index
    %c0_24 = arith.constant 0 : index
    %43 = vector.load %arg3[%c0_22, %c0_23, %c0_24] : memref<1x1x128xf32, #tpu.memory_space<vmem>>, vector<1x1x128xf32>
    tpu.vector_store %arg3[%c0_22, %c0_23, %c0_24], %42 {strides = array<i32>} : memref<1x1x128xf32, #tpu.memory_space<vmem>>, vector<1x1x128xf32>,
    return
  }
  func.func @transform_0(%arg0: i32) -> i32 {
    %c0_i32 = arith.constant 0 : i32
    %c0_i32_0 = arith.constant 0 : i32
    return %c0_i32 : i32
  }
  func.func @transform_1(%arg0: i32) -> (i32, i32, i32, i32) {
    %c0_i32 = arith.constant 0 : i32
    %c0_i32_0 = arith.constant 0 : i32
    %c0_i32_1 = arith.constant 0 : i32
    %c0_i32_2 = arith.constant 0 : i32
    return %arg0, %c0_i32, %c0_i32_0, %c0_i32_1 : i32, i32, i32, i32
  }
  func.func @transform_2(%arg0: i32) -> (i32, i32, i32) {
    %c0_i32 = arith.constant 0 : i32
    %c0_i32_0 = arith.constant 0 : i32
    %c0_i32_1 = arith.constant 0 : i32
    return %arg0, %c0_i32, %c0_i32_0 : i32, i32, i32
  }
}

module attributes {stable_mosaic.version = 11 : i64} {
  func.func @_mind_front_kernel(%arg0: i32, %arg1: memref<1x2x20x20xf32, #tpu.memory_space<vmem>>, %arg2: memref<1x2x5x16x16xf32, #tpu.memory_space<vmem>>, %arg3: memref<1x2x1x128xf32, #tpu.memory_space<vmem>>, %arg4: memref<20x20xf32, #tpu.memory_space<vmem>>) attributes {dimension_semantics = [#tpu.dimension_semantics<parallel>], iteration_bounds = array<i64: 2>, scalar_prefetch = 0 : i64, scratch_operands = 1 : i64, tpu.core_type = #tpu.core_type<tc>, window_params = [{transform_indices = @transform_0, window_bounds = array<i64: 1, 2, 20, 20>}, {transform_indices = @transform_1, window_bounds = array<i64: 1, 2, 5, 16, 16>}, {transform_indices = @transform_2, window_bounds = array<i64: 1, 2, 1, 128>}]} {
    %c0 = arith.constant 0 : index
    %c0_0 = arith.constant 0 : index
    %c2 = arith.constant 2 : index
    %c0_1 = arith.constant 0 : index
    %0 = vector.load %arg1[%c0, %c0_0, %c2, %c0_1] : memref<1x2x20x20xf32, #tpu.memory_space<vmem>>, vector<1x1x16x16xf32>
    %1 = vector.shape_cast %0 : vector<1x1x16x16xf32> to vector<16x16xf32>
    %c0_2 = arith.constant 0 : index
    %c0_3 = arith.constant 0 : index
    %c0_4 = arith.constant 0 : index
    %c2_5 = arith.constant 2 : index
    %2 = vector.load %arg1[%c0_2, %c0_3, %c0_4, %c2_5] : memref<1x2x20x20xf32, #tpu.memory_space<vmem>>, vector<1x1x16x16xf32>
    %3 = vector.shape_cast %2 : vector<1x1x16x16xf32> to vector<16x16xf32>
    %4 = arith.subf %1, %3 : vector<16x16xf32>
    %5 = arith.subf %1, %3 : vector<16x16xf32>
    %6 = arith.mulf %4, %5 : vector<16x16xf32>
    %c2_6 = arith.constant 2 : index
    %c2_7 = arith.constant 2 : index
    %7 = vector.load %arg4[%c2_6, %c2_7] : memref<20x20xf32, #tpu.memory_space<vmem>>, vector<16x16xf32>
    tpu.vector_store %arg4[%c2_6, %c2_7], %6 {strides = array<i32>} : memref<20x20xf32, #tpu.memory_space<vmem>>, vector<16x16xf32>,
    %8 = vector.extract_strided_slice %6 {offsets = [0, 0], sizes = [1, 16], strides = [1, 1]} : vector<16x16xf32> to vector<1x16xf32>
    %9 = vector.shape_cast %8 : vector<1x16xf32> to vector<1x16xf32>
    %10 = vector.broadcast %9 : vector<1x16xf32> to vector<2x16xf32>
    %c0_8 = arith.constant 0 : index
    %c2_9 = arith.constant 2 : index
    %11 = vector.load %arg4[%c0_8, %c2_9] : memref<20x20xf32, #tpu.memory_space<vmem>>, vector<2x16xf32>
    tpu.vector_store %arg4[%c0_8, %c2_9], %10 {strides = array<i32>} : memref<20x20xf32, #tpu.memory_space<vmem>>, vector<2x16xf32>,
    %12 = vector.extract_strided_slice %6 {offsets = [15, 0], sizes = [1, 16], strides = [1, 1]} : vector<16x16xf32> to vector<1x16xf32>
    %13 = vector.shape_cast %12 : vector<1x16xf32> to vector<1x16xf32>
    %14 = vector.broadcast %13 : vector<1x16xf32> to vector<2x16xf32>
    %c18 = arith.constant 18 : index
    %c2_10 = arith.constant 2 : index
    %15 = vector.load %arg4[%c18, %c2_10] : memref<20x20xf32, #tpu.memory_space<vmem>>, vector<2x16xf32>
    tpu.vector_store %arg4[%c18, %c2_10], %14 {strides = array<i32>} : memref<20x20xf32, #tpu.memory_space<vmem>>, vector<2x16xf32>,
    %c0_11 = arith.constant 0 : index
    %c2_12 = arith.constant 2 : index
    %16 = vector.load %arg4[%c0_11, %c2_12] : memref<20x20xf32, #tpu.memory_space<vmem>>, vector<20x1xf32>
    %c0_13 = arith.constant 0 : index
    %c17 = arith.constant 17 : index
    %17 = vector.load %arg4[%c0_13, %c17] : memref<20x20xf32, #tpu.memory_space<vmem>>, vector<20x1xf32>
    %18 = vector.shape_cast %16 : vector<20x1xf32> to vector<20x1xf32>
    %19 = vector.broadcast %18 : vector<20x1xf32> to vector<20x2xf32>
    %c0_14 = arith.constant 0 : index
    %c0_15 = arith.constant 0 : index
    %20 = vector.load %arg4[%c0_14, %c0_15] : memref<20x20xf32, #tpu.memory_space<vmem>>, vector<20x2xf32>
    tpu.vector_store %arg4[%c0_14, %c0_15], %19 {strides = array<i32>} : memref<20x20xf32, #tpu.memory_space<vmem>>, vector<20x2xf32>,
    %21 = vector.shape_cast %17 : vector<20x1xf32> to vector<20x1xf32>
    %22 = vector.broadcast %21 : vector<20x1xf32> to vector<20x2xf32>
    %c0_16 = arith.constant 0 : index
    %c18_17 = arith.constant 18 : index
    %23 = vector.load %arg4[%c0_16, %c18_17] : memref<20x20xf32, #tpu.memory_space<vmem>>, vector<20x2xf32>
    tpu.vector_store %arg4[%c0_16, %c18_17], %22 {strides = array<i32>} : memref<20x20xf32, #tpu.memory_space<vmem>>, vector<20x2xf32>,
    %c0_18 = arith.constant 0 : index
    %c0_19 = arith.constant 0 : index
    %24 = vector.load %arg4[%c0_18, %c0_19] : memref<20x20xf32, #tpu.memory_space<vmem>>, vector<20x16xf32>
    %c0_20 = arith.constant 0 : index
    %c1 = arith.constant 1 : index
    %25 = vector.load %arg4[%c0_20, %c1] : memref<20x20xf32, #tpu.memory_space<vmem>>, vector<20x16xf32>
    %c0_21 = arith.constant 0 : index
    %c2_22 = arith.constant 2 : index
    %26 = vector.load %arg4[%c0_21, %c2_22] : memref<20x20xf32, #tpu.memory_space<vmem>>, vector<20x16xf32>
    %c0_23 = arith.constant 0 : index
    %c3 = arith.constant 3 : index
    %27 = vector.load %arg4[%c0_23, %c3] : memref<20x20xf32, #tpu.memory_space<vmem>>, vector<20x16xf32>
    %c0_24 = arith.constant 0 : index
    %c4 = arith.constant 4 : index
    %28 = vector.load %arg4[%c0_24, %c4] : memref<20x20xf32, #tpu.memory_space<vmem>>, vector<20x16xf32>
    %29 = arith.addf %24, %25 : vector<20x16xf32>
    %30 = arith.addf %26, %27 : vector<20x16xf32>
    %31 = arith.addf %29, %30 : vector<20x16xf32>
    %32 = arith.addf %31, %28 : vector<20x16xf32>
    %33 = vector.extract_strided_slice %32 {offsets = [0, 0], sizes = [16, 16], strides = [1, 1]} : vector<20x16xf32> to vector<16x16xf32>
    %34 = vector.extract_strided_slice %32 {offsets = [1, 0], sizes = [16, 16], strides = [1, 1]} : vector<20x16xf32> to vector<16x16xf32>
    %35 = vector.extract_strided_slice %32 {offsets = [2, 0], sizes = [16, 16], strides = [1, 1]} : vector<20x16xf32> to vector<16x16xf32>
    %36 = vector.extract_strided_slice %32 {offsets = [3, 0], sizes = [16, 16], strides = [1, 1]} : vector<20x16xf32> to vector<16x16xf32>
    %37 = vector.extract_strided_slice %32 {offsets = [4, 0], sizes = [16, 16], strides = [1, 1]} : vector<20x16xf32> to vector<16x16xf32>
    %38 = arith.addf %33, %34 : vector<16x16xf32>
    %39 = arith.addf %35, %36 : vector<16x16xf32>
    %40 = arith.addf %38, %39 : vector<16x16xf32>
    %41 = arith.addf %40, %37 : vector<16x16xf32>
    %cst = arith.constant 4.000000e-02 : f32
    %42 = vector.broadcast %cst : f32 to vector<16x16xf32>
    %43 = arith.mulf %41, %42 : vector<16x16xf32>
    %c0_25 = arith.constant 0 : index
    %c0_26 = arith.constant 0 : index
    %c0_27 = arith.constant 0 : index
    %c0_28 = arith.constant 0 : index
    %c0_29 = arith.constant 0 : index
    %44 = vector.load %arg2[%c0_25, %c0_26, %c0_27, %c0_28, %c0_29] : memref<1x2x5x16x16xf32, #tpu.memory_space<vmem>>, vector<1x1x1x16x16xf32>
    %45 = vector.shape_cast %44 : vector<1x1x1x16x16xf32> to vector<16x16xf32>
    %46 = vector.shape_cast %43 : vector<16x16xf32> to vector<1x1x1x16x16xf32>
    tpu.vector_store %arg2[%c0_25, %c0_26, %c0_27, %c0_28, %c0_29], %46 {strides = array<i32>} : memref<1x2x5x16x16xf32, #tpu.memory_space<vmem>>, vector<1x1x1x16x16xf32>,
    %c0_30 = arith.constant 0 : index
    %c0_31 = arith.constant 0 : index
    %c4_32 = arith.constant 4 : index
    %c2_33 = arith.constant 2 : index
    %47 = vector.load %arg1[%c0_30, %c0_31, %c4_32, %c2_33] : memref<1x2x20x20xf32, #tpu.memory_space<vmem>>, vector<1x1x16x16xf32>
    %48 = vector.shape_cast %47 : vector<1x1x16x16xf32> to vector<16x16xf32>
    %c0_34 = arith.constant 0 : index
    %c0_35 = arith.constant 0 : index
    %c2_36 = arith.constant 2 : index
    %c0_37 = arith.constant 0 : index
    %49 = vector.load %arg1[%c0_34, %c0_35, %c2_36, %c0_37] : memref<1x2x20x20xf32, #tpu.memory_space<vmem>>, vector<1x1x16x16xf32>
    %50 = vector.shape_cast %49 : vector<1x1x16x16xf32> to vector<16x16xf32>
    %51 = arith.subf %48, %50 : vector<16x16xf32>
    %52 = arith.subf %48, %50 : vector<16x16xf32>
    %53 = arith.mulf %51, %52 : vector<16x16xf32>
    %c2_38 = arith.constant 2 : index
    %c2_39 = arith.constant 2 : index
    %54 = vector.load %arg4[%c2_38, %c2_39] : memref<20x20xf32, #tpu.memory_space<vmem>>, vector<16x16xf32>
    tpu.vector_store %arg4[%c2_38, %c2_39], %53 {strides = array<i32>} : memref<20x20xf32, #tpu.memory_space<vmem>>, vector<16x16xf32>,
    %55 = vector.extract_strided_slice %53 {offsets = [0, 0], sizes = [1, 16], strides = [1, 1]} : vector<16x16xf32> to vector<1x16xf32>
    %56 = vector.shape_cast %55 : vector<1x16xf32> to vector<1x16xf32>
    %57 = vector.broadcast %56 : vector<1x16xf32> to vector<2x16xf32>
    %c0_40 = arith.constant 0 : index
    %c2_41 = arith.constant 2 : index
    %58 = vector.load %arg4[%c0_40, %c2_41] : memref<20x20xf32, #tpu.memory_space<vmem>>, vector<2x16xf32>
    tpu.vector_store %arg4[%c0_40, %c2_41], %57 {strides = array<i32>} : memref<20x20xf32, #tpu.memory_space<vmem>>, vector<2x16xf32>,
    %59 = vector.extract_strided_slice %53 {offsets = [15, 0], sizes = [1, 16], strides = [1, 1]} : vector<16x16xf32> to vector<1x16xf32>
    %60 = vector.shape_cast %59 : vector<1x16xf32> to vector<1x16xf32>
    %61 = vector.broadcast %60 : vector<1x16xf32> to vector<2x16xf32>
    %c18_42 = arith.constant 18 : index
    %c2_43 = arith.constant 2 : index
    %62 = vector.load %arg4[%c18_42, %c2_43] : memref<20x20xf32, #tpu.memory_space<vmem>>, vector<2x16xf32>
    tpu.vector_store %arg4[%c18_42, %c2_43], %61 {strides = array<i32>} : memref<20x20xf32, #tpu.memory_space<vmem>>, vector<2x16xf32>,
    %c0_44 = arith.constant 0 : index
    %c2_45 = arith.constant 2 : index
    %63 = vector.load %arg4[%c0_44, %c2_45] : memref<20x20xf32, #tpu.memory_space<vmem>>, vector<20x1xf32>
    %c0_46 = arith.constant 0 : index
    %c17_47 = arith.constant 17 : index
    %64 = vector.load %arg4[%c0_46, %c17_47] : memref<20x20xf32, #tpu.memory_space<vmem>>, vector<20x1xf32>
    %65 = vector.shape_cast %63 : vector<20x1xf32> to vector<20x1xf32>
    %66 = vector.broadcast %65 : vector<20x1xf32> to vector<20x2xf32>
    %c0_48 = arith.constant 0 : index
    %c0_49 = arith.constant 0 : index
    %67 = vector.load %arg4[%c0_48, %c0_49] : memref<20x20xf32, #tpu.memory_space<vmem>>, vector<20x2xf32>
    tpu.vector_store %arg4[%c0_48, %c0_49], %66 {strides = array<i32>} : memref<20x20xf32, #tpu.memory_space<vmem>>, vector<20x2xf32>,
    %68 = vector.shape_cast %64 : vector<20x1xf32> to vector<20x1xf32>
    %69 = vector.broadcast %68 : vector<20x1xf32> to vector<20x2xf32>
    %c0_50 = arith.constant 0 : index
    %c18_51 = arith.constant 18 : index
    %70 = vector.load %arg4[%c0_50, %c18_51] : memref<20x20xf32, #tpu.memory_space<vmem>>, vector<20x2xf32>
    tpu.vector_store %arg4[%c0_50, %c18_51], %69 {strides = array<i32>} : memref<20x20xf32, #tpu.memory_space<vmem>>, vector<20x2xf32>,
    %c0_52 = arith.constant 0 : index
    %c0_53 = arith.constant 0 : index
    %71 = vector.load %arg4[%c0_52, %c0_53] : memref<20x20xf32, #tpu.memory_space<vmem>>, vector<20x16xf32>
    %c0_54 = arith.constant 0 : index
    %c1_55 = arith.constant 1 : index
    %72 = vector.load %arg4[%c0_54, %c1_55] : memref<20x20xf32, #tpu.memory_space<vmem>>, vector<20x16xf32>
    %c0_56 = arith.constant 0 : index
    %c2_57 = arith.constant 2 : index
    %73 = vector.load %arg4[%c0_56, %c2_57] : memref<20x20xf32, #tpu.memory_space<vmem>>, vector<20x16xf32>
    %c0_58 = arith.constant 0 : index
    %c3_59 = arith.constant 3 : index
    %74 = vector.load %arg4[%c0_58, %c3_59] : memref<20x20xf32, #tpu.memory_space<vmem>>, vector<20x16xf32>
    %c0_60 = arith.constant 0 : index
    %c4_61 = arith.constant 4 : index
    %75 = vector.load %arg4[%c0_60, %c4_61] : memref<20x20xf32, #tpu.memory_space<vmem>>, vector<20x16xf32>
    %76 = arith.addf %71, %72 : vector<20x16xf32>
    %77 = arith.addf %73, %74 : vector<20x16xf32>
    %78 = arith.addf %76, %77 : vector<20x16xf32>
    %79 = arith.addf %78, %75 : vector<20x16xf32>
    %80 = vector.extract_strided_slice %79 {offsets = [0, 0], sizes = [16, 16], strides = [1, 1]} : vector<20x16xf32> to vector<16x16xf32>
    %81 = vector.extract_strided_slice %79 {offsets = [1, 0], sizes = [16, 16], strides = [1, 1]} : vector<20x16xf32> to vector<16x16xf32>
    %82 = vector.extract_strided_slice %79 {offsets = [2, 0], sizes = [16, 16], strides = [1, 1]} : vector<20x16xf32> to vector<16x16xf32>
    %83 = vector.extract_strided_slice %79 {offsets = [3, 0], sizes = [16, 16], strides = [1, 1]} : vector<20x16xf32> to vector<16x16xf32>
    %84 = vector.extract_strided_slice %79 {offsets = [4, 0], sizes = [16, 16], strides = [1, 1]} : vector<20x16xf32> to vector<16x16xf32>
    %85 = arith.addf %80, %81 : vector<16x16xf32>
    %86 = arith.addf %82, %83 : vector<16x16xf32>
    %87 = arith.addf %85, %86 : vector<16x16xf32>
    %88 = arith.addf %87, %84 : vector<16x16xf32>
    %cst_62 = arith.constant 4.000000e-02 : f32
    %89 = vector.broadcast %cst_62 : f32 to vector<16x16xf32>
    %90 = arith.mulf %88, %89 : vector<16x16xf32>
    %c0_63 = arith.constant 0 : index
    %c0_64 = arith.constant 0 : index
    %c1_65 = arith.constant 1 : index
    %c0_66 = arith.constant 0 : index
    %c0_67 = arith.constant 0 : index
    %91 = vector.load %arg2[%c0_63, %c0_64, %c1_65, %c0_66, %c0_67] : memref<1x2x5x16x16xf32, #tpu.memory_space<vmem>>, vector<1x1x1x16x16xf32>
    %92 = vector.shape_cast %91 : vector<1x1x1x16x16xf32> to vector<16x16xf32>
    %93 = vector.shape_cast %90 : vector<16x16xf32> to vector<1x1x1x16x16xf32>
    tpu.vector_store %arg2[%c0_63, %c0_64, %c1_65, %c0_66, %c0_67], %93 {strides = array<i32>} : memref<1x2x5x16x16xf32, #tpu.memory_space<vmem>>, vector<1x1x1x16x16xf32>,
    %94 = arith.minimumf %43, %90 : vector<16x16xf32>
    %95 = arith.addf %43, %90 : vector<16x16xf32>
    %c0_68 = arith.constant 0 : index
    %c0_69 = arith.constant 0 : index
    %c2_70 = arith.constant 2 : index
    %c4_71 = arith.constant 4 : index
    %96 = vector.load %arg1[%c0_68, %c0_69, %c2_70, %c4_71] : memref<1x2x20x20xf32, #tpu.memory_space<vmem>>, vector<1x1x16x16xf32>
    %97 = vector.shape_cast %96 : vector<1x1x16x16xf32> to vector<16x16xf32>
    %c0_72 = arith.constant 0 : index
    %c0_73 = arith.constant 0 : index
    %c0_74 = arith.constant 0 : index
    %c2_75 = arith.constant 2 : index
    %98 = vector.load %arg1[%c0_72, %c0_73, %c0_74, %c2_75] : memref<1x2x20x20xf32, #tpu.memory_space<vmem>>, vector<1x1x16x16xf32>
    %99 = vector.shape_cast %98 : vector<1x1x16x16xf32> to vector<16x16xf32>
    %100 = arith.subf %97, %99 : vector<16x16xf32>
    %101 = arith.subf %97, %99 : vector<16x16xf32>
    %102 = arith.mulf %100, %101 : vector<16x16xf32>
    %c2_76 = arith.constant 2 : index
    %c2_77 = arith.constant 2 : index
    %103 = vector.load %arg4[%c2_76, %c2_77] : memref<20x20xf32, #tpu.memory_space<vmem>>, vector<16x16xf32>
    tpu.vector_store %arg4[%c2_76, %c2_77], %102 {strides = array<i32>} : memref<20x20xf32, #tpu.memory_space<vmem>>, vector<16x16xf32>,
    %104 = vector.extract_strided_slice %102 {offsets = [0, 0], sizes = [1, 16], strides = [1, 1]} : vector<16x16xf32> to vector<1x16xf32>
    %105 = vector.shape_cast %104 : vector<1x16xf32> to vector<1x16xf32>
    %106 = vector.broadcast %105 : vector<1x16xf32> to vector<2x16xf32>
    %c0_78 = arith.constant 0 : index
    %c2_79 = arith.constant 2 : index
    %107 = vector.load %arg4[%c0_78, %c2_79] : memref<20x20xf32, #tpu.memory_space<vmem>>, vector<2x16xf32>
    tpu.vector_store %arg4[%c0_78, %c2_79], %106 {strides = array<i32>} : memref<20x20xf32, #tpu.memory_space<vmem>>, vector<2x16xf32>,
    %108 = vector.extract_strided_slice %102 {offsets = [15, 0], sizes = [1, 16], strides = [1, 1]} : vector<16x16xf32> to vector<1x16xf32>
    %109 = vector.shape_cast %108 : vector<1x16xf32> to vector<1x16xf32>
    %110 = vector.broadcast %109 : vector<1x16xf32> to vector<2x16xf32>
    %c18_80 = arith.constant 18 : index
    %c2_81 = arith.constant 2 : index
    %111 = vector.load %arg4[%c18_80, %c2_81] : memref<20x20xf32, #tpu.memory_space<vmem>>, vector<2x16xf32>
    tpu.vector_store %arg4[%c18_80, %c2_81], %110 {strides = array<i32>} : memref<20x20xf32, #tpu.memory_space<vmem>>, vector<2x16xf32>,
    %c0_82 = arith.constant 0 : index
    %c2_83 = arith.constant 2 : index
    %112 = vector.load %arg4[%c0_82, %c2_83] : memref<20x20xf32, #tpu.memory_space<vmem>>, vector<20x1xf32>
    %c0_84 = arith.constant 0 : index
    %c17_85 = arith.constant 17 : index
    %113 = vector.load %arg4[%c0_84, %c17_85] : memref<20x20xf32, #tpu.memory_space<vmem>>, vector<20x1xf32>
    %114 = vector.shape_cast %112 : vector<20x1xf32> to vector<20x1xf32>
    %115 = vector.broadcast %114 : vector<20x1xf32> to vector<20x2xf32>
    %c0_86 = arith.constant 0 : index
    %c0_87 = arith.constant 0 : index
    %116 = vector.load %arg4[%c0_86, %c0_87] : memref<20x20xf32, #tpu.memory_space<vmem>>, vector<20x2xf32>
    tpu.vector_store %arg4[%c0_86, %c0_87], %115 {strides = array<i32>} : memref<20x20xf32, #tpu.memory_space<vmem>>, vector<20x2xf32>,
    %117 = vector.shape_cast %113 : vector<20x1xf32> to vector<20x1xf32>
    %118 = vector.broadcast %117 : vector<20x1xf32> to vector<20x2xf32>
    %c0_88 = arith.constant 0 : index
    %c18_89 = arith.constant 18 : index
    %119 = vector.load %arg4[%c0_88, %c18_89] : memref<20x20xf32, #tpu.memory_space<vmem>>, vector<20x2xf32>
    tpu.vector_store %arg4[%c0_88, %c18_89], %118 {strides = array<i32>} : memref<20x20xf32, #tpu.memory_space<vmem>>, vector<20x2xf32>,
    %c0_90 = arith.constant 0 : index
    %c0_91 = arith.constant 0 : index
    %120 = vector.load %arg4[%c0_90, %c0_91] : memref<20x20xf32, #tpu.memory_space<vmem>>, vector<20x16xf32>
    %c0_92 = arith.constant 0 : index
    %c1_93 = arith.constant 1 : index
    %121 = vector.load %arg4[%c0_92, %c1_93] : memref<20x20xf32, #tpu.memory_space<vmem>>, vector<20x16xf32>
    %c0_94 = arith.constant 0 : index
    %c2_95 = arith.constant 2 : index
    %122 = vector.load %arg4[%c0_94, %c2_95] : memref<20x20xf32, #tpu.memory_space<vmem>>, vector<20x16xf32>
    %c0_96 = arith.constant 0 : index
    %c3_97 = arith.constant 3 : index
    %123 = vector.load %arg4[%c0_96, %c3_97] : memref<20x20xf32, #tpu.memory_space<vmem>>, vector<20x16xf32>
    %c0_98 = arith.constant 0 : index
    %c4_99 = arith.constant 4 : index
    %124 = vector.load %arg4[%c0_98, %c4_99] : memref<20x20xf32, #tpu.memory_space<vmem>>, vector<20x16xf32>
    %125 = arith.addf %120, %121 : vector<20x16xf32>
    %126 = arith.addf %122, %123 : vector<20x16xf32>
    %127 = arith.addf %125, %126 : vector<20x16xf32>
    %128 = arith.addf %127, %124 : vector<20x16xf32>
    %129 = vector.extract_strided_slice %128 {offsets = [0, 0], sizes = [16, 16], strides = [1, 1]} : vector<20x16xf32> to vector<16x16xf32>
    %130 = vector.extract_strided_slice %128 {offsets = [1, 0], sizes = [16, 16], strides = [1, 1]} : vector<20x16xf32> to vector<16x16xf32>
    %131 = vector.extract_strided_slice %128 {offsets = [2, 0], sizes = [16, 16], strides = [1, 1]} : vector<20x16xf32> to vector<16x16xf32>
    %132 = vector.extract_strided_slice %128 {offsets = [3, 0], sizes = [16, 16], strides = [1, 1]} : vector<20x16xf32> to vector<16x16xf32>
    %133 = vector.extract_strided_slice %128 {offsets = [4, 0], sizes = [16, 16], strides = [1, 1]} : vector<20x16xf32> to vector<16x16xf32>
    %134 = arith.addf %129, %130 : vector<16x16xf32>
    %135 = arith.addf %131, %132 : vector<16x16xf32>
    %136 = arith.addf %134, %135 : vector<16x16xf32>
    %137 = arith.addf %136, %133 : vector<16x16xf32>
    %cst_100 = arith.constant 4.000000e-02 : f32
    %138 = vector.broadcast %cst_100 : f32 to vector<16x16xf32>
    %139 = arith.mulf %137, %138 : vector<16x16xf32>
    %c0_101 = arith.constant 0 : index
    %c0_102 = arith.constant 0 : index
    %c2_103 = arith.constant 2 : index
    %c0_104 = arith.constant 0 : index
    %c0_105 = arith.constant 0 : index
    %140 = vector.load %arg2[%c0_101, %c0_102, %c2_103, %c0_104, %c0_105] : memref<1x2x5x16x16xf32, #tpu.memory_space<vmem>>, vector<1x1x1x16x16xf32>
    %141 = vector.shape_cast %140 : vector<1x1x1x16x16xf32> to vector<16x16xf32>
    %142 = vector.shape_cast %139 : vector<16x16xf32> to vector<1x1x1x16x16xf32>
    tpu.vector_store %arg2[%c0_101, %c0_102, %c2_103, %c0_104, %c0_105], %142 {strides = array<i32>} : memref<1x2x5x16x16xf32, #tpu.memory_space<vmem>>, vector<1x1x1x16x16xf32>,
    %143 = arith.minimumf %94, %139 : vector<16x16xf32>
    %144 = arith.addf %95, %139 : vector<16x16xf32>
    %c0_106 = arith.constant 0 : index
    %c0_107 = arith.constant 0 : index
    %c2_108 = arith.constant 2 : index
    %c4_109 = arith.constant 4 : index
    %145 = vector.load %arg1[%c0_106, %c0_107, %c2_108, %c4_109] : memref<1x2x20x20xf32, #tpu.memory_space<vmem>>, vector<1x1x16x16xf32>
    %146 = vector.shape_cast %145 : vector<1x1x16x16xf32> to vector<16x16xf32>
    %c0_110 = arith.constant 0 : index
    %c0_111 = arith.constant 0 : index
    %c4_112 = arith.constant 4 : index
    %c2_113 = arith.constant 2 : index
    %147 = vector.load %arg1[%c0_110, %c0_111, %c4_112, %c2_113] : memref<1x2x20x20xf32, #tpu.memory_space<vmem>>, vector<1x1x16x16xf32>
    %148 = vector.shape_cast %147 : vector<1x1x16x16xf32> to vector<16x16xf32>
    %149 = arith.subf %146, %148 : vector<16x16xf32>
    %150 = arith.subf %146, %148 : vector<16x16xf32>
    %151 = arith.mulf %149, %150 : vector<16x16xf32>
    %c2_114 = arith.constant 2 : index
    %c2_115 = arith.constant 2 : index
    %152 = vector.load %arg4[%c2_114, %c2_115] : memref<20x20xf32, #tpu.memory_space<vmem>>, vector<16x16xf32>
    tpu.vector_store %arg4[%c2_114, %c2_115], %151 {strides = array<i32>} : memref<20x20xf32, #tpu.memory_space<vmem>>, vector<16x16xf32>,
    %153 = vector.extract_strided_slice %151 {offsets = [0, 0], sizes = [1, 16], strides = [1, 1]} : vector<16x16xf32> to vector<1x16xf32>
    %154 = vector.shape_cast %153 : vector<1x16xf32> to vector<1x16xf32>
    %155 = vector.broadcast %154 : vector<1x16xf32> to vector<2x16xf32>
    %c0_116 = arith.constant 0 : index
    %c2_117 = arith.constant 2 : index
    %156 = vector.load %arg4[%c0_116, %c2_117] : memref<20x20xf32, #tpu.memory_space<vmem>>, vector<2x16xf32>
    tpu.vector_store %arg4[%c0_116, %c2_117], %155 {strides = array<i32>} : memref<20x20xf32, #tpu.memory_space<vmem>>, vector<2x16xf32>,
    %157 = vector.extract_strided_slice %151 {offsets = [15, 0], sizes = [1, 16], strides = [1, 1]} : vector<16x16xf32> to vector<1x16xf32>
    %158 = vector.shape_cast %157 : vector<1x16xf32> to vector<1x16xf32>
    %159 = vector.broadcast %158 : vector<1x16xf32> to vector<2x16xf32>
    %c18_118 = arith.constant 18 : index
    %c2_119 = arith.constant 2 : index
    %160 = vector.load %arg4[%c18_118, %c2_119] : memref<20x20xf32, #tpu.memory_space<vmem>>, vector<2x16xf32>
    tpu.vector_store %arg4[%c18_118, %c2_119], %159 {strides = array<i32>} : memref<20x20xf32, #tpu.memory_space<vmem>>, vector<2x16xf32>,
    %c0_120 = arith.constant 0 : index
    %c2_121 = arith.constant 2 : index
    %161 = vector.load %arg4[%c0_120, %c2_121] : memref<20x20xf32, #tpu.memory_space<vmem>>, vector<20x1xf32>
    %c0_122 = arith.constant 0 : index
    %c17_123 = arith.constant 17 : index
    %162 = vector.load %arg4[%c0_122, %c17_123] : memref<20x20xf32, #tpu.memory_space<vmem>>, vector<20x1xf32>
    %163 = vector.shape_cast %161 : vector<20x1xf32> to vector<20x1xf32>
    %164 = vector.broadcast %163 : vector<20x1xf32> to vector<20x2xf32>
    %c0_124 = arith.constant 0 : index
    %c0_125 = arith.constant 0 : index
    %165 = vector.load %arg4[%c0_124, %c0_125] : memref<20x20xf32, #tpu.memory_space<vmem>>, vector<20x2xf32>
    tpu.vector_store %arg4[%c0_124, %c0_125], %164 {strides = array<i32>} : memref<20x20xf32, #tpu.memory_space<vmem>>, vector<20x2xf32>,
    %166 = vector.shape_cast %162 : vector<20x1xf32> to vector<20x1xf32>
    %167 = vector.broadcast %166 : vector<20x1xf32> to vector<20x2xf32>
    %c0_126 = arith.constant 0 : index
    %c18_127 = arith.constant 18 : index
    %168 = vector.load %arg4[%c0_126, %c18_127] : memref<20x20xf32, #tpu.memory_space<vmem>>, vector<20x2xf32>
    tpu.vector_store %arg4[%c0_126, %c18_127], %167 {strides = array<i32>} : memref<20x20xf32, #tpu.memory_space<vmem>>, vector<20x2xf32>,
    %c0_128 = arith.constant 0 : index
    %c0_129 = arith.constant 0 : index
    %169 = vector.load %arg4[%c0_128, %c0_129] : memref<20x20xf32, #tpu.memory_space<vmem>>, vector<20x16xf32>
    %c0_130 = arith.constant 0 : index
    %c1_131 = arith.constant 1 : index
    %170 = vector.load %arg4[%c0_130, %c1_131] : memref<20x20xf32, #tpu.memory_space<vmem>>, vector<20x16xf32>
    %c0_132 = arith.constant 0 : index
    %c2_133 = arith.constant 2 : index
    %171 = vector.load %arg4[%c0_132, %c2_133] : memref<20x20xf32, #tpu.memory_space<vmem>>, vector<20x16xf32>
    %c0_134 = arith.constant 0 : index
    %c3_135 = arith.constant 3 : index
    %172 = vector.load %arg4[%c0_134, %c3_135] : memref<20x20xf32, #tpu.memory_space<vmem>>, vector<20x16xf32>
    %c0_136 = arith.constant 0 : index
    %c4_137 = arith.constant 4 : index
    %173 = vector.load %arg4[%c0_136, %c4_137] : memref<20x20xf32, #tpu.memory_space<vmem>>, vector<20x16xf32>
    %174 = arith.addf %169, %170 : vector<20x16xf32>
    %175 = arith.addf %171, %172 : vector<20x16xf32>
    %176 = arith.addf %174, %175 : vector<20x16xf32>
    %177 = arith.addf %176, %173 : vector<20x16xf32>
    %178 = vector.extract_strided_slice %177 {offsets = [0, 0], sizes = [16, 16], strides = [1, 1]} : vector<20x16xf32> to vector<16x16xf32>
    %179 = vector.extract_strided_slice %177 {offsets = [1, 0], sizes = [16, 16], strides = [1, 1]} : vector<20x16xf32> to vector<16x16xf32>
    %180 = vector.extract_strided_slice %177 {offsets = [2, 0], sizes = [16, 16], strides = [1, 1]} : vector<20x16xf32> to vector<16x16xf32>
    %181 = vector.extract_strided_slice %177 {offsets = [3, 0], sizes = [16, 16], strides = [1, 1]} : vector<20x16xf32> to vector<16x16xf32>
    %182 = vector.extract_strided_slice %177 {offsets = [4, 0], sizes = [16, 16], strides = [1, 1]} : vector<20x16xf32> to vector<16x16xf32>
    %183 = arith.addf %178, %179 : vector<16x16xf32>
    %184 = arith.addf %180, %181 : vector<16x16xf32>
    %185 = arith.addf %183, %184 : vector<16x16xf32>
    %186 = arith.addf %185, %182 : vector<16x16xf32>
    %cst_138 = arith.constant 4.000000e-02 : f32
    %187 = vector.broadcast %cst_138 : f32 to vector<16x16xf32>
    %188 = arith.mulf %186, %187 : vector<16x16xf32>
    %c0_139 = arith.constant 0 : index
    %c0_140 = arith.constant 0 : index
    %c3_141 = arith.constant 3 : index
    %c0_142 = arith.constant 0 : index
    %c0_143 = arith.constant 0 : index
    %189 = vector.load %arg2[%c0_139, %c0_140, %c3_141, %c0_142, %c0_143] : memref<1x2x5x16x16xf32, #tpu.memory_space<vmem>>, vector<1x1x1x16x16xf32>
    %190 = vector.shape_cast %189 : vector<1x1x1x16x16xf32> to vector<16x16xf32>
    %191 = vector.shape_cast %188 : vector<16x16xf32> to vector<1x1x1x16x16xf32>
    tpu.vector_store %arg2[%c0_139, %c0_140, %c3_141, %c0_142, %c0_143], %191 {strides = array<i32>} : memref<1x2x5x16x16xf32, #tpu.memory_space<vmem>>, vector<1x1x1x16x16xf32>,
    %192 = arith.minimumf %143, %188 : vector<16x16xf32>
    %193 = arith.addf %144, %188 : vector<16x16xf32>
    %cst_144 = arith.constant 2.500000e-01 : f32
    %194 = vector.broadcast %cst_144 : f32 to vector<16x16xf32>
    %195 = arith.mulf %193, %194 : vector<16x16xf32>
    %196 = arith.subf %195, %192 : vector<16x16xf32>
    %c0_145 = arith.constant 0 : index
    %c0_146 = arith.constant 0 : index
    %c0_147 = arith.constant 0 : index
    %c0_148 = arith.constant 0 : index
    %c0_149 = arith.constant 0 : index
    %197 = vector.load %arg2[%c0_145, %c0_146, %c0_147, %c0_148, %c0_149] : memref<1x2x5x16x16xf32, #tpu.memory_space<vmem>>, vector<1x1x1x16x16xf32>
    %198 = vector.shape_cast %197 : vector<1x1x1x16x16xf32> to vector<16x16xf32>
    %199 = arith.subf %198, %192 : vector<16x16xf32>
    %c0_150 = arith.constant 0 : index
    %c0_151 = arith.constant 0 : index
    %c0_152 = arith.constant 0 : index
    %c0_153 = arith.constant 0 : index
    %c0_154 = arith.constant 0 : index
    %200 = vector.load %arg2[%c0_150, %c0_151, %c0_152, %c0_153, %c0_154] : memref<1x2x5x16x16xf32, #tpu.memory_space<vmem>>, vector<1x1x1x16x16xf32>
    %201 = vector.shape_cast %200 : vector<1x1x1x16x16xf32> to vector<16x16xf32>
    %202 = vector.shape_cast %199 : vector<16x16xf32> to vector<1x1x1x16x16xf32>
    tpu.vector_store %arg2[%c0_150, %c0_151, %c0_152, %c0_153, %c0_154], %202 {strides = array<i32>} : memref<1x2x5x16x16xf32, #tpu.memory_space<vmem>>, vector<1x1x1x16x16xf32>,
    %c0_155 = arith.constant 0 : index
    %c0_156 = arith.constant 0 : index
    %c1_157 = arith.constant 1 : index
    %c0_158 = arith.constant 0 : index
    %c0_159 = arith.constant 0 : index
    %203 = vector.load %arg2[%c0_155, %c0_156, %c1_157, %c0_158, %c0_159] : memref<1x2x5x16x16xf32, #tpu.memory_space<vmem>>, vector<1x1x1x16x16xf32>
    %204 = vector.shape_cast %203 : vector<1x1x1x16x16xf32> to vector<16x16xf32>
    %205 = arith.subf %204, %192 : vector<16x16xf32>
    %c0_160 = arith.constant 0 : index
    %c0_161 = arith.constant 0 : index
    %c1_162 = arith.constant 1 : index
    %c0_163 = arith.constant 0 : index
    %c0_164 = arith.constant 0 : index
    %206 = vector.load %arg2[%c0_160, %c0_161, %c1_162, %c0_163, %c0_164] : memref<1x2x5x16x16xf32, #tpu.memory_space<vmem>>, vector<1x1x1x16x16xf32>
    %207 = vector.shape_cast %206 : vector<1x1x1x16x16xf32> to vector<16x16xf32>
    %208 = vector.shape_cast %205 : vector<16x16xf32> to vector<1x1x1x16x16xf32>
    tpu.vector_store %arg2[%c0_160, %c0_161, %c1_162, %c0_163, %c0_164], %208 {strides = array<i32>} : memref<1x2x5x16x16xf32, #tpu.memory_space<vmem>>, vector<1x1x1x16x16xf32>,
    %c0_165 = arith.constant 0 : index
    %c0_166 = arith.constant 0 : index
    %c2_167 = arith.constant 2 : index
    %c0_168 = arith.constant 0 : index
    %c0_169 = arith.constant 0 : index
    %209 = vector.load %arg2[%c0_165, %c0_166, %c2_167, %c0_168, %c0_169] : memref<1x2x5x16x16xf32, #tpu.memory_space<vmem>>, vector<1x1x1x16x16xf32>
    %210 = vector.shape_cast %209 : vector<1x1x1x16x16xf32> to vector<16x16xf32>
    %211 = arith.subf %210, %192 : vector<16x16xf32>
    %c0_170 = arith.constant 0 : index
    %c0_171 = arith.constant 0 : index
    %c2_172 = arith.constant 2 : index
    %c0_173 = arith.constant 0 : index
    %c0_174 = arith.constant 0 : index
    %212 = vector.load %arg2[%c0_170, %c0_171, %c2_172, %c0_173, %c0_174] : memref<1x2x5x16x16xf32, #tpu.memory_space<vmem>>, vector<1x1x1x16x16xf32>
    %213 = vector.shape_cast %212 : vector<1x1x1x16x16xf32> to vector<16x16xf32>
    %214 = vector.shape_cast %211 : vector<16x16xf32> to vector<1x1x1x16x16xf32>
    tpu.vector_store %arg2[%c0_170, %c0_171, %c2_172, %c0_173, %c0_174], %214 {strides = array<i32>} : memref<1x2x5x16x16xf32, #tpu.memory_space<vmem>>, vector<1x1x1x16x16xf32>,
    %c0_175 = arith.constant 0 : index
    %c0_176 = arith.constant 0 : index
    %c3_177 = arith.constant 3 : index
    %c0_178 = arith.constant 0 : index
    %c0_179 = arith.constant 0 : index
    %215 = vector.load %arg2[%c0_175, %c0_176, %c3_177, %c0_178, %c0_179] : memref<1x2x5x16x16xf32, #tpu.memory_space<vmem>>, vector<1x1x1x16x16xf32>
    %216 = vector.shape_cast %215 : vector<1x1x1x16x16xf32> to vector<16x16xf32>
    %217 = arith.subf %216, %192 : vector<16x16xf32>
    %c0_180 = arith.constant 0 : index
    %c0_181 = arith.constant 0 : index
    %c3_182 = arith.constant 3 : index
    %c0_183 = arith.constant 0 : index
    %c0_184 = arith.constant 0 : index
    %218 = vector.load %arg2[%c0_180, %c0_181, %c3_182, %c0_183, %c0_184] : memref<1x2x5x16x16xf32, #tpu.memory_space<vmem>>, vector<1x1x1x16x16xf32>
    %219 = vector.shape_cast %218 : vector<1x1x1x16x16xf32> to vector<16x16xf32>
    %220 = vector.shape_cast %217 : vector<16x16xf32> to vector<1x1x1x16x16xf32>
    tpu.vector_store %arg2[%c0_180, %c0_181, %c3_182, %c0_183, %c0_184], %220 {strides = array<i32>} : memref<1x2x5x16x16xf32, #tpu.memory_space<vmem>>, vector<1x1x1x16x16xf32>,
    %c0_185 = arith.constant 0 : index
    %c0_186 = arith.constant 0 : index
    %c4_187 = arith.constant 4 : index
    %c0_188 = arith.constant 0 : index
    %c0_189 = arith.constant 0 : index
    %221 = vector.load %arg2[%c0_185, %c0_186, %c4_187, %c0_188, %c0_189] : memref<1x2x5x16x16xf32, #tpu.memory_space<vmem>>, vector<1x1x1x16x16xf32>
    %222 = vector.shape_cast %221 : vector<1x1x1x16x16xf32> to vector<16x16xf32>
    %223 = vector.shape_cast %196 : vector<16x16xf32> to vector<1x1x1x16x16xf32>
    tpu.vector_store %arg2[%c0_185, %c0_186, %c4_187, %c0_188, %c0_189], %223 {strides = array<i32>} : memref<1x2x5x16x16xf32, #tpu.memory_space<vmem>>, vector<1x1x1x16x16xf32>,
    %cst_190 = arith.constant 0.000000e+00 : f32
    %224 = vector.broadcast %cst_190 : f32 to vector<128xf32>
    %225 = vector.shape_cast %196 : vector<16x16xf32> to vector<1x16x16xf32>
    %cst_191 = arith.constant dense<0.000000e+00> : vector<1xf32>
    %226 = vector.multi_reduction <add>, %225, %cst_191 [1, 2] : vector<1x16x16xf32> to vector<1xf32>
    %227 = vector.shape_cast %226 : vector<1xf32> to vector<1x1x1xf32>
    %228 = vector.extract %227[0, 0, 0] : f32 from vector<1x1x1xf32>
    %229 = vector.broadcast %228 : f32 to vector<128xf32>
    %230 = arith.addf %224, %229 : vector<128xf32>
    %c0_192 = arith.constant 0 : index
    %c0_193 = arith.constant 0 : index
    %c0_194 = arith.constant 0 : index
    %c0_195 = arith.constant 0 : index
    %231 = vector.load %arg3[%c0_192, %c0_193, %c0_194, %c0_195] : memref<1x2x1x128xf32, #tpu.memory_space<vmem>>, vector<1x1x1x128xf32>
    %232 = vector.shape_cast %231 : vector<1x1x1x128xf32> to vector<128xf32>
    %233 = vector.shape_cast %230 : vector<128xf32> to vector<1x1x1x128xf32>
    tpu.vector_store %arg3[%c0_192, %c0_193, %c0_194, %c0_195], %233 {strides = array<i32>} : memref<1x2x1x128xf32, #tpu.memory_space<vmem>>, vector<1x1x1x128xf32>,
    %c0_196 = arith.constant 0 : index
    %c1_197 = arith.constant 1 : index
    %c2_198 = arith.constant 2 : index
    %c0_199 = arith.constant 0 : index
    %234 = vector.load %arg1[%c0_196, %c1_197, %c2_198, %c0_199] : memref<1x2x20x20xf32, #tpu.memory_space<vmem>>, vector<1x1x16x16xf32>
    %235 = vector.shape_cast %234 : vector<1x1x16x16xf32> to vector<16x16xf32>
    %c0_200 = arith.constant 0 : index
    %c1_201 = arith.constant 1 : index
    %c0_202 = arith.constant 0 : index
    %c2_203 = arith.constant 2 : index
    %236 = vector.load %arg1[%c0_200, %c1_201, %c0_202, %c2_203] : memref<1x2x20x20xf32, #tpu.memory_space<vmem>>, vector<1x1x16x16xf32>
    %237 = vector.shape_cast %236 : vector<1x1x16x16xf32> to vector<16x16xf32>
    %238 = arith.subf %235, %237 : vector<16x16xf32>
    %239 = arith.subf %235, %237 : vector<16x16xf32>
    %240 = arith.mulf %238, %239 : vector<16x16xf32>
    %c2_204 = arith.constant 2 : index
    %c2_205 = arith.constant 2 : index
    %241 = vector.load %arg4[%c2_204, %c2_205] : memref<20x20xf32, #tpu.memory_space<vmem>>, vector<16x16xf32>
    tpu.vector_store %arg4[%c2_204, %c2_205], %240 {strides = array<i32>} : memref<20x20xf32, #tpu.memory_space<vmem>>, vector<16x16xf32>,
    %242 = vector.extract_strided_slice %240 {offsets = [0, 0], sizes = [1, 16], strides = [1, 1]} : vector<16x16xf32> to vector<1x16xf32>
    %243 = vector.shape_cast %242 : vector<1x16xf32> to vector<1x16xf32>
    %244 = vector.broadcast %243 : vector<1x16xf32> to vector<2x16xf32>
    %c0_206 = arith.constant 0 : index
    %c2_207 = arith.constant 2 : index
    %245 = vector.load %arg4[%c0_206, %c2_207] : memref<20x20xf32, #tpu.memory_space<vmem>>, vector<2x16xf32>
    tpu.vector_store %arg4[%c0_206, %c2_207], %244 {strides = array<i32>} : memref<20x20xf32, #tpu.memory_space<vmem>>, vector<2x16xf32>,
    %246 = vector.extract_strided_slice %240 {offsets = [15, 0], sizes = [1, 16], strides = [1, 1]} : vector<16x16xf32> to vector<1x16xf32>
    %247 = vector.shape_cast %246 : vector<1x16xf32> to vector<1x16xf32>
    %248 = vector.broadcast %247 : vector<1x16xf32> to vector<2x16xf32>
    %c18_208 = arith.constant 18 : index
    %c2_209 = arith.constant 2 : index
    %249 = vector.load %arg4[%c18_208, %c2_209] : memref<20x20xf32, #tpu.memory_space<vmem>>, vector<2x16xf32>
    tpu.vector_store %arg4[%c18_208, %c2_209], %248 {strides = array<i32>} : memref<20x20xf32, #tpu.memory_space<vmem>>, vector<2x16xf32>,
    %c0_210 = arith.constant 0 : index
    %c2_211 = arith.constant 2 : index
    %250 = vector.load %arg4[%c0_210, %c2_211] : memref<20x20xf32, #tpu.memory_space<vmem>>, vector<20x1xf32>
    %c0_212 = arith.constant 0 : index
    %c17_213 = arith.constant 17 : index
    %251 = vector.load %arg4[%c0_212, %c17_213] : memref<20x20xf32, #tpu.memory_space<vmem>>, vector<20x1xf32>
    %252 = vector.shape_cast %250 : vector<20x1xf32> to vector<20x1xf32>
    %253 = vector.broadcast %252 : vector<20x1xf32> to vector<20x2xf32>
    %c0_214 = arith.constant 0 : index
    %c0_215 = arith.constant 0 : index
    %254 = vector.load %arg4[%c0_214, %c0_215] : memref<20x20xf32, #tpu.memory_space<vmem>>, vector<20x2xf32>
    tpu.vector_store %arg4[%c0_214, %c0_215], %253 {strides = array<i32>} : memref<20x20xf32, #tpu.memory_space<vmem>>, vector<20x2xf32>,
    %255 = vector.shape_cast %251 : vector<20x1xf32> to vector<20x1xf32>
    %256 = vector.broadcast %255 : vector<20x1xf32> to vector<20x2xf32>
    %c0_216 = arith.constant 0 : index
    %c18_217 = arith.constant 18 : index
    %257 = vector.load %arg4[%c0_216, %c18_217] : memref<20x20xf32, #tpu.memory_space<vmem>>, vector<20x2xf32>
    tpu.vector_store %arg4[%c0_216, %c18_217], %256 {strides = array<i32>} : memref<20x20xf32, #tpu.memory_space<vmem>>, vector<20x2xf32>,
    %c0_218 = arith.constant 0 : index
    %c0_219 = arith.constant 0 : index
    %258 = vector.load %arg4[%c0_218, %c0_219] : memref<20x20xf32, #tpu.memory_space<vmem>>, vector<20x16xf32>
    %c0_220 = arith.constant 0 : index
    %c1_221 = arith.constant 1 : index
    %259 = vector.load %arg4[%c0_220, %c1_221] : memref<20x20xf32, #tpu.memory_space<vmem>>, vector<20x16xf32>
    %c0_222 = arith.constant 0 : index
    %c2_223 = arith.constant 2 : index
    %260 = vector.load %arg4[%c0_222, %c2_223] : memref<20x20xf32, #tpu.memory_space<vmem>>, vector<20x16xf32>
    %c0_224 = arith.constant 0 : index
    %c3_225 = arith.constant 3 : index
    %261 = vector.load %arg4[%c0_224, %c3_225] : memref<20x20xf32, #tpu.memory_space<vmem>>, vector<20x16xf32>
    %c0_226 = arith.constant 0 : index
    %c4_227 = arith.constant 4 : index
    %262 = vector.load %arg4[%c0_226, %c4_227] : memref<20x20xf32, #tpu.memory_space<vmem>>, vector<20x16xf32>
    %263 = arith.addf %258, %259 : vector<20x16xf32>
    %264 = arith.addf %260, %261 : vector<20x16xf32>
    %265 = arith.addf %263, %264 : vector<20x16xf32>
    %266 = arith.addf %265, %262 : vector<20x16xf32>
    %267 = vector.extract_strided_slice %266 {offsets = [0, 0], sizes = [16, 16], strides = [1, 1]} : vector<20x16xf32> to vector<16x16xf32>
    %268 = vector.extract_strided_slice %266 {offsets = [1, 0], sizes = [16, 16], strides = [1, 1]} : vector<20x16xf32> to vector<16x16xf32>
    %269 = vector.extract_strided_slice %266 {offsets = [2, 0], sizes = [16, 16], strides = [1, 1]} : vector<20x16xf32> to vector<16x16xf32>
    %270 = vector.extract_strided_slice %266 {offsets = [3, 0], sizes = [16, 16], strides = [1, 1]} : vector<20x16xf32> to vector<16x16xf32>
    %271 = vector.extract_strided_slice %266 {offsets = [4, 0], sizes = [16, 16], strides = [1, 1]} : vector<20x16xf32> to vector<16x16xf32>
    %272 = arith.addf %267, %268 : vector<16x16xf32>
    %273 = arith.addf %269, %270 : vector<16x16xf32>
    %274 = arith.addf %272, %273 : vector<16x16xf32>
    %275 = arith.addf %274, %271 : vector<16x16xf32>
    %cst_228 = arith.constant 4.000000e-02 : f32
    %276 = vector.broadcast %cst_228 : f32 to vector<16x16xf32>
    %277 = arith.mulf %275, %276 : vector<16x16xf32>
    %c0_229 = arith.constant 0 : index
    %c1_230 = arith.constant 1 : index
    %c0_231 = arith.constant 0 : index
    %c0_232 = arith.constant 0 : index
    %c0_233 = arith.constant 0 : index
    %278 = vector.load %arg2[%c0_229, %c1_230, %c0_231, %c0_232, %c0_233] : memref<1x2x5x16x16xf32, #tpu.memory_space<vmem>>, vector<1x1x1x16x16xf32>
    %279 = vector.shape_cast %278 : vector<1x1x1x16x16xf32> to vector<16x16xf32>
    %280 = vector.shape_cast %277 : vector<16x16xf32> to vector<1x1x1x16x16xf32>
    tpu.vector_store %arg2[%c0_229, %c1_230, %c0_231, %c0_232, %c0_233], %280 {strides = array<i32>} : memref<1x2x5x16x16xf32, #tpu.memory_space<vmem>>, vector<1x1x1x16x16xf32>,
    %c0_234 = arith.constant 0 : index
    %c1_235 = arith.constant 1 : index
    %c4_236 = arith.constant 4 : index
    %c2_237 = arith.constant 2 : index
    %281 = vector.load %arg1[%c0_234, %c1_235, %c4_236, %c2_237] : memref<1x2x20x20xf32, #tpu.memory_space<vmem>>, vector<1x1x16x16xf32>
    %282 = vector.shape_cast %281 : vector<1x1x16x16xf32> to vector<16x16xf32>
    %c0_238 = arith.constant 0 : index
    %c1_239 = arith.constant 1 : index
    %c2_240 = arith.constant 2 : index
    %c0_241 = arith.constant 0 : index
    %283 = vector.load %arg1[%c0_238, %c1_239, %c2_240, %c0_241] : memref<1x2x20x20xf32, #tpu.memory_space<vmem>>, vector<1x1x16x16xf32>
    %284 = vector.shape_cast %283 : vector<1x1x16x16xf32> to vector<16x16xf32>
    %285 = arith.subf %282, %284 : vector<16x16xf32>
    %286 = arith.subf %282, %284 : vector<16x16xf32>
    %287 = arith.mulf %285, %286 : vector<16x16xf32>
    %c2_242 = arith.constant 2 : index
    %c2_243 = arith.constant 2 : index
    %288 = vector.load %arg4[%c2_242, %c2_243] : memref<20x20xf32, #tpu.memory_space<vmem>>, vector<16x16xf32>
    tpu.vector_store %arg4[%c2_242, %c2_243], %287 {strides = array<i32>} : memref<20x20xf32, #tpu.memory_space<vmem>>, vector<16x16xf32>,
    %289 = vector.extract_strided_slice %287 {offsets = [0, 0], sizes = [1, 16], strides = [1, 1]} : vector<16x16xf32> to vector<1x16xf32>
    %290 = vector.shape_cast %289 : vector<1x16xf32> to vector<1x16xf32>
    %291 = vector.broadcast %290 : vector<1x16xf32> to vector<2x16xf32>
    %c0_244 = arith.constant 0 : index
    %c2_245 = arith.constant 2 : index
    %292 = vector.load %arg4[%c0_244, %c2_245] : memref<20x20xf32, #tpu.memory_space<vmem>>, vector<2x16xf32>
    tpu.vector_store %arg4[%c0_244, %c2_245], %291 {strides = array<i32>} : memref<20x20xf32, #tpu.memory_space<vmem>>, vector<2x16xf32>,
    %293 = vector.extract_strided_slice %287 {offsets = [15, 0], sizes = [1, 16], strides = [1, 1]} : vector<16x16xf32> to vector<1x16xf32>
    %294 = vector.shape_cast %293 : vector<1x16xf32> to vector<1x16xf32>
    %295 = vector.broadcast %294 : vector<1x16xf32> to vector<2x16xf32>
    %c18_246 = arith.constant 18 : index
    %c2_247 = arith.constant 2 : index
    %296 = vector.load %arg4[%c18_246, %c2_247] : memref<20x20xf32, #tpu.memory_space<vmem>>, vector<2x16xf32>
    tpu.vector_store %arg4[%c18_246, %c2_247], %295 {strides = array<i32>} : memref<20x20xf32, #tpu.memory_space<vmem>>, vector<2x16xf32>,
    %c0_248 = arith.constant 0 : index
    %c2_249 = arith.constant 2 : index
    %297 = vector.load %arg4[%c0_248, %c2_249] : memref<20x20xf32, #tpu.memory_space<vmem>>, vector<20x1xf32>
    %c0_250 = arith.constant 0 : index
    %c17_251 = arith.constant 17 : index
    %298 = vector.load %arg4[%c0_250, %c17_251] : memref<20x20xf32, #tpu.memory_space<vmem>>, vector<20x1xf32>
    %299 = vector.shape_cast %297 : vector<20x1xf32> to vector<20x1xf32>
    %300 = vector.broadcast %299 : vector<20x1xf32> to vector<20x2xf32>
    %c0_252 = arith.constant 0 : index
    %c0_253 = arith.constant 0 : index
    %301 = vector.load %arg4[%c0_252, %c0_253] : memref<20x20xf32, #tpu.memory_space<vmem>>, vector<20x2xf32>
    tpu.vector_store %arg4[%c0_252, %c0_253], %300 {strides = array<i32>} : memref<20x20xf32, #tpu.memory_space<vmem>>, vector<20x2xf32>,
    %302 = vector.shape_cast %298 : vector<20x1xf32> to vector<20x1xf32>
    %303 = vector.broadcast %302 : vector<20x1xf32> to vector<20x2xf32>
    %c0_254 = arith.constant 0 : index
    %c18_255 = arith.constant 18 : index
    %304 = vector.load %arg4[%c0_254, %c18_255] : memref<20x20xf32, #tpu.memory_space<vmem>>, vector<20x2xf32>
    tpu.vector_store %arg4[%c0_254, %c18_255], %303 {strides = array<i32>} : memref<20x20xf32, #tpu.memory_space<vmem>>, vector<20x2xf32>,
    %c0_256 = arith.constant 0 : index
    %c0_257 = arith.constant 0 : index
    %305 = vector.load %arg4[%c0_256, %c0_257] : memref<20x20xf32, #tpu.memory_space<vmem>>, vector<20x16xf32>
    %c0_258 = arith.constant 0 : index
    %c1_259 = arith.constant 1 : index
    %306 = vector.load %arg4[%c0_258, %c1_259] : memref<20x20xf32, #tpu.memory_space<vmem>>, vector<20x16xf32>
    %c0_260 = arith.constant 0 : index
    %c2_261 = arith.constant 2 : index
    %307 = vector.load %arg4[%c0_260, %c2_261] : memref<20x20xf32, #tpu.memory_space<vmem>>, vector<20x16xf32>
    %c0_262 = arith.constant 0 : index
    %c3_263 = arith.constant 3 : index
    %308 = vector.load %arg4[%c0_262, %c3_263] : memref<20x20xf32, #tpu.memory_space<vmem>>, vector<20x16xf32>
    %c0_264 = arith.constant 0 : index
    %c4_265 = arith.constant 4 : index
    %309 = vector.load %arg4[%c0_264, %c4_265] : memref<20x20xf32, #tpu.memory_space<vmem>>, vector<20x16xf32>
    %310 = arith.addf %305, %306 : vector<20x16xf32>
    %311 = arith.addf %307, %308 : vector<20x16xf32>
    %312 = arith.addf %310, %311 : vector<20x16xf32>
    %313 = arith.addf %312, %309 : vector<20x16xf32>
    %314 = vector.extract_strided_slice %313 {offsets = [0, 0], sizes = [16, 16], strides = [1, 1]} : vector<20x16xf32> to vector<16x16xf32>
    %315 = vector.extract_strided_slice %313 {offsets = [1, 0], sizes = [16, 16], strides = [1, 1]} : vector<20x16xf32> to vector<16x16xf32>
    %316 = vector.extract_strided_slice %313 {offsets = [2, 0], sizes = [16, 16], strides = [1, 1]} : vector<20x16xf32> to vector<16x16xf32>
    %317 = vector.extract_strided_slice %313 {offsets = [3, 0], sizes = [16, 16], strides = [1, 1]} : vector<20x16xf32> to vector<16x16xf32>
    %318 = vector.extract_strided_slice %313 {offsets = [4, 0], sizes = [16, 16], strides = [1, 1]} : vector<20x16xf32> to vector<16x16xf32>
    %319 = arith.addf %314, %315 : vector<16x16xf32>
    %320 = arith.addf %316, %317 : vector<16x16xf32>
    %321 = arith.addf %319, %320 : vector<16x16xf32>
    %322 = arith.addf %321, %318 : vector<16x16xf32>
    %cst_266 = arith.constant 4.000000e-02 : f32
    %323 = vector.broadcast %cst_266 : f32 to vector<16x16xf32>
    %324 = arith.mulf %322, %323 : vector<16x16xf32>
    %c0_267 = arith.constant 0 : index
    %c1_268 = arith.constant 1 : index
    %c1_269 = arith.constant 1 : index
    %c0_270 = arith.constant 0 : index
    %c0_271 = arith.constant 0 : index
    %325 = vector.load %arg2[%c0_267, %c1_268, %c1_269, %c0_270, %c0_271] : memref<1x2x5x16x16xf32, #tpu.memory_space<vmem>>, vector<1x1x1x16x16xf32>
    %326 = vector.shape_cast %325 : vector<1x1x1x16x16xf32> to vector<16x16xf32>
    %327 = vector.shape_cast %324 : vector<16x16xf32> to vector<1x1x1x16x16xf32>
    tpu.vector_store %arg2[%c0_267, %c1_268, %c1_269, %c0_270, %c0_271], %327 {strides = array<i32>} : memref<1x2x5x16x16xf32, #tpu.memory_space<vmem>>, vector<1x1x1x16x16xf32>,
    %328 = arith.minimumf %277, %324 : vector<16x16xf32>
    %329 = arith.addf %277, %324 : vector<16x16xf32>
    %c0_272 = arith.constant 0 : index
    %c1_273 = arith.constant 1 : index
    %c2_274 = arith.constant 2 : index
    %c4_275 = arith.constant 4 : index
    %330 = vector.load %arg1[%c0_272, %c1_273, %c2_274, %c4_275] : memref<1x2x20x20xf32, #tpu.memory_space<vmem>>, vector<1x1x16x16xf32>
    %331 = vector.shape_cast %330 : vector<1x1x16x16xf32> to vector<16x16xf32>
    %c0_276 = arith.constant 0 : index
    %c1_277 = arith.constant 1 : index
    %c0_278 = arith.constant 0 : index
    %c2_279 = arith.constant 2 : index
    %332 = vector.load %arg1[%c0_276, %c1_277, %c0_278, %c2_279] : memref<1x2x20x20xf32, #tpu.memory_space<vmem>>, vector<1x1x16x16xf32>
    %333 = vector.shape_cast %332 : vector<1x1x16x16xf32> to vector<16x16xf32>
    %334 = arith.subf %331, %333 : vector<16x16xf32>
    %335 = arith.subf %331, %333 : vector<16x16xf32>
    %336 = arith.mulf %334, %335 : vector<16x16xf32>
    %c2_280 = arith.constant 2 : index
    %c2_281 = arith.constant 2 : index
    %337 = vector.load %arg4[%c2_280, %c2_281] : memref<20x20xf32, #tpu.memory_space<vmem>>, vector<16x16xf32>
    tpu.vector_store %arg4[%c2_280, %c2_281], %336 {strides = array<i32>} : memref<20x20xf32, #tpu.memory_space<vmem>>, vector<16x16xf32>,
    %338 = vector.extract_strided_slice %336 {offsets = [0, 0], sizes = [1, 16], strides = [1, 1]} : vector<16x16xf32> to vector<1x16xf32>
    %339 = vector.shape_cast %338 : vector<1x16xf32> to vector<1x16xf32>
    %340 = vector.broadcast %339 : vector<1x16xf32> to vector<2x16xf32>
    %c0_282 = arith.constant 0 : index
    %c2_283 = arith.constant 2 : index
    %341 = vector.load %arg4[%c0_282, %c2_283] : memref<20x20xf32, #tpu.memory_space<vmem>>, vector<2x16xf32>
    tpu.vector_store %arg4[%c0_282, %c2_283], %340 {strides = array<i32>} : memref<20x20xf32, #tpu.memory_space<vmem>>, vector<2x16xf32>,
    %342 = vector.extract_strided_slice %336 {offsets = [15, 0], sizes = [1, 16], strides = [1, 1]} : vector<16x16xf32> to vector<1x16xf32>
    %343 = vector.shape_cast %342 : vector<1x16xf32> to vector<1x16xf32>
    %344 = vector.broadcast %343 : vector<1x16xf32> to vector<2x16xf32>
    %c18_284 = arith.constant 18 : index
    %c2_285 = arith.constant 2 : index
    %345 = vector.load %arg4[%c18_284, %c2_285] : memref<20x20xf32, #tpu.memory_space<vmem>>, vector<2x16xf32>
    tpu.vector_store %arg4[%c18_284, %c2_285], %344 {strides = array<i32>} : memref<20x20xf32, #tpu.memory_space<vmem>>, vector<2x16xf32>,
    %c0_286 = arith.constant 0 : index
    %c2_287 = arith.constant 2 : index
    %346 = vector.load %arg4[%c0_286, %c2_287] : memref<20x20xf32, #tpu.memory_space<vmem>>, vector<20x1xf32>
    %c0_288 = arith.constant 0 : index
    %c17_289 = arith.constant 17 : index
    %347 = vector.load %arg4[%c0_288, %c17_289] : memref<20x20xf32, #tpu.memory_space<vmem>>, vector<20x1xf32>
    %348 = vector.shape_cast %346 : vector<20x1xf32> to vector<20x1xf32>
    %349 = vector.broadcast %348 : vector<20x1xf32> to vector<20x2xf32>
    %c0_290 = arith.constant 0 : index
    %c0_291 = arith.constant 0 : index
    %350 = vector.load %arg4[%c0_290, %c0_291] : memref<20x20xf32, #tpu.memory_space<vmem>>, vector<20x2xf32>
    tpu.vector_store %arg4[%c0_290, %c0_291], %349 {strides = array<i32>} : memref<20x20xf32, #tpu.memory_space<vmem>>, vector<20x2xf32>,
    %351 = vector.shape_cast %347 : vector<20x1xf32> to vector<20x1xf32>
    %352 = vector.broadcast %351 : vector<20x1xf32> to vector<20x2xf32>
    %c0_292 = arith.constant 0 : index
    %c18_293 = arith.constant 18 : index
    %353 = vector.load %arg4[%c0_292, %c18_293] : memref<20x20xf32, #tpu.memory_space<vmem>>, vector<20x2xf32>
    tpu.vector_store %arg4[%c0_292, %c18_293], %352 {strides = array<i32>} : memref<20x20xf32, #tpu.memory_space<vmem>>, vector<20x2xf32>,
    %c0_294 = arith.constant 0 : index
    %c0_295 = arith.constant 0 : index
    %354 = vector.load %arg4[%c0_294, %c0_295] : memref<20x20xf32, #tpu.memory_space<vmem>>, vector<20x16xf32>
    %c0_296 = arith.constant 0 : index
    %c1_297 = arith.constant 1 : index
    %355 = vector.load %arg4[%c0_296, %c1_297] : memref<20x20xf32, #tpu.memory_space<vmem>>, vector<20x16xf32>
    %c0_298 = arith.constant 0 : index
    %c2_299 = arith.constant 2 : index
    %356 = vector.load %arg4[%c0_298, %c2_299] : memref<20x20xf32, #tpu.memory_space<vmem>>, vector<20x16xf32>
    %c0_300 = arith.constant 0 : index
    %c3_301 = arith.constant 3 : index
    %357 = vector.load %arg4[%c0_300, %c3_301] : memref<20x20xf32, #tpu.memory_space<vmem>>, vector<20x16xf32>
    %c0_302 = arith.constant 0 : index
    %c4_303 = arith.constant 4 : index
    %358 = vector.load %arg4[%c0_302, %c4_303] : memref<20x20xf32, #tpu.memory_space<vmem>>, vector<20x16xf32>
    %359 = arith.addf %354, %355 : vector<20x16xf32>
    %360 = arith.addf %356, %357 : vector<20x16xf32>
    %361 = arith.addf %359, %360 : vector<20x16xf32>
    %362 = arith.addf %361, %358 : vector<20x16xf32>
    %363 = vector.extract_strided_slice %362 {offsets = [0, 0], sizes = [16, 16], strides = [1, 1]} : vector<20x16xf32> to vector<16x16xf32>
    %364 = vector.extract_strided_slice %362 {offsets = [1, 0], sizes = [16, 16], strides = [1, 1]} : vector<20x16xf32> to vector<16x16xf32>
    %365 = vector.extract_strided_slice %362 {offsets = [2, 0], sizes = [16, 16], strides = [1, 1]} : vector<20x16xf32> to vector<16x16xf32>
    %366 = vector.extract_strided_slice %362 {offsets = [3, 0], sizes = [16, 16], strides = [1, 1]} : vector<20x16xf32> to vector<16x16xf32>
    %367 = vector.extract_strided_slice %362 {offsets = [4, 0], sizes = [16, 16], strides = [1, 1]} : vector<20x16xf32> to vector<16x16xf32>
    %368 = arith.addf %363, %364 : vector<16x16xf32>
    %369 = arith.addf %365, %366 : vector<16x16xf32>
    %370 = arith.addf %368, %369 : vector<16x16xf32>
    %371 = arith.addf %370, %367 : vector<16x16xf32>
    %cst_304 = arith.constant 4.000000e-02 : f32
    %372 = vector.broadcast %cst_304 : f32 to vector<16x16xf32>
    %373 = arith.mulf %371, %372 : vector<16x16xf32>
    %c0_305 = arith.constant 0 : index
    %c1_306 = arith.constant 1 : index
    %c2_307 = arith.constant 2 : index
    %c0_308 = arith.constant 0 : index
    %c0_309 = arith.constant 0 : index
    %374 = vector.load %arg2[%c0_305, %c1_306, %c2_307, %c0_308, %c0_309] : memref<1x2x5x16x16xf32, #tpu.memory_space<vmem>>, vector<1x1x1x16x16xf32>
    %375 = vector.shape_cast %374 : vector<1x1x1x16x16xf32> to vector<16x16xf32>
    %376 = vector.shape_cast %373 : vector<16x16xf32> to vector<1x1x1x16x16xf32>
    tpu.vector_store %arg2[%c0_305, %c1_306, %c2_307, %c0_308, %c0_309], %376 {strides = array<i32>} : memref<1x2x5x16x16xf32, #tpu.memory_space<vmem>>, vector<1x1x1x16x16xf32>,
    %377 = arith.minimumf %328, %373 : vector<16x16xf32>
    %378 = arith.addf %329, %373 : vector<16x16xf32>
    %c0_310 = arith.constant 0 : index
    %c1_311 = arith.constant 1 : index
    %c2_312 = arith.constant 2 : index
    %c4_313 = arith.constant 4 : index
    %379 = vector.load %arg1[%c0_310, %c1_311, %c2_312, %c4_313] : memref<1x2x20x20xf32, #tpu.memory_space<vmem>>, vector<1x1x16x16xf32>
    %380 = vector.shape_cast %379 : vector<1x1x16x16xf32> to vector<16x16xf32>
    %c0_314 = arith.constant 0 : index
    %c1_315 = arith.constant 1 : index
    %c4_316 = arith.constant 4 : index
    %c2_317 = arith.constant 2 : index
    %381 = vector.load %arg1[%c0_314, %c1_315, %c4_316, %c2_317] : memref<1x2x20x20xf32, #tpu.memory_space<vmem>>, vector<1x1x16x16xf32>
    %382 = vector.shape_cast %381 : vector<1x1x16x16xf32> to vector<16x16xf32>
    %383 = arith.subf %380, %382 : vector<16x16xf32>
    %384 = arith.subf %380, %382 : vector<16x16xf32>
    %385 = arith.mulf %383, %384 : vector<16x16xf32>
    %c2_318 = arith.constant 2 : index
    %c2_319 = arith.constant 2 : index
    %386 = vector.load %arg4[%c2_318, %c2_319] : memref<20x20xf32, #tpu.memory_space<vmem>>, vector<16x16xf32>
    tpu.vector_store %arg4[%c2_318, %c2_319], %385 {strides = array<i32>} : memref<20x20xf32, #tpu.memory_space<vmem>>, vector<16x16xf32>,
    %387 = vector.extract_strided_slice %385 {offsets = [0, 0], sizes = [1, 16], strides = [1, 1]} : vector<16x16xf32> to vector<1x16xf32>
    %388 = vector.shape_cast %387 : vector<1x16xf32> to vector<1x16xf32>
    %389 = vector.broadcast %388 : vector<1x16xf32> to vector<2x16xf32>
    %c0_320 = arith.constant 0 : index
    %c2_321 = arith.constant 2 : index
    %390 = vector.load %arg4[%c0_320, %c2_321] : memref<20x20xf32, #tpu.memory_space<vmem>>, vector<2x16xf32>
    tpu.vector_store %arg4[%c0_320, %c2_321], %389 {strides = array<i32>} : memref<20x20xf32, #tpu.memory_space<vmem>>, vector<2x16xf32>,
    %391 = vector.extract_strided_slice %385 {offsets = [15, 0], sizes = [1, 16], strides = [1, 1]} : vector<16x16xf32> to vector<1x16xf32>
    %392 = vector.shape_cast %391 : vector<1x16xf32> to vector<1x16xf32>
    %393 = vector.broadcast %392 : vector<1x16xf32> to vector<2x16xf32>
    %c18_322 = arith.constant 18 : index
    %c2_323 = arith.constant 2 : index
    %394 = vector.load %arg4[%c18_322, %c2_323] : memref<20x20xf32, #tpu.memory_space<vmem>>, vector<2x16xf32>
    tpu.vector_store %arg4[%c18_322, %c2_323], %393 {strides = array<i32>} : memref<20x20xf32, #tpu.memory_space<vmem>>, vector<2x16xf32>,
    %c0_324 = arith.constant 0 : index
    %c2_325 = arith.constant 2 : index
    %395 = vector.load %arg4[%c0_324, %c2_325] : memref<20x20xf32, #tpu.memory_space<vmem>>, vector<20x1xf32>
    %c0_326 = arith.constant 0 : index
    %c17_327 = arith.constant 17 : index
    %396 = vector.load %arg4[%c0_326, %c17_327] : memref<20x20xf32, #tpu.memory_space<vmem>>, vector<20x1xf32>
    %397 = vector.shape_cast %395 : vector<20x1xf32> to vector<20x1xf32>
    %398 = vector.broadcast %397 : vector<20x1xf32> to vector<20x2xf32>
    %c0_328 = arith.constant 0 : index
    %c0_329 = arith.constant 0 : index
    %399 = vector.load %arg4[%c0_328, %c0_329] : memref<20x20xf32, #tpu.memory_space<vmem>>, vector<20x2xf32>
    tpu.vector_store %arg4[%c0_328, %c0_329], %398 {strides = array<i32>} : memref<20x20xf32, #tpu.memory_space<vmem>>, vector<20x2xf32>,
    %400 = vector.shape_cast %396 : vector<20x1xf32> to vector<20x1xf32>
    %401 = vector.broadcast %400 : vector<20x1xf32> to vector<20x2xf32>
    %c0_330 = arith.constant 0 : index
    %c18_331 = arith.constant 18 : index
    %402 = vector.load %arg4[%c0_330, %c18_331] : memref<20x20xf32, #tpu.memory_space<vmem>>, vector<20x2xf32>
    tpu.vector_store %arg4[%c0_330, %c18_331], %401 {strides = array<i32>} : memref<20x20xf32, #tpu.memory_space<vmem>>, vector<20x2xf32>,
    %c0_332 = arith.constant 0 : index
    %c0_333 = arith.constant 0 : index
    %403 = vector.load %arg4[%c0_332, %c0_333] : memref<20x20xf32, #tpu.memory_space<vmem>>, vector<20x16xf32>
    %c0_334 = arith.constant 0 : index
    %c1_335 = arith.constant 1 : index
    %404 = vector.load %arg4[%c0_334, %c1_335] : memref<20x20xf32, #tpu.memory_space<vmem>>, vector<20x16xf32>
    %c0_336 = arith.constant 0 : index
    %c2_337 = arith.constant 2 : index
    %405 = vector.load %arg4[%c0_336, %c2_337] : memref<20x20xf32, #tpu.memory_space<vmem>>, vector<20x16xf32>
    %c0_338 = arith.constant 0 : index
    %c3_339 = arith.constant 3 : index
    %406 = vector.load %arg4[%c0_338, %c3_339] : memref<20x20xf32, #tpu.memory_space<vmem>>, vector<20x16xf32>
    %c0_340 = arith.constant 0 : index
    %c4_341 = arith.constant 4 : index
    %407 = vector.load %arg4[%c0_340, %c4_341] : memref<20x20xf32, #tpu.memory_space<vmem>>, vector<20x16xf32>
    %408 = arith.addf %403, %404 : vector<20x16xf32>
    %409 = arith.addf %405, %406 : vector<20x16xf32>
    %410 = arith.addf %408, %409 : vector<20x16xf32>
    %411 = arith.addf %410, %407 : vector<20x16xf32>
    %412 = vector.extract_strided_slice %411 {offsets = [0, 0], sizes = [16, 16], strides = [1, 1]} : vector<20x16xf32> to vector<16x16xf32>
    %413 = vector.extract_strided_slice %411 {offsets = [1, 0], sizes = [16, 16], strides = [1, 1]} : vector<20x16xf32> to vector<16x16xf32>
    %414 = vector.extract_strided_slice %411 {offsets = [2, 0], sizes = [16, 16], strides = [1, 1]} : vector<20x16xf32> to vector<16x16xf32>
    %415 = vector.extract_strided_slice %411 {offsets = [3, 0], sizes = [16, 16], strides = [1, 1]} : vector<20x16xf32> to vector<16x16xf32>
    %416 = vector.extract_strided_slice %411 {offsets = [4, 0], sizes = [16, 16], strides = [1, 1]} : vector<20x16xf32> to vector<16x16xf32>
    %417 = arith.addf %412, %413 : vector<16x16xf32>
    %418 = arith.addf %414, %415 : vector<16x16xf32>
    %419 = arith.addf %417, %418 : vector<16x16xf32>
    %420 = arith.addf %419, %416 : vector<16x16xf32>
    %cst_342 = arith.constant 4.000000e-02 : f32
    %421 = vector.broadcast %cst_342 : f32 to vector<16x16xf32>
    %422 = arith.mulf %420, %421 : vector<16x16xf32>
    %c0_343 = arith.constant 0 : index
    %c1_344 = arith.constant 1 : index
    %c3_345 = arith.constant 3 : index
    %c0_346 = arith.constant 0 : index
    %c0_347 = arith.constant 0 : index
    %423 = vector.load %arg2[%c0_343, %c1_344, %c3_345, %c0_346, %c0_347] : memref<1x2x5x16x16xf32, #tpu.memory_space<vmem>>, vector<1x1x1x16x16xf32>
    %424 = vector.shape_cast %423 : vector<1x1x1x16x16xf32> to vector<16x16xf32>
    %425 = vector.shape_cast %422 : vector<16x16xf32> to vector<1x1x1x16x16xf32>
    tpu.vector_store %arg2[%c0_343, %c1_344, %c3_345, %c0_346, %c0_347], %425 {strides = array<i32>} : memref<1x2x5x16x16xf32, #tpu.memory_space<vmem>>, vector<1x1x1x16x16xf32>,
    %426 = arith.minimumf %377, %422 : vector<16x16xf32>
    %427 = arith.addf %378, %422 : vector<16x16xf32>
    %cst_348 = arith.constant 2.500000e-01 : f32
    %428 = vector.broadcast %cst_348 : f32 to vector<16x16xf32>
    %429 = arith.mulf %427, %428 : vector<16x16xf32>
    %430 = arith.subf %429, %426 : vector<16x16xf32>
    %c0_349 = arith.constant 0 : index
    %c1_350 = arith.constant 1 : index
    %c0_351 = arith.constant 0 : index
    %c0_352 = arith.constant 0 : index
    %c0_353 = arith.constant 0 : index
    %431 = vector.load %arg2[%c0_349, %c1_350, %c0_351, %c0_352, %c0_353] : memref<1x2x5x16x16xf32, #tpu.memory_space<vmem>>, vector<1x1x1x16x16xf32>
    %432 = vector.shape_cast %431 : vector<1x1x1x16x16xf32> to vector<16x16xf32>
    %433 = arith.subf %432, %426 : vector<16x16xf32>
    %c0_354 = arith.constant 0 : index
    %c1_355 = arith.constant 1 : index
    %c0_356 = arith.constant 0 : index
    %c0_357 = arith.constant 0 : index
    %c0_358 = arith.constant 0 : index
    %434 = vector.load %arg2[%c0_354, %c1_355, %c0_356, %c0_357, %c0_358] : memref<1x2x5x16x16xf32, #tpu.memory_space<vmem>>, vector<1x1x1x16x16xf32>
    %435 = vector.shape_cast %434 : vector<1x1x1x16x16xf32> to vector<16x16xf32>
    %436 = vector.shape_cast %433 : vector<16x16xf32> to vector<1x1x1x16x16xf32>
    tpu.vector_store %arg2[%c0_354, %c1_355, %c0_356, %c0_357, %c0_358], %436 {strides = array<i32>} : memref<1x2x5x16x16xf32, #tpu.memory_space<vmem>>, vector<1x1x1x16x16xf32>,
    %c0_359 = arith.constant 0 : index
    %c1_360 = arith.constant 1 : index
    %c1_361 = arith.constant 1 : index
    %c0_362 = arith.constant 0 : index
    %c0_363 = arith.constant 0 : index
    %437 = vector.load %arg2[%c0_359, %c1_360, %c1_361, %c0_362, %c0_363] : memref<1x2x5x16x16xf32, #tpu.memory_space<vmem>>, vector<1x1x1x16x16xf32>
    %438 = vector.shape_cast %437 : vector<1x1x1x16x16xf32> to vector<16x16xf32>
    %439 = arith.subf %438, %426 : vector<16x16xf32>
    %c0_364 = arith.constant 0 : index
    %c1_365 = arith.constant 1 : index
    %c1_366 = arith.constant 1 : index
    %c0_367 = arith.constant 0 : index
    %c0_368 = arith.constant 0 : index
    %440 = vector.load %arg2[%c0_364, %c1_365, %c1_366, %c0_367, %c0_368] : memref<1x2x5x16x16xf32, #tpu.memory_space<vmem>>, vector<1x1x1x16x16xf32>
    %441 = vector.shape_cast %440 : vector<1x1x1x16x16xf32> to vector<16x16xf32>
    %442 = vector.shape_cast %439 : vector<16x16xf32> to vector<1x1x1x16x16xf32>
    tpu.vector_store %arg2[%c0_364, %c1_365, %c1_366, %c0_367, %c0_368], %442 {strides = array<i32>} : memref<1x2x5x16x16xf32, #tpu.memory_space<vmem>>, vector<1x1x1x16x16xf32>,
    %c0_369 = arith.constant 0 : index
    %c1_370 = arith.constant 1 : index
    %c2_371 = arith.constant 2 : index
    %c0_372 = arith.constant 0 : index
    %c0_373 = arith.constant 0 : index
    %443 = vector.load %arg2[%c0_369, %c1_370, %c2_371, %c0_372, %c0_373] : memref<1x2x5x16x16xf32, #tpu.memory_space<vmem>>, vector<1x1x1x16x16xf32>
    %444 = vector.shape_cast %443 : vector<1x1x1x16x16xf32> to vector<16x16xf32>
    %445 = arith.subf %444, %426 : vector<16x16xf32>
    %c0_374 = arith.constant 0 : index
    %c1_375 = arith.constant 1 : index
    %c2_376 = arith.constant 2 : index
    %c0_377 = arith.constant 0 : index
    %c0_378 = arith.constant 0 : index
    %446 = vector.load %arg2[%c0_374, %c1_375, %c2_376, %c0_377, %c0_378] : memref<1x2x5x16x16xf32, #tpu.memory_space<vmem>>, vector<1x1x1x16x16xf32>
    %447 = vector.shape_cast %446 : vector<1x1x1x16x16xf32> to vector<16x16xf32>
    %448 = vector.shape_cast %445 : vector<16x16xf32> to vector<1x1x1x16x16xf32>
    tpu.vector_store %arg2[%c0_374, %c1_375, %c2_376, %c0_377, %c0_378], %448 {strides = array<i32>} : memref<1x2x5x16x16xf32, #tpu.memory_space<vmem>>, vector<1x1x1x16x16xf32>,
    %c0_379 = arith.constant 0 : index
    %c1_380 = arith.constant 1 : index
    %c3_381 = arith.constant 3 : index
    %c0_382 = arith.constant 0 : index
    %c0_383 = arith.constant 0 : index
    %449 = vector.load %arg2[%c0_379, %c1_380, %c3_381, %c0_382, %c0_383] : memref<1x2x5x16x16xf32, #tpu.memory_space<vmem>>, vector<1x1x1x16x16xf32>
    %450 = vector.shape_cast %449 : vector<1x1x1x16x16xf32> to vector<16x16xf32>
    %451 = arith.subf %450, %426 : vector<16x16xf32>
    %c0_384 = arith.constant 0 : index
    %c1_385 = arith.constant 1 : index
    %c3_386 = arith.constant 3 : index
    %c0_387 = arith.constant 0 : index
    %c0_388 = arith.constant 0 : index
    %452 = vector.load %arg2[%c0_384, %c1_385, %c3_386, %c0_387, %c0_388] : memref<1x2x5x16x16xf32, #tpu.memory_space<vmem>>, vector<1x1x1x16x16xf32>
    %453 = vector.shape_cast %452 : vector<1x1x1x16x16xf32> to vector<16x16xf32>
    %454 = vector.shape_cast %451 : vector<16x16xf32> to vector<1x1x1x16x16xf32>
    tpu.vector_store %arg2[%c0_384, %c1_385, %c3_386, %c0_387, %c0_388], %454 {strides = array<i32>} : memref<1x2x5x16x16xf32, #tpu.memory_space<vmem>>, vector<1x1x1x16x16xf32>,
    %c0_389 = arith.constant 0 : index
    %c1_390 = arith.constant 1 : index
    %c4_391 = arith.constant 4 : index
    %c0_392 = arith.constant 0 : index
    %c0_393 = arith.constant 0 : index
    %455 = vector.load %arg2[%c0_389, %c1_390, %c4_391, %c0_392, %c0_393] : memref<1x2x5x16x16xf32, #tpu.memory_space<vmem>>, vector<1x1x1x16x16xf32>
    %456 = vector.shape_cast %455 : vector<1x1x1x16x16xf32> to vector<16x16xf32>
    %457 = vector.shape_cast %430 : vector<16x16xf32> to vector<1x1x1x16x16xf32>
    tpu.vector_store %arg2[%c0_389, %c1_390, %c4_391, %c0_392, %c0_393], %457 {strides = array<i32>} : memref<1x2x5x16x16xf32, #tpu.memory_space<vmem>>, vector<1x1x1x16x16xf32>,
    %cst_394 = arith.constant 0.000000e+00 : f32
    %458 = vector.broadcast %cst_394 : f32 to vector<128xf32>
    %459 = vector.shape_cast %430 : vector<16x16xf32> to vector<1x16x16xf32>
    %cst_395 = arith.constant dense<0.000000e+00> : vector<1xf32>
    %460 = vector.multi_reduction <add>, %459, %cst_395 [1, 2] : vector<1x16x16xf32> to vector<1xf32>
    %461 = vector.shape_cast %460 : vector<1xf32> to vector<1x1x1xf32>
    %462 = vector.extract %461[0, 0, 0] : f32 from vector<1x1x1xf32>
    %463 = vector.broadcast %462 : f32 to vector<128xf32>
    %464 = arith.addf %458, %463 : vector<128xf32>
    %c0_396 = arith.constant 0 : index
    %c1_397 = arith.constant 1 : index
    %c0_398 = arith.constant 0 : index
    %c0_399 = arith.constant 0 : index
    %465 = vector.load %arg3[%c0_396, %c1_397, %c0_398, %c0_399] : memref<1x2x1x128xf32, #tpu.memory_space<vmem>>, vector<1x1x1x128xf32>
    %466 = vector.shape_cast %465 : vector<1x1x1x128xf32> to vector<128xf32>
    %467 = vector.shape_cast %464 : vector<128xf32> to vector<1x1x1x128xf32>
    tpu.vector_store %arg3[%c0_396, %c1_397, %c0_398, %c0_399], %467 {strides = array<i32>} : memref<1x2x1x128xf32, #tpu.memory_space<vmem>>, vector<1x1x1x128xf32>,
    return
  }
  func.func @transform_0(%arg0: i32) -> (i32, i32, i32, i32) {
    %c0_i32 = arith.constant 0 : i32
    %c0_i32_0 = arith.constant 0 : i32
    %c0_i32_1 = arith.constant 0 : i32
    %c0_i32_2 = arith.constant 0 : i32
    return %arg0, %c0_i32, %c0_i32_0, %c0_i32_1 : i32, i32, i32, i32
  }
  func.func @transform_1(%arg0: i32) -> (i32, i32, i32, i32, i32) {
    %c0_i32 = arith.constant 0 : i32
    %c0_i32_0 = arith.constant 0 : i32
    %c0_i32_1 = arith.constant 0 : i32
    %c0_i32_2 = arith.constant 0 : i32
    %c0_i32_3 = arith.constant 0 : i32
    return %arg0, %c0_i32, %c0_i32_0, %c0_i32_1, %c0_i32_2 : i32, i32, i32, i32, i32
  }
  func.func @transform_2(%arg0: i32) -> (i32, i32, i32, i32) {
    %c0_i32 = arith.constant 0 : i32
    %c0_i32_0 = arith.constant 0 : i32
    %c0_i32_1 = arith.constant 0 : i32
    %c0_i32_2 = arith.constant 0 : i32
    return %arg0, %c0_i32, %c0_i32_0, %c0_i32_1 : i32, i32, i32, i32
  }
}

</mosaic_0001>

<bundles_post_ra>
// kernel: mind_loss.3
= control target key start
LH: loop header
LB: loop body
LE: loop exit
PB: predicated region body
PF: predicated region fallthrough
CT: control target
= control target key end

     0   :  { %7 = vsyncpa [#allocation3], 0  ;;  %s390_s9 = smov 0   ;;  %s425_s0 = inlined_call_operand.vmem [shape: f32[2], index: 0, kind: input, shape index: {}]   ;;  %s426_s1 = inlined_call_operand.vmem [shape: f32[2,2,5,256], index: 1, kind: input, shape index: {}]   ;;  %s427_s2 = inlined_call_operand.vmem [shape: f32[2,1,128], index: 2, kind: output, shape index: {}]  }
   0x1 LB: > { %s297_s10 = sadd.s32 4294967295, %s372_s9   ;;  %p299_p0 = scmp.ge.s32.totalorder %s372_s9, 1  ;;  %s372_s9 = sphi %s390_s9, %s13_s9  }
   0x2   : > { %p91_p1 = scmp.lt.s32.totalorder %s372_s9, 3  ;;  %s104_s13 = sshll.u32 %s425_s0, 4  ;;  %s105_s13 = int_to_ptr.vmem [resolvable:$true] %s104_s13 }
   0x3   : > { %p324_p3 = scmp.eq.s32.totalorder %s297_s10, 0  ;;  %s347_s15 = scalar_lea.vmem %s105_s13, 16 }
   0x4   : > { %p401_p2 = pnand %p299_p0, %p91_p1  ;;  %p348_p6 = scmp.ne.s32.totalorder %s105_s13, %s347_s15 }
   0x5   : > { %p355_p10 = scmp.lt.s32.totalorder %s105_s13, %s105_s13  ;;  %p356_p11 = scmp.lt.s32.totalorder %s347_s15, %s347_s15 }
   0x6   : > { %p320_p4 = pneg %p401_p2 }
   0x7   : > { %p357_p12 = por %p356_p11, %p355_p10 }
   0x8   : > { %p321_p5 = pnand %p324_p3, %p320_p4 }
   0xa   : > { %p349_p7 = pneg %p321_p5 }
   0xc   : > { %p350_p8 = pnand %p349_p7, %p348_p6 }
   0xe   : > { %p351_p9 = pneg %p350_p8 }
  0x10   : > { %p358_p13 = pnand %p357_p12, %p351_p9 }
  0x12   : > { %361 = shalt.err (!%p358_p13)
}
  0x13   : > { %s374_s16 = smov [#allocation2]   ;;  %125 = sbr.rel (%p401_p2) target bundleno = 289 (0x121), region = 28 }
  0x14   : > { %323 = dma.vmem_to_smem (!%p321_p5), %s105_s13, 16, %s374_s16, [#allocation3]  }
  0x1a   : > { %367 = dma.done.wait (%p324_p3), [#allocation3], 16  }
  0x1b   : > { %369 = vsyncadd (%p324_p3), [#allocation3], 4294967280 }
  0x1c   : > { %131 = sfence }
  0x1d   : > { %p146_p0 = scmp.lt.s32.totalorder %s297_s10, 1  ;;  %s154_s17 = sld [smem:[#allocation2]]  ;;  %v180_v10 = vlaneseq  ;;  %vm221_vm0 = vcmask 1043456  }
  0x1e   : > { %s306_s18 = sld [smem:[#allocation2 + $0x1]] }
  0x1f   : > { %s430_s10 = smov (!%p146_p0, %s297_s10), 1  ;;  %v181_v11 = vshrl.u32 %v180_v10, 7 }
  0x20   : > { %s313_s19 = sshll.u32 %s430_s10, 5  ;;  %s153_s29 = scalar_lea.vmem %s427_s2, %s430_s10 }
  0x21   : > { %s150_s22 = scalar_lea.vmem %s426_s1, %s313_s19  ;;  %v182_v12 = vsub.s32 0, %v181_v11  ;;  %v186_v13 = vsub.s32 1, %v181_v11 }
  0x22   : > { %v307_v0 = vld [vmem:[%s150_s22 + $0x4] ss:$8 sm:$0x3]  ;;  %v310_v1 = vld [vmem:[%s150_s22 + $0x14] ss:$8 sm:$0x3] }
  0x23   : > { %s168_s23 = smul.f32 1000.0, %s154_s17  ;;  %v156_v15 = vld [vmem:[%s150_s22] sm:$0xf]  ;;  %v157_v16 = vld [vmem:[%s150_s22 + $0x8] sm:$0xf] }
  0x24   : > { %s165_s24 = smul.f32 0.001, %s154_s17  ;;  %v308_v18 = vld [vmem:[%s150_s22 + $0x10] sm:$0xf]  ;;  %v309_v19 = vld [vmem:[%s150_s22 + $0x18] sm:$0xf] }
  0x25   : > { %s171_s25 = smul.f32 0.001, %s306_s18  ;;  %v169_v3 = vstv %s168_s23 }
  0x26   : > { %v166_v2 = vstv %s165_s24  ;;  %s174_s26 = smul.f32 1000.0, %s306_s18 }
  0x27   : > { %v167_v4 = vmax.f32 %v307_v0, %v166_v2  ;;  %v172_v5 = vstv %s171_s25 }
  0x28   : > { %v173_v6 = vmax.f32 %v310_v1, %v172_v5  ;;  %v175_v7 = vstv %s174_s26 }
  0x29   : > { %v170_v8 = vmin.f32 %v167_v4, %v169_v3 }
  0x2a   : > { %v176_v9 = vmin.f32 %v173_v6, %v175_v7 }
  0x2b   : > { %335 = vrcp.f32 %v170_v8 }
  0x2c   : > { %337 = vrcp.f32 %v176_v9 }
  0x35   : > { %v336_v14 = vpop.eup %335 }
  0x36   : > { %v338_v17 = vpop.eup %337  ;;  %v183_v20 = vrot.slane %v336_v14, %v182_v12  ;;  %v187_v21 = vrot.slane %v336_v14, %v186_v13 }
  0x37   : > { %v202_v22 = vrot.slane %v338_v17, %v182_v12  ;;  %v206_v23 = vrot.slane %v338_v17, %v186_v13 }
  0x38   : > { %v190_v24 = vmul.f32 %v183_v20, %v156_v15  ;;  %v191_v25 = vmul.f32 %v187_v21, %v157_v16 }
  0x39   : > { %v209_v26 = vmul.f32 %v308_v18, %v202_v22  ;;  %v210_v27 = vmul.f32 %v309_v19, %v206_v23 }
  0x3a   : > { %v192_v28 = vsub.f32 0.0, %v190_v24  ;;  %v193_v29 = vsub.f32 0.0, %v191_v25 }
  0x3b   : > { %v211_v30 = vsub.f32 0.0, %v209_v26  ;;  %v212_v31 = vsub.f32 0.0, %v210_v27 }
  0x3c   : > { %v194_v32 = vmul.f32 1.442695, %v192_v28  ;;  %v196_v33 = vmul.f32 1.442695, %v193_v29 }
  0x3d   : > { %v213_v34 = vmul.f32 1.442695, %v211_v30  ;;  %v215_v35 = vmul.f32 1.442695, %v212_v31 }
  0x3e   : > { %339 = vpow2.f32 %v194_v32 }
  0x3f   : > { %341 = vpow2.f32 %v196_v33 }
  0x40   : > { %343 = vpow2.f32 %v213_v34 }
  0x41   : > { %345 = vpow2.f32 %v215_v35 }
  0x48   : > { %v340_v36 = vpop.eup %339 }
  0x49   : > { %v342_v37 = vpop.eup %341 }
  0x4a   : > { %v344_v38 = vpop.eup %343 }
  0x4b   : > { %v346_v39 = vpop.eup %345  ;;  %v217_v40 = vsub.f32 %v340_v36, %v344_v38 }
  0x4c   : > { %v218_v41 = vsub.f32 %v342_v37, %v346_v39 }
  0x4d   : > { %v219_v42 = vmul.f32 %v217_v40, %v217_v40 }
  0x4e   : > { %v220_v43 = vmul.f32 %v218_v41, %v218_v41 }
  0x4f   : > { %v222_v44 = vsel %vm221_vm0, %v219_v42, 0.0 }
  0x50   : > { %v223_v45 = vsel %vm221_vm0, %v220_v43, 0.0 }
  0x51   : > { %v224_v46 = vadd.f32 %v223_v45, %v222_v44 }
  0x53   : > { %225 = vadd.xlane.f32.xlu0 %v224_v46 }
  0xe0   : > { %v226_v47 = vpop.xlane.xlu0 %225 }
  0xe1   : > { %v227_v48 = vrot.slane %v226_v47, 4 }
  0xe3   : > { %v228_v49 = vadd.f32 %v227_v48, %v226_v47 }
  0xe5   : > { %v229_v50 = vrot.slane %v228_v49, 2 }
  0xe7   : > { %v230_v51 = vadd.f32 %v229_v50, %v228_v49 }
  0xe9   : > { %v231_v52 = vrot.slane %v230_v51, 1 }
  0xeb   : > { %v232_v53 = vadd.f32 %v231_v52, %v230_v51 }
  0xed   : > { %314 = vpush %v232_v53 }
 0x11e   : > { %s315_s30 = spop %314 }
 0x11f   : > { %v234_v54 = vstv %s315_s30 }
 0x120   : > { %236 = vst [vmem:[%s153_s29] sm:$0x1] %v234_v54 }
 0x121 PF: > { %s13_s9 = sadd.s32 1, %s372_s9  }
 0x122   : > { %p10_p1 = scmp.ge.s32.totalorder %s13_s9, 4  }
 0x124   :  { %12 = sbr.rel (!%p10_p1) target bundleno = 1 (0x1), region = 66 }
 0x12b   :  { %254 = vsyncpa [#allocation3], 1 }
 0x12c   :  { %256 = vsyncpa [#allocation3 + $0x1], 1 }

// kernel: mind_loss.2
= control target key start
LH: loop header
LB: loop body
LE: loop exit
PB: predicated region body
PF: predicated region fallthrough
CT: control target
= control target key end

     0   :  { %s1810_s9 = smov 0   ;;  %s2618_s0 = inlined_call_operand.vmem [shape: f32[2,2,20,20], index: 0, kind: input, shape index: {}]   ;;  %s2619_s1 = inlined_call_operand.vmem [shape: f32[2,2,5,16,16], index: 1, kind: output, shape index: {0}]   ;;  %s2620_s2 = inlined_call_operand.vmem [shape: f32[2,2,1,128], index: 2, kind: output, shape index: {1}]  }
   0x1 LB: > { %s1656_s10 = sadd.s32 4294967295, %s1787_s9   ;;  %p1660_p0 = scmp.ge.s32.totalorder %s1787_s9, 1  ;;  %s1787_s9 = sphi %s1810_s9, %s13_s9  }
   0x2   : > { %p115_p1 = scmp.lt.s32.totalorder %s1787_s9, 3 }
   0x4   : > { %p116_p2 = pnand %p1660_p0, %p115_p1 }
   0x5   : > { %p141_p3 = scmp.lt.s32.totalorder (!%p116_p2), %s1656_s10, 1  ;;  %s1789_s15 = smov (!%p116_p2), 126   ;;  %v182_v2 = vlaneseq (!%p116_p2)  ;;  %v1790_v8 = vmov (!%p116_p2), 2   ;;  %vm179_vm0 = vcmask (!%p116_p2), 146448   ;;  %vm190_vm1 = vcmask (!%p116_p2), 140304  }
   0x6   : > { %119 = sbr.rel (%p116_p2) target bundleno = 2007 (0x7d7), region = 24  ;;  %1750 = vset.pattern.permute.xlu0 (!%p116_p2), %v1790_v8  ;;  %1749 = vset.pattern.permute.xlu1 (!%p116_p2), %v1790_v8  ;;  %s1791_s16 = smov (!%p116_p2), 2   ;;  %v1792_v23 = vmov (!%p116_p2), 17   ;;  %vm219_vm2 = vcmask (!%p116_p2), 15360   ;;  %vm236_vm3 = vcmask (!%p116_p2), 162960   ;;  %vm222_vm4 = vcmask (!%p116_p2), 11264  }
   0x7   : > { %v183_v3 = vshrl.u32 (!%p116_p2), %v182_v2, 7  ;;  %vm239_vm5 = vcmask (!%p116_p2), 158864   ;;  %s1793_s17 = smov (!%p116_p2), 127   ;;  %s1794_s18 = smov (!%p116_p2), 124   ;;  %vm289_vm6 = vcmask (!%p116_p2), 1046528   ;;  %vm304_vm7 = vcmask (!%p116_p2), 1045504  }
   0x8   : > { %vm314_vm8 = vcmask (!%p116_p2), 1043456   ;;  %vm326_vm9 = vcmask (!%p116_p2), 130048  }
   0x9   : > { %v1834_v7 = vsub.s32 (!%p116_p2), 0, %v183_v3  ;;  %v1845_v15 = vsub.s32 (!%p116_p2), 7, %v183_v3 }
   0xd   : > { %s2622_s10 = smov (!%p141_p3, %s1656_s10), 1 }
   0xe   : > { %s1729_s11 = smul.u32 48, %s2622_s10  ;;  %s1663_s23 = sshll.u32 %s2622_s10, 1 }
   0xf   : > { %s1730_s19 = smul.u32 160, %s2622_s10  ;;  %s154_s26 = scalar_lea.vmem %s2620_s2, %s1663_s23 }
  0x10   : > { %s1824_s14 = scalar_lea.vmem %s2618_s0, %s1729_s11 }
  0x11   : > { %v157_v0 = vld [vmem:[%s1824_s14] sm:$0xff]  ;;  %v158_v1 = vld [vmem:[%s1824_s14 + $0x8] sm:$0xff]  ;;  %s2336_s22 = scalar_lea.vmem %s2619_s1, %s1730_s19 }
  0x12   : > { %161 = vrot.lane.b32.xlu0 %v157_v0, %s1789_s15  ;;  %v1831_v4 = vld [vmem:[%s1824_s14 + $0x2] sm:$0xff]  ;;  %v1839_v9 = vld [vmem:[%s1824_s14 + $0xa] sm:$0xff] }
  0x13   : > { %v329_v29 = vld [vmem:[%s1824_s14 + $0x4] sm:$0xff]  ;;  %v330_v37 = vld [vmem:[%s1824_s14 + $0xc] sm:$0xff] }
  0x16   : > { %163 = vrot.lane.b32.xlu0 %v158_v1, %s1789_s15 }
  0x84   : > { %v162_v5 = vpop.permute.xlu0 %161 }
  0x85   : > { %v167_v6 = vsub.f32 %v1831_v4, %v162_v5 }
  0x87   : > { %v169_v10 = vmul.f32 %v167_v6, %v167_v6 }
  0x88   : > { %v164_v11 = vpop.permute.xlu0 %163 }
  0x89   : > { %v168_v12 = vsub.f32 %v1839_v9, %v164_v11  ;;  %173 = vrot.lane.b32.xlu1 %v169_v10, %s1791_s16  ;;  %v185_v13 = vrot.slane %v169_v10, %v1834_v7 }
  0x8b   : > { %v170_v14 = vmul.f32 %v168_v12, %v168_v12  ;;  %187 = vrot.lane.b32.xlu0 %v185_v13, %s1791_s16 }
  0x8d   : > { %175 = vrot.lane.b32.xlu1 %v170_v14, %s1791_s16  ;;  %v195_v16 = vrot.slane %v170_v14, %v1845_v15 }
  0x91   : > { %197 = vrot.lane.b32.xlu1 %v195_v16, %s1791_s16 }
  0xfb   : > { %v174_v17 = vpop.permute.xlu1 %173 }
  0xfc   : > { %180 = vst.msk [vmem:[#allocation2 + $0x2] sm:$0xff] %vm179_vm0, %v174_v17  ;;  %v1923_v17 = vld [vmem:[%s1824_s14 + $0x18] sm:$0xff] }
  0xfd   : > { %v188_v18 = vpop.permute.xlu0 %187 }
  0xfe   : > { %191 = vst.msk [vmem:[#allocation2] sm:$0x3] %vm190_vm1, %v188_v18 }
  0xff   : > { %v176_v19 = vpop.permute.xlu1 %175 }
 0x100   : > { %181 = vst.msk [vmem:[#allocation2 + $0xa] sm:$0xff] %vm179_vm0, %v176_v19 }
 0x103   : > { %v198_v20 = vpop.permute.xlu1 %197 }
 0x104   : > { %200 = vst.msk [vmem:[#allocation2 + $0x12] sm:$0x3] %vm190_vm1, %v198_v20  ;;  %v1932_v20 = vld [vmem:[%s1824_s14 + $0x20] sm:$0xff] }
 0x105   : > { %v201_v21 = vld [vmem:[#allocation2] sm:$0xff] }
 0x106   : > { %206 = vperm.xlu0 %1750, %v201_v21  }
 0x107   : > { %v202_v22 = vld [vmem:[#allocation2 + $0x8] sm:$0xff] }
 0x108   : > { %211 = vperm.xlu1 %1749, %v202_v22  }
 0x10a   : > { %1751 = vset.pattern.permute.xlu0 %v1792_v23 }
 0x10b   : > { %v203_v24 = vld [vmem:[#allocation2 + $0x10] sm:$0xf]  ;;  %225 = vperm.xlu0 %1751, %v201_v21  }
 0x10c   : > { %216 = vperm.xlu1 %1749, %v203_v24  }
 0x10f   : > { %335 = vrot.lane.b32.xlu0 %v1831_v4, %s1791_s16 }
 0x110   : > { %1752 = vset.pattern.permute.xlu1 %v1792_v23  ;;  %1753 = vset.pattern.permute.xlu0 %v1790_v8 }
 0x111   : > { %229 = vperm.xlu1 %1752, %v202_v22  }
 0x113   : > { %488 = vrot.lane.b32.xlu0 %v157_v0, %s1791_s16 }
 0x115   : > { %233 = vperm.xlu1 %1752, %v203_v24  }
 0x119   : > { %337 = vrot.lane.b32.xlu1 %v1839_v9, %s1791_s16 }
 0x11a   : > { %1754 = vset.pattern.permute.xlu1 %v1790_v8 }
 0x11d   : > { %490 = vrot.lane.b32.xlu1 %v158_v1, %s1791_s16 }
 0x185   : > { %v207_v25 = vpop.permute.xlu0 %206 }
 0x186   : > { %220 = vst.msk [vmem:[#allocation2] sm:$0xff] %vm219_vm2, %v207_v25 }
 0x187   : > { %v212_v26 = vpop.permute.xlu1 %211 }
 0x188   : > { %221 = vst.msk [vmem:[#allocation2 + $0x8] sm:$0xff] %vm219_vm2, %v212_v26 }
 0x18a   : > { %v226_v27 = vpop.permute.xlu0 %225 }
 0x18b   : > { %237 = vst.msk [vmem:[#allocation2] sm:$0xff] %vm236_vm3, %v226_v27  ;;  %v217_v28 = vpop.permute.xlu1 %216 }
 0x18c   : > { %223 = vst.msk [vmem:[#allocation2 + $0x10] sm:$0xf] %vm222_vm4, %v217_v28 }
 0x18e   : > { %v336_v30 = vpop.permute.xlu0 %335 }
 0x18f   : > { %v341_v31 = vsub.f32 %v329_v29, %v336_v30 }
 0x190   : > { %v230_v32 = vpop.permute.xlu1 %229 }
 0x191   : > { %238 = vst.msk [vmem:[#allocation2 + $0x8] sm:$0xff] %vm236_vm3, %v230_v32  ;;  %v343_v33 = vmul.f32 %v341_v31, %v341_v31 }
 0x192   : > { %v1871_v35 = vld [vmem:[#allocation2] sm:$0xff]  ;;  %v489_v44 = vpop.permute.xlu0 %488 }
 0x193   : > { %v350_v34 = vrot.slane %v343_v33, %v1834_v7  ;;  %v494_v46 = vsub.f32 %v1831_v4, %v489_v44 }
 0x194   : > { %v234_v36 = vpop.permute.xlu1 %233 }
 0x195   : > { %351 = vst.msk [vmem:[#allocation2] sm:$0x3] %vm190_vm1, %v350_v34  ;;  %v496_v48 = vmul.f32 %v494_v46, %v494_v46  ;;  %v1953_v34 = vld [vmem:[%s1824_s14 + $0x1a] sm:$0xff] }
 0x196   : > { %240 = vst.msk [vmem:[#allocation2 + $0x10] sm:$0xf] %vm239_vm5, %v234_v36 }
 0x197   : > { %v511_v50 = vrot.slane %v496_v48, %v1834_v7 }
 0x198   : > { %v1876_v38 = vld [vmem:[#allocation2 + $0x8] sm:$0xff]  ;;  %v338_v39 = vpop.permute.xlu1 %337 }
 0x199   : > { %345 = vst.msk [vmem:[#allocation2 + $0x2] sm:$0xff] %vm179_vm0, %v343_v33  ;;  %v342_v40 = vsub.f32 %v330_v37, %v338_v39 }
 0x19b   : > { %v344_v41 = vmul.f32 %v342_v40, %v342_v40 }
 0x19c   : > { %v491_v51 = vpop.permute.xlu1 %490 }
 0x19d   : > { %v1879_v42 = vld [vmem:[#allocation2 + $0x10] sm:$0xf]  ;;  %v355_v43 = vrot.slane %v344_v41, %v1845_v15  ;;  %v495_v52 = vsub.f32 %v1839_v9, %v491_v51 }
 0x19e   : > { %346 = vst.msk [vmem:[#allocation2 + $0xa] sm:$0xff] %vm179_vm0, %v344_v41 }
 0x19f   : > { %356 = vst.msk [vmem:[#allocation2 + $0x12] sm:$0x3] %vm190_vm1, %v355_v43  ;;  %v497_v53 = vmul.f32 %v495_v52, %v495_v52 }
 0x1a0   : > { %v357_v45 = vld [vmem:[#allocation2] sm:$0xff] }
 0x1a1   : > { %362 = vperm.xlu0 %1753, %v357_v45   ;;  %v520_v54 = vrot.slane %v497_v53, %v1845_v15 }
 0x1a5   : > { %v358_v47 = vld [vmem:[#allocation2 + $0x8] sm:$0xff]  ;;  %1755 = vset.pattern.permute.xlu0 %v1792_v23 }
 0x1a6   : > { %367 = vperm.xlu1 %1754, %v358_v47   ;;  %379 = vperm.xlu0 %1755, %v357_v45   ;;  %v359_v49 = vld [vmem:[#allocation2 + $0x10] sm:$0xf]  ;;  %v1960_v45 = vld [vmem:[%s1824_s14 + $0x22] sm:$0xff] }
 0x1aa   : > { %372 = vperm.xlu1 %1754, %v359_v49   ;;  %500 = vrot.lane.b32.xlu0 %v496_v48, %s1789_s15 }
 0x1ab   : > { %1757 = vset.pattern.permute.xlu0 %v1790_v8 }
 0x1ae   : > { %1756 = vset.pattern.permute.xlu1 %v1792_v23  ;;  %513 = vrot.lane.b32.xlu0 %v511_v50, %s1789_s15 }
 0x1af   : > { %383 = vperm.xlu1 %1756, %v358_v47  }
 0x1b2   : > { %657 = vrot.lane.b32.xlu0 %v329_v29, %s1791_s16 }
 0x1b3   : > { %387 = vperm.xlu1 %1756, %v359_v49  }
 0x1b7   : > { %502 = vrot.lane.b32.xlu1 %v497_v53, %s1789_s15 }
 0x1b8   : > { %1758 = vset.pattern.permute.xlu1 %v1790_v8 }
 0x1bb   : > { %522 = vrot.lane.b32.xlu1 %v520_v54, %s1789_s15 }
 0x1bf   : > { %659 = vrot.lane.b32.xlu1 %v330_v37, %s1791_s16 }
 0x220   : > { %v363_v55 = vpop.permute.xlu0 %362 }
 0x221   : > { %375 = vst.msk [vmem:[#allocation2] sm:$0xff] %vm219_vm2, %v363_v55 }
 0x225   : > { %v368_v56 = vpop.permute.xlu1 %367  ;;  %v380_v57 = vpop.permute.xlu0 %379 }
 0x226   : > { %376 = vst.msk [vmem:[#allocation2 + $0x8] sm:$0xff] %vm219_vm2, %v368_v56 }
 0x227   : > { %390 = vst.msk [vmem:[#allocation2] sm:$0xff] %vm236_vm3, %v380_v57 }
 0x229   : > { %v373_v58 = vpop.permute.xlu1 %372  ;;  %v501_v59 = vpop.permute.xlu0 %500 }
 0x22a   : > { %377 = vst.msk [vmem:[#allocation2 + $0x10] sm:$0xf] %vm222_vm4, %v373_v58 }
 0x22d   : > { %v514_v62 = vpop.permute.xlu0 %513 }
 0x22e   : > { %v384_v60 = vpop.permute.xlu1 %383  ;;  %v1902_v61 = vld [vmem:[#allocation2] sm:$0xff] }
 0x22f   : > { %391 = vst.msk [vmem:[#allocation2 + $0x8] sm:$0xff] %vm236_vm3, %v384_v60 }
 0x230   : > { %516 = vst.msk [vmem:[#allocation2] sm:$0x3] %vm190_vm1, %v514_v62 }
 0x231   : > { %v658_v5 = vpop.permute.xlu0 %657 }
 0x232   : > { %v388_v63 = vpop.permute.xlu1 %387  ;;  %v663_v10 = vsub.f32 %v1831_v4, %v658_v5 }
 0x233   : > { %392 = vst.msk [vmem:[#allocation2 + $0x10] sm:$0xf] %vm239_vm5, %v388_v63 }
 0x234   : > { %v665_v12 = vmul.f32 %v663_v10, %v663_v10 }
 0x236   : > { %v1907_v0 = vld [vmem:[#allocation2 + $0x8] sm:$0xff]  ;;  %v503_v1 = vpop.permute.xlu1 %502  ;;  %v680_v14 = vrot.slane %v665_v12, %v1834_v7 }
 0x237   : > { %506 = vst.msk [vmem:[#allocation2 + $0x2] sm:$0xff] %vm179_vm0, %v501_v59 }
 0x23a   : > { %v1910_v2 = vld [vmem:[#allocation2 + $0x10] sm:$0xf]  ;;  %v523_v3 = vpop.permute.xlu1 %522 }
 0x23b   : > { %507 = vst.msk [vmem:[#allocation2 + $0xa] sm:$0xff] %vm179_vm0, %v503_v1 }
 0x23c   : > { %525 = vst.msk [vmem:[#allocation2 + $0x12] sm:$0x3] %vm190_vm1, %v523_v3 }
 0x23e   : > { %v526_v6 = vld [vmem:[#allocation2] sm:$0xff]  ;;  %v660_v16 = vpop.permute.xlu1 %659 }
 0x23f   : > { %531 = vperm.xlu0 %1757, %v526_v6   ;;  %v664_v4 = vsub.f32 %v1839_v9, %v660_v16 }
 0x241   : > { %v666_v18 = vmul.f32 %v664_v4, %v664_v4 }
 0x242   : > { %v527_v11 = vld [vmem:[#allocation2 + $0x8] sm:$0xff] }
 0x243   : > { %536 = vperm.xlu1 %1758, %v527_v11   ;;  %1759 = vset.pattern.permute.xlu0 %v1792_v23  ;;  %v528_v13 = vld [vmem:[#allocation2 + $0x10] sm:$0xf]  ;;  %v689_v19 = vrot.slane %v666_v18, %v1845_v15 }
 0x244   : > { %548 = vperm.xlu0 %1759, %v526_v6  }
 0x247   : > { %541 = vperm.xlu1 %1758, %v528_v13  }
 0x248   : > { %669 = vrot.lane.b32.xlu0 %v665_v12, %s1789_s15  ;;  %v1690_v12 = vld [vmem:[%s1824_s14 + $0x1c] sm:$0xff] }
 0x249   : > { %1761 = vset.pattern.permute.xlu0 %v1790_v8 }
 0x24b   : > { %1760 = vset.pattern.permute.xlu1 %v1792_v23 }
 0x24c   : > { %552 = vperm.xlu1 %1760, %v527_v11   ;;  %682 = vrot.lane.b32.xlu0 %v680_v14, %s1789_s15 }
 0x250   : > { %556 = vperm.xlu1 %1760, %v528_v13   ;;  %873 = vrot.lane.b32.xlu0 %v1923_v17, %s1789_s15 }
 0x254   : > { %671 = vrot.lane.b32.xlu1 %v666_v18, %s1789_s15 }
 0x255   : > { %1762 = vset.pattern.permute.xlu1 %v1790_v8 }
 0x258   : > { %691 = vrot.lane.b32.xlu1 %v689_v19, %s1789_s15 }
 0x25c   : > { %875 = vrot.lane.b32.xlu1 %v1932_v20, %s1789_s15 }
 0x2be   : > { %v532_v9 = vpop.permute.xlu0 %531 }
 0x2bf   : > { %544 = vst.msk [vmem:[#allocation2] sm:$0xff] %vm219_vm2, %v532_v9  ;;  %v1691_v9 = vld [vmem:[%s1824_s14 + $0x24] sm:$0xff] }
 0x2c2   : > { %v537_v21 = vpop.permute.xlu1 %536 }
 0x2c3   : > { %545 = vst.msk [vmem:[#allocation2 + $0x8] sm:$0xff] %vm219_vm2, %v537_v21  ;;  %v549_v22 = vpop.permute.xlu0 %548 }
 0x2c4   : > { %559 = vst.msk [vmem:[#allocation2] sm:$0xff] %vm236_vm3, %v549_v22 }
 0x2c6   : > { %v542_v24 = vpop.permute.xlu1 %541 }
 0x2c7   : > { %546 = vst.msk [vmem:[#allocation2 + $0x10] sm:$0xf] %vm222_vm4, %v542_v24  ;;  %v670_v25 = vpop.permute.xlu0 %669 }
 0x2cb   : > { %v553_v26 = vpop.permute.xlu1 %552  ;;  %v1940_v27 = vld [vmem:[#allocation2] sm:$0xff]  ;;  %v683_v28 = vpop.permute.xlu0 %682 }
 0x2cc   : > { %560 = vst.msk [vmem:[#allocation2 + $0x8] sm:$0xff] %vm236_vm3, %v553_v26 }
 0x2cd   : > { %685 = vst.msk [vmem:[#allocation2] sm:$0x3] %vm190_vm1, %v683_v28 }
 0x2cf   : > { %v557_v29 = vpop.permute.xlu1 %556  ;;  %v874_v36 = vpop.permute.xlu0 %873 }
 0x2d0   : > { %561 = vst.msk [vmem:[#allocation2 + $0x10] sm:$0xf] %vm239_vm5, %v557_v29  ;;  %v879_v39 = vsub.f32 %v1953_v34, %v874_v36 }
 0x2d2   : > { %v881_v41 = vmul.f32 %v879_v39, %v879_v39 }
 0x2d3   : > { %v1945_v30 = vld [vmem:[#allocation2 + $0x8] sm:$0xff]  ;;  %v672_v31 = vpop.permute.xlu1 %671 }
 0x2d4   : > { %675 = vst.msk [vmem:[#allocation2 + $0x2] sm:$0xff] %vm179_vm0, %v670_v25  ;;  %v896_v44 = vrot.slane %v881_v41, %v1834_v7 }
 0x2d7   : > { %v1948_v32 = vld [vmem:[#allocation2 + $0x10] sm:$0xf]  ;;  %v692_v33 = vpop.permute.xlu1 %691 }
 0x2d8   : > { %676 = vst.msk [vmem:[#allocation2 + $0xa] sm:$0xff] %vm179_vm0, %v672_v31 }
 0x2d9   : > { %694 = vst.msk [vmem:[#allocation2 + $0x12] sm:$0x3] %vm190_vm1, %v692_v33 }
 0x2db   : > { %v695_v37 = vld [vmem:[#allocation2] sm:$0xff]  ;;  %v876_v46 = vpop.permute.xlu1 %875 }
 0x2dc   : > { %700 = vperm.xlu0 %1761, %v695_v37   ;;  %v880_v47 = vsub.f32 %v1960_v45, %v876_v46 }
 0x2de   : > { %v882_v48 = vmul.f32 %v880_v47, %v880_v47 }
 0x2df   : > { %v696_v40 = vld [vmem:[#allocation2 + $0x8] sm:$0xff] }
 0x2e0   : > { %705 = vperm.xlu1 %1762, %v696_v40   ;;  %1763 = vset.pattern.permute.xlu0 %v1792_v23  ;;  %v697_v43 = vld [vmem:[#allocation2 + $0x10] sm:$0xf]  ;;  %v905_v49 = vrot.slane %v882_v48, %v1845_v15 }
 0x2e1   : > { %717 = vperm.xlu0 %1763, %v695_v37  }
 0x2e4   : > { %710 = vperm.xlu1 %1762, %v697_v43  }
 0x2e5   : > { %885 = vrot.lane.b32.xlu0 %v881_v41, %s1791_s16 }
 0x2e6   : > { %1765 = vset.pattern.permute.xlu0 %v1790_v8 }
 0x2e8   : > { %1764 = vset.pattern.permute.xlu1 %v1792_v23 }
 0x2e9   : > { %721 = vperm.xlu1 %1764, %v696_v40   ;;  %898 = vrot.lane.b32.xlu0 %v896_v44, %s1791_s16 }
 0x2ed   : > { %725 = vperm.xlu1 %1764, %v697_v43  }
 0x2f1   : > { %887 = vrot.lane.b32.xlu1 %v882_v48, %s1791_s16 }
 0x2f2   : > { %1766 = vset.pattern.permute.xlu1 %v1790_v8 }
 0x2f5   : > { %907 = vrot.lane.b32.xlu1 %v905_v49, %s1791_s16 }
 0x35b   : > { %v701_v50 = vpop.permute.xlu0 %700 }
 0x35c   : > { %713 = vst.msk [vmem:[#allocation2] sm:$0xff] %vm219_vm2, %v701_v50 }
 0x35f   : > { %v706_v51 = vpop.permute.xlu1 %705 }
 0x360   : > { %714 = vst.msk [vmem:[#allocation2 + $0x8] sm:$0xff] %vm219_vm2, %v706_v51  ;;  %v718_v52 = vpop.permute.xlu0 %717 }
 0x361   : > { %728 = vst.msk [vmem:[#allocation2] sm:$0xff] %vm236_vm3, %v718_v52 }
 0x363   : > { %v711_v53 = vpop.permute.xlu1 %710 }
 0x364   : > { %715 = vst.msk [vmem:[#allocation2 + $0x10] sm:$0xf] %vm222_vm4, %v711_v53  ;;  %v886_v54 = vpop.permute.xlu0 %885 }
 0x368   : > { %v722_v55 = vpop.permute.xlu1 %721  ;;  %v1974_v56 = vld [vmem:[#allocation2] sm:$0xff]  ;;  %v899_v57 = vpop.permute.xlu0 %898 }
 0x369   : > { %729 = vst.msk [vmem:[#allocation2 + $0x8] sm:$0xff] %vm236_vm3, %v722_v55 }
 0x36a   : > { %901 = vst.msk [vmem:[#allocation2] sm:$0x3] %vm190_vm1, %v899_v57 }
 0x36c   : > { %v726_v58 = vpop.permute.xlu1 %725 }
 0x36d   : > { %730 = vst.msk [vmem:[#allocation2 + $0x10] sm:$0xf] %vm239_vm5, %v726_v58 }
 0x370   : > { %v1979_v59 = vld [vmem:[#allocation2 + $0x8] sm:$0xff]  ;;  %v888_v60 = vpop.permute.xlu1 %887 }
 0x371   : > { %891 = vst.msk [vmem:[#allocation2 + $0x2] sm:$0xff] %vm179_vm0, %v886_v54 }
 0x374   : > { %v1982_v62 = vld [vmem:[#allocation2 + $0x10] sm:$0xf]  ;;  %v908_v63 = vpop.permute.xlu1 %907 }
 0x375   : > { %892 = vst.msk [vmem:[#allocation2 + $0xa] sm:$0xff] %vm179_vm0, %v888_v60 }
 0x376   : > { %910 = vst.msk [vmem:[#allocation2 + $0x12] sm:$0x3] %vm190_vm1, %v908_v63 }
 0x378   : > { %v911_v1 = vld [vmem:[#allocation2] sm:$0xff] }
 0x379   : > { %916 = vperm.xlu0 %1765, %v911_v1  }
 0x37c   : > { %v912_v3 = vld [vmem:[#allocation2 + $0x8] sm:$0xff] }
 0x37d   : > { %921 = vperm.xlu1 %1766, %v912_v3   ;;  %1767 = vset.pattern.permute.xlu0 %v1792_v23  ;;  %v913_v5 = vld [vmem:[#allocation2 + $0x10] sm:$0xf] }
 0x37e   : > { %933 = vperm.xlu0 %1767, %v911_v1  }
 0x381   : > { %926 = vperm.xlu1 %1766, %v913_v5  }
 0x382   : > { %1038 = vrot.lane.b32.xlu0 %v1953_v34, %s1791_s16 }
 0x383   : > { %1769 = vset.pattern.permute.xlu0 %v1790_v8 }
 0x385   : > { %1768 = vset.pattern.permute.xlu1 %v1792_v23 }
 0x386   : > { %937 = vperm.xlu1 %1768, %v912_v3   ;;  %1191 = vrot.lane.b32.xlu0 %v1923_v17, %s1791_s16 }
 0x38a   : > { %941 = vperm.xlu1 %1768, %v913_v5  }
 0x38e   : > { %1040 = vrot.lane.b32.xlu1 %v1960_v45, %s1791_s16 }
 0x38f   : > { %1770 = vset.pattern.permute.xlu1 %v1790_v8 }
 0x392   : > { %1193 = vrot.lane.b32.xlu1 %v1932_v20, %s1791_s16 }
 0x3f8   : > { %v917_v6 = vpop.permute.xlu0 %916 }
 0x3f9   : > { %929 = vst.msk [vmem:[#allocation2] sm:$0xff] %vm219_vm2, %v917_v6 }
 0x3fc   : > { %v922_v10 = vpop.permute.xlu1 %921 }
 0x3fd   : > { %930 = vst.msk [vmem:[#allocation2 + $0x8] sm:$0xff] %vm219_vm2, %v922_v10  ;;  %v934_v11 = vpop.permute.xlu0 %933 }
 0x3fe   : > { %944 = vst.msk [vmem:[#allocation2] sm:$0xff] %vm236_vm3, %v934_v11 }
 0x400   : > { %v927_v13 = vpop.permute.xlu1 %926 }
 0x401   : > { %931 = vst.msk [vmem:[#allocation2 + $0x10] sm:$0xf] %vm222_vm4, %v927_v13  ;;  %v1039_v14 = vpop.permute.xlu0 %1038 }
 0x402   : > { %v1044_v16 = vsub.f32 %v1690_v12, %v1039_v14 }
 0x404   : > { %v1046_v4 = vmul.f32 %v1044_v16, %v1044_v16 }
 0x405   : > { %v938_v17 = vpop.permute.xlu1 %937  ;;  %v2005_v19 = vld [vmem:[#allocation2] sm:$0xff]  ;;  %v1192_v29 = vpop.permute.xlu0 %1191 }
 0x406   : > { %945 = vst.msk [vmem:[#allocation2 + $0x8] sm:$0xff] %vm236_vm3, %v938_v17  ;;  %v1053_v18 = vrot.slane %v1046_v4, %v1834_v7  ;;  %v1197_v33 = vsub.f32 %v1953_v34, %v1192_v29 }
 0x408   : > { %1054 = vst.msk [vmem:[#allocation2] sm:$0x3] %vm190_vm1, %v1053_v18  ;;  %v1199_v37 = vmul.f32 %v1197_v33, %v1197_v33 }
 0x409   : > { %v942_v20 = vpop.permute.xlu1 %941 }
 0x40a   : > { %946 = vst.msk [vmem:[#allocation2 + $0x10] sm:$0xf] %vm239_vm5, %v942_v20  ;;  %v1214_v40 = vrot.slane %v1199_v37, %v1834_v7 }
 0x40d   : > { %v2010_v21 = vld [vmem:[#allocation2 + $0x8] sm:$0xff]  ;;  %v1041_v22 = vpop.permute.xlu1 %1040 }
 0x40e   : > { %1048 = vst.msk [vmem:[#allocation2 + $0x2] sm:$0xff] %vm179_vm0, %v1046_v4  ;;  %v1045_v24 = vsub.f32 %v1691_v9, %v1041_v22 }
 0x410   : > { %v1047_v25 = vmul.f32 %v1045_v24, %v1045_v24 }
 0x411   : > { %v2013_v26 = vld [vmem:[#allocation2 + $0x10] sm:$0xf]  ;;  %v1194_v41 = vpop.permute.xlu1 %1193 }
 0x412   : > { %v1058_v28 = vrot.slane %v1047_v25, %v1845_v15  ;;  %1049 = vst.msk [vmem:[#allocation2 + $0xa] sm:$0xff] %vm179_vm0, %v1047_v25  ;;  %v1198_v43 = vsub.f32 %v1960_v45, %v1194_v41 }
 0x414   : > { %1059 = vst.msk [vmem:[#allocation2 + $0x12] sm:$0x3] %vm190_vm1, %v1058_v28  ;;  %v1200_v44 = vmul.f32 %v1198_v43, %v1198_v43 }
 0x415   : > { %v1060_v31 = vld [vmem:[#allocation2] sm:$0xff] }
 0x416   : > { %1065 = vperm.xlu0 %1769, %v1060_v31   ;;  %v1223_v46 = vrot.slane %v1200_v44, %v1845_v15 }
 0x419   : > { %v1061_v36 = vld [vmem:[#allocation2 + $0x8] sm:$0xff] }
 0x41a   : > { %1070 = vperm.xlu1 %1770, %v1061_v36   ;;  %1771 = vset.pattern.permute.xlu0 %v1792_v23 }
 0x41b   : > { %1082 = vperm.xlu0 %1771, %v1060_v31   ;;  %v1062_v39 = vld [vmem:[#allocation2 + $0x10] sm:$0xf] }
 0x41e   : > { %1075 = vperm.xlu1 %1770, %v1062_v39  }
 0x41f   : > { %1203 = vrot.lane.b32.xlu0 %v1199_v37, %s1789_s15 }
 0x420   : > { %1773 = vset.pattern.permute.xlu0 %v1790_v8 }
 0x422   : > { %1772 = vset.pattern.permute.xlu1 %v1792_v23 }
 0x423   : > { %1086 = vperm.xlu1 %1772, %v1061_v36   ;;  %1216 = vrot.lane.b32.xlu0 %v1214_v40, %s1789_s15 }
 0x427   : > { %1090 = vperm.xlu1 %1772, %v1062_v39   ;;  %1360 = vrot.lane.b32.xlu0 %v1690_v12, %s1791_s16 }
 0x42b   : > { %1205 = vrot.lane.b32.xlu1 %v1200_v44, %s1789_s15 }
 0x42c   : > { %1774 = vset.pattern.permute.xlu1 %v1790_v8 }
 0x42f   : > { %1225 = vrot.lane.b32.xlu1 %v1223_v46, %s1789_s15 }
 0x433   : > { %1362 = vrot.lane.b32.xlu1 %v1691_v9, %s1791_s16 }
 0x495   : > { %v1066_v47 = vpop.permute.xlu0 %1065 }
 0x496   : > { %1078 = vst.msk [vmem:[#allocation2] sm:$0xff] %vm219_vm2, %v1066_v47 }
 0x499   : > { %v1071_v48 = vpop.permute.xlu1 %1070 }
 0x49a   : > { %1079 = vst.msk [vmem:[#allocation2 + $0x8] sm:$0xff] %vm219_vm2, %v1071_v48  ;;  %v1083_v49 = vpop.permute.xlu0 %1082 }
 0x49b   : > { %1093 = vst.msk [vmem:[#allocation2] sm:$0xff] %vm236_vm3, %v1083_v49 }
 0x49d   : > { %v1076_v50 = vpop.permute.xlu1 %1075 }
 0x49e   : > { %1080 = vst.msk [vmem:[#allocation2 + $0x10] sm:$0xf] %vm222_vm4, %v1076_v50  ;;  %v1204_v51 = vpop.permute.xlu0 %1203 }
 0x4a2   : > { %v1087_v52 = vpop.permute.xlu1 %1086  ;;  %v2036_v53 = vld [vmem:[#allocation2] sm:$0xff]  ;;  %v1217_v54 = vpop.permute.xlu0 %1216 }
 0x4a3   : > { %1094 = vst.msk [vmem:[#allocation2 + $0x8] sm:$0xff] %vm236_vm3, %v1087_v52 }
 0x4a4   : > { %1219 = vst.msk [vmem:[#allocation2] sm:$0x3] %vm190_vm1, %v1217_v54 }
 0x4a6   : > { %v1091_v55 = vpop.permute.xlu1 %1090  ;;  %v1361_v1 = vpop.permute.xlu0 %1360 }
 0x4a7   : > { %1095 = vst.msk [vmem:[#allocation2 + $0x10] sm:$0xf] %vm239_vm5, %v1091_v55  ;;  %v1366_v5 = vsub.f32 %v1953_v34, %v1361_v1 }
 0x4a9   : > { %v1368_v10 = vmul.f32 %v1366_v5, %v1366_v5 }
 0x4aa   : > { %v2041_v57 = vld [vmem:[#allocation2 + $0x8] sm:$0xff]  ;;  %v1206_v58 = vpop.permute.xlu1 %1205 }
 0x4ab   : > { %1209 = vst.msk [vmem:[#allocation2 + $0x2] sm:$0xff] %vm179_vm0, %v1204_v51  ;;  %v1383_v12 = vrot.slane %v1368_v10, %v1834_v7 }
 0x4ae   : > { %v2044_v60 = vld [vmem:[#allocation2 + $0x10] sm:$0xf]  ;;  %v1226_v63 = vpop.permute.xlu1 %1225 }
 0x4af   : > { %1210 = vst.msk [vmem:[#allocation2 + $0xa] sm:$0xff] %vm179_vm0, %v1206_v58 }
 0x4b0   : > { %1228 = vst.msk [vmem:[#allocation2 + $0x12] sm:$0x3] %vm190_vm1, %v1226_v63 }
 0x4b2   : > { %v1229_v3 = vld [vmem:[#allocation2] sm:$0xff]  ;;  %v1363_v13 = vpop.permute.xlu1 %1362 }
 0x4b3   : > { %1234 = vperm.xlu0 %1773, %v1229_v3   ;;  %v1367_v34 = vsub.f32 %v1960_v45, %v1363_v13 }
 0x4b5   : > { %v1369_v14 = vmul.f32 %v1367_v34, %v1367_v34 }
 0x4b6   : > { %v1230_v6 = vld [vmem:[#allocation2 + $0x8] sm:$0xff] }
 0x4b7   : > { %1239 = vperm.xlu1 %1774, %v1230_v6   ;;  %1775 = vset.pattern.permute.xlu0 %v1792_v23  ;;  %v1231_v11 = vld [vmem:[#allocation2 + $0x10] sm:$0xf]  ;;  %v1392_v7 = vrot.slane %v1369_v14, %v1845_v15 }
 0x4b8   : > { %1251 = vperm.xlu0 %1775, %v1229_v3  }
 0x4bb   : > { %1244 = vperm.xlu1 %1774, %v1231_v11  }
 0x4bc   : > { %1372 = vrot.lane.b32.xlu0 %v1368_v10, %s1789_s15 }
 0x4bd   : > { %1777 = vset.pattern.permute.xlu0 %v1790_v8 }
 0x4bf   : > { %1776 = vset.pattern.permute.xlu1 %v1792_v23 }
 0x4c0   : > { %1255 = vperm.xlu1 %1776, %v1230_v6   ;;  %1385 = vrot.lane.b32.xlu0 %v1383_v12, %s1789_s15 }
 0x4c4   : > { %1259 = vperm.xlu1 %1776, %v1231_v11   ;;  %247 = vrot.lane.b32.xlu0 %v1871_v35, %s1793_s17 }
 0x4c8   : > { %1374 = vrot.lane.b32.xlu1 %v1369_v14, %s1789_s15  ;;  %251 = vrot.lane.b32.xlu0 %v1879_v42, %s1793_s17 }
 0x4c9   : > { %1778 = vset.pattern.permute.xlu1 %v1790_v8 }
 0x4cc   : > { %1394 = vrot.lane.b32.xlu1 %v1392_v7, %s1789_s15  ;;  %401 = vrot.lane.b32.xlu0 %v1907_v0, %s1793_s17 }
 0x4d0   : > { %249 = vrot.lane.b32.xlu1 %v1876_v38, %s1793_s17 }
 0x4d4   : > { %399 = vrot.lane.b32.xlu1 %v1902_v61, %s1793_s17 }
 0x532   : > { %v1235_v45 = vpop.permute.xlu0 %1234 }
 0x533   : > { %1247 = vst.msk [vmem:[#allocation2] sm:$0xff] %vm219_vm2, %v1235_v45 }
 0x536   : > { %v1240_v15 = vpop.permute.xlu1 %1239 }
 0x537   : > { %1248 = vst.msk [vmem:[#allocation2 + $0x8] sm:$0xff] %vm219_vm2, %v1240_v15  ;;  %v1252_v16 = vpop.permute.xlu0 %1251 }
 0x538   : > { %1262 = vst.msk [vmem:[#allocation2] sm:$0xff] %vm236_vm3, %v1252_v16 }
 0x53a   : > { %v1245_v8 = vpop.permute.xlu1 %1244 }
 0x53b   : > { %1249 = vst.msk [vmem:[#allocation2 + $0x10] sm:$0xf] %vm222_vm4, %v1245_v8  ;;  %v1373_v4 = vpop.permute.xlu0 %1372 }
 0x53f   : > { %v1256_v17 = vpop.permute.xlu1 %1255  ;;  %v2074_v18 = vld [vmem:[#allocation2] sm:$0xff]  ;;  %v1386_v20 = vpop.permute.xlu0 %1385 }
 0x540   : > { %1263 = vst.msk [vmem:[#allocation2 + $0x8] sm:$0xff] %vm236_vm3, %v1256_v17 }
 0x541   : > { %1388 = vst.msk [vmem:[#allocation2] sm:$0x3] %vm190_vm1, %v1386_v20 }
 0x543   : > { %v1260_v9 = vpop.permute.xlu1 %1259 }
 0x544   : > { %1264 = vst.msk [vmem:[#allocation2 + $0x10] sm:$0xf] %vm239_vm5, %v1260_v9 }
 0x547   : > { %v2079_v22 = vld [vmem:[#allocation2 + $0x8] sm:$0xff]  ;;  %v1375_v24 = vpop.permute.xlu1 %1374 }
 0x548   : > { %1378 = vst.msk [vmem:[#allocation2 + $0x2] sm:$0xff] %vm179_vm0, %v1373_v4 }
 0x54b   : > { %v2082_v25 = vld [vmem:[#allocation2 + $0x10] sm:$0xf]  ;;  %v1395_v28 = vpop.permute.xlu1 %1394 }
 0x54c   : > { %1379 = vst.msk [vmem:[#allocation2 + $0xa] sm:$0xff] %vm179_vm0, %v1375_v24 }
 0x54d   : > { %1397 = vst.msk [vmem:[#allocation2 + $0x12] sm:$0x3] %vm190_vm1, %v1395_v28 }
 0x54f   : > { %v1398_v29 = vld [vmem:[#allocation2] sm:$0xff]  ;;  %v250_v41 = vpop.permute.xlu1 %249 }
 0x550   : > { %1403 = vperm.xlu0 %1777, %v1398_v29   ;;  %v2136_v44 = vadd.f32 %v250_v41, %v1876_v38 }
 0x553   : > { %v1399_v31 = vld [vmem:[#allocation2 + $0x8] sm:$0xff]  ;;  %v400_v46 = vpop.permute.xlu1 %399 }
 0x554   : > { %1408 = vperm.xlu1 %1778, %v1399_v31   ;;  %1779 = vset.pattern.permute.xlu0 %v1792_v23  ;;  %v1400_v33 = vld [vmem:[#allocation2 + $0x10] sm:$0xf]  ;;  %v2141_v47 = vadd.f32 %v400_v46, %v1902_v61 }
 0x555   : > { %1420 = vperm.xlu0 %1779, %v1398_v29  }
 0x558   : > { %1413 = vperm.xlu1 %1778, %v1400_v33  }
 0x559   : > { %953 = vrot.lane.b32.xlu0 %v2005_v19, %s1793_s17 }
 0x55c   : > { %1780 = vset.pattern.permute.xlu1 %v1792_v23  ;;  %v248_v23 = vpop.permute.xlu0 %247 }
 0x55d   : > { %1424 = vperm.xlu1 %1780, %v1399_v31   ;;  %957 = vrot.lane.b32.xlu0 %v2013_v26, %s1793_s17  ;;  %v2115_v37 = vadd.f32 %v248_v23, %v1871_v35 }
 0x560   : > { %v252_v36 = vpop.permute.xlu0 %251 }
 0x561   : > { %1428 = vperm.xlu1 %1780, %v1400_v33   ;;  %1104 = vrot.lane.b32.xlu0 %v2041_v57, %s1793_s17  ;;  %v2122_v39 = vadd.f32 %v252_v36, %v1879_v42 }
 0x564   : > { %v402_v40 = vpop.permute.xlu0 %401 }
 0x565   : > { %403 = vrot.lane.b32.xlu1 %v1910_v2, %s1793_s17  ;;  %568 = vrot.lane.b32.xlu0 %v1940_v27, %s1793_s17  ;;  %v2129_v43 = vadd.f32 %v402_v40, %v1907_v0 }
 0x569   : > { %955 = vrot.lane.b32.xlu1 %v2010_v21, %s1793_s17  ;;  %572 = vrot.lane.b32.xlu0 %v1948_v32, %s1793_s17 }
 0x56d   : > { %1102 = vrot.lane.b32.xlu1 %v2036_v53, %s1793_s17  ;;  %1273 = vrot.lane.b32.xlu0 %v2079_v22, %s1793_s17 }
 0x571   : > { %1106 = vrot.lane.b32.xlu1 %v2044_v60, %s1793_s17  ;;  %737 = vrot.lane.b32.xlu0 %v1974_v56, %s1793_s17 }
 0x575   : > { %570 = vrot.lane.b32.xlu1 %v1945_v30, %s1793_s17  ;;  %741 = vrot.lane.b32.xlu0 %v1982_v62, %s1793_s17 }
 0x579   : > { %1271 = vrot.lane.b32.xlu1 %v2074_v18, %s1793_s17  ;;  %262 = vrot.lane.b32.xlu0 %v2115_v37, %s1789_s15 }
 0x57d   : > { %1275 = vrot.lane.b32.xlu1 %v2082_v25, %s1793_s17  ;;  %266 = vrot.lane.b32.xlu0 %v2122_v39, %s1789_s15 }
 0x581   : > { %739 = vrot.lane.b32.xlu1 %v1979_v59, %s1793_s17  ;;  %416 = vrot.lane.b32.xlu0 %v2129_v43, %s1789_s15 }
 0x585   : > { %264 = vrot.lane.b32.xlu1 %v2136_v44, %s1789_s15 }
 0x589   : > { %414 = vrot.lane.b32.xlu1 %v2141_v47, %s1789_s15 }
 0x5cf   : > { %v1404_v48 = vpop.permute.xlu0 %1403 }
 0x5d0   : > { %1416 = vst.msk [vmem:[#allocation2] sm:$0xff] %vm219_vm2, %v1404_v48 }
 0x5d3   : > { %v1409_v49 = vpop.permute.xlu1 %1408 }
 0x5d4   : > { %1417 = vst.msk [vmem:[#allocation2 + $0x8] sm:$0xff] %vm219_vm2, %v1409_v49  ;;  %v1421_v50 = vpop.permute.xlu0 %1420 }
 0x5d5   : > { %1431 = vst.msk [vmem:[#allocation2] sm:$0xff] %vm236_vm3, %v1421_v50 }
 0x5d7   : > { %v1414_v51 = vpop.permute.xlu1 %1413 }
 0x5d8   : > { %1418 = vst.msk [vmem:[#allocation2 + $0x10] sm:$0xf] %vm222_vm4, %v1414_v51  ;;  %v954_v52 = vpop.permute.xlu0 %953 }
 0x5d9   : > { %v2150_v54 = vadd.f32 %v954_v52, %v2005_v19 }
 0x5db   : > { %968 = vrot.lane.b32.xlu0 %v2150_v54, %s1789_s15 }
 0x5dc   : > { %v1425_v55 = vpop.permute.xlu1 %1424  ;;  %v958_v58 = vpop.permute.xlu0 %957 }
 0x5dd   : > { %1432 = vst.msk [vmem:[#allocation2 + $0x8] sm:$0xff] %vm236_vm3, %v1425_v55  ;;  %v2156_v63 = vadd.f32 %v958_v58, %v2013_v26 }
 0x5df   : > { %972 = vrot.lane.b32.xlu0 %v2156_v63, %s1789_s15 }
 0x5e0   : > { %v1429_v1 = vpop.permute.xlu1 %1428  ;;  %v1105_v3 = vpop.permute.xlu0 %1104 }
 0x5e1   : > { %1433 = vst.msk [vmem:[#allocation2 + $0x10] sm:$0xf] %vm239_vm5, %v1429_v1  ;;  %v2162_v5 = vadd.f32 %v1105_v3, %v2041_v57 }
 0x5e3   : > { %1119 = vrot.lane.b32.xlu0 %v2162_v5, %s1789_s15 }
 0x5e4   : > { %v404_v6 = vpop.permute.xlu1 %403  ;;  %v2183_v14 = vld [vmem:[#allocation2 + $0x8] sm:$0xff] }
 0x5e5   : > { %v2167_v10 = vadd.f32 %v404_v6, %v1910_v2 }
 0x5e7   : > { %418 = vrot.lane.b32.xlu1 %v2167_v10, %s1789_s15  ;;  %274 = vrot.lane.b32.xlu0 %v1871_v35, %s1794_s18  ;;  %v569_v35 = vpop.permute.xlu0 %568 }
 0x5e8   : > { %v956_v11 = vpop.permute.xlu1 %955  ;;  %v2216_v8 = vld [vmem:[#allocation2 + $0x10] sm:$0xf] }
 0x5e9   : > { %v2174_v12 = vadd.f32 %v956_v11, %v2010_v21 }
 0x5eb   : > { %970 = vrot.lane.b32.xlu1 %v2174_v12, %s1789_s15  ;;  %278 = vrot.lane.b32.xlu0 %v1879_v42, %s1794_s18  ;;  %v2197_v42 = vadd.f32 %v569_v35, %v1940_v27  ;;  %v573_v15 = vpop.permute.xlu0 %572 }
 0x5ec   : > { %v1103_v13 = vpop.permute.xlu1 %1102  ;;  %v2204_v16 = vadd.f32 %v573_v15, %v1948_v32 }
 0x5ed   : > { %v2181_v34 = vadd.f32 %v1103_v13, %v2036_v53 }
 0x5ef   : > { %1117 = vrot.lane.b32.xlu1 %v2181_v34, %s1789_s15  ;;  %1442 = vrot.lane.b32.xlu0 %v2183_v14, %s1793_s17 }
 0x5f0   : > { %v1107_v7 = vpop.permute.xlu1 %1106 }
 0x5f1   : > { %v2190_v45 = vadd.f32 %v1107_v7, %v2044_v60 }
 0x5f3   : > { %1121 = vrot.lane.b32.xlu1 %v2190_v45, %s1789_s15  ;;  %428 = vrot.lane.b32.xlu0 %v1907_v0, %s1794_s18  ;;  %v2210_v0 = vld [vmem:[#allocation2] sm:$0xff] }
 0x5f7   : > { %276 = vrot.lane.b32.xlu1 %v1876_v38, %s1794_s18  ;;  %583 = vrot.lane.b32.xlu0 %v2197_v42, %s1789_s15  ;;  %v571_v38 = vpop.permute.xlu1 %570 }
 0x5fb   : > { %426 = vrot.lane.b32.xlu1 %v1902_v61, %s1794_s18  ;;  %587 = vrot.lane.b32.xlu0 %v2204_v16, %s1789_s15  ;;  %v1274_v61 = vpop.permute.xlu0 %1273  ;;  %v1272_v4 = vpop.permute.xlu1 %1271 }
 0x5fc   : > { %v2227_v17 = vadd.f32 %v1274_v61, %v2079_v22 }
 0x5ff   : > { %1440 = vrot.lane.b32.xlu1 %v2210_v0, %s1793_s17  ;;  %982 = vrot.lane.b32.xlu0 %v2010_v21, %s1794_s18  ;;  %v2230_v21 = vadd.f32 %v571_v38, %v1945_v30 }
 0x603   : > { %1444 = vrot.lane.b32.xlu1 %v2216_v8, %s1793_s17  ;;  %1129 = vrot.lane.b32.xlu0 %v2036_v53, %s1794_s18  ;;  %v1276_v53 = vpop.permute.xlu1 %1275 }
 0x607   : > { %430 = vrot.lane.b32.xlu1 %v1910_v2, %s1794_s18  ;;  %1133 = vrot.lane.b32.xlu0 %v2044_v60, %s1794_s18  ;;  %v740_v2 = vpop.permute.xlu1 %739 }
 0x608   : > { %v2245_v60 = vadd.f32 %v740_v2, %v1979_v59 }
 0x60b   : > { %585 = vrot.lane.b32.xlu1 %v2230_v21, %s1789_s15  ;;  %1288 = vrot.lane.b32.xlu0 %v2227_v17, %s1789_s15  ;;  %v265_v24 = vpop.permute.xlu1 %264 }
 0x60c   : > { %v272_v50 = vadd.f32 %v265_v24, %v2136_v44 }
 0x60f   : > { %980 = vrot.lane.b32.xlu1 %v2005_v19, %s1794_s18  ;;  %595 = vrot.lane.b32.xlu0 %v1940_v27, %s1794_s18  ;;  %v2252_v19 = vadd.f32 %v1272_v4, %v2074_v18  ;;  %v2259_v27 = vadd.f32 %v1276_v53, %v2082_v25 }
 0x613   : > { %984 = vrot.lane.b32.xlu1 %v2013_v26, %s1794_s18  ;;  %599 = vrot.lane.b32.xlu0 %v1948_v32, %s1794_s18  ;;  %v738_v32 = vpop.permute.xlu0 %737 }
 0x614   : > { %v2270_v26 = vadd.f32 %v738_v32, %v1974_v56 }
 0x617   : > { %1131 = vrot.lane.b32.xlu1 %v2041_v57, %s1794_s18  ;;  %754 = vrot.lane.b32.xlu0 %v2245_v60, %s1789_s15  ;;  %v742_v57 = vpop.permute.xlu0 %741 }
 0x61b   : > { %1286 = vrot.lane.b32.xlu1 %v2252_v19, %s1789_s15  ;;  %1298 = vrot.lane.b32.xlu0 %v2074_v18, %s1794_s18  ;;  %v2277_v18 = vadd.f32 %v742_v57, %v1982_v62 }
 0x61f   : > { %1290 = vrot.lane.b32.xlu1 %v2259_v27, %s1789_s15  ;;  %1302 = vrot.lane.b32.xlu0 %v2082_v25, %s1794_s18  ;;  %v415_v25 = vpop.permute.xlu1 %414 }
 0x623   : > { %597 = vrot.lane.b32.xlu1 %v1945_v30, %s1794_s18  ;;  %764 = vrot.lane.b32.xlu0 %v1974_v56, %s1794_s18  ;;  %v263_v30 = vpop.permute.xlu0 %262 }
 0x624   : > { %v271_v49 = vadd.f32 %v263_v30, %v2115_v37 }
 0x627   : > { %768 = vrot.lane.b32.xlu0 %v1982_v62, %s1794_s18  ;;  %752 = vrot.lane.b32.xlu1 %v2270_v26, %s1789_s15  ;;  %v267_v56 = vpop.permute.xlu0 %266 }
 0x628   : > { %v273_v40 = vadd.f32 %v267_v56, %v2122_v39 }
 0x62b   : > { %756 = vrot.lane.b32.xlu1 %v2277_v18, %s1789_s15  ;;  %v417_v20 = vpop.permute.xlu0 %416 }
 0x62c   : > { %v424_v32 = vadd.f32 %v417_v20, %v2129_v43 }
 0x62f   : > { %1300 = vrot.lane.b32.xlu1 %v2079_v22, %s1794_s18 }
 0x633   : > { %766 = vrot.lane.b32.xlu1 %v1979_v59, %s1794_s18 }
 0x637   : > { %1467 = vrot.lane.b32.xlu1 %v2210_v0, %s1794_s18 }
 0x64d   : > { %v2287_v9 = vpop.permute.xlu0 %968 }
 0x651   : > { %v2289_v62 = vpop.permute.xlu0 %972 }
 0x655   : > { %v2291_v28 = vpop.permute.xlu0 %1119 }
 0x659   : > { %v419_v29 = vpop.permute.xlu1 %418  ;;  %v275_v31 = vpop.permute.xlu0 %274 }
 0x65a   : > { %v283_v51 = vadd.f32 %v275_v31, %v271_v49 }
 0x65c   : > { %v290_v1 = vrot.slane %v283_v51, 1  ;;  %v315_v56 = vrot.slane %v283_v51, 4 }
 0x65d   : > { %v2293_v22 = vpop.permute.xlu1 %970  ;;  %v279_v33 = vpop.permute.xlu0 %278 }
 0x65e   : > { %v285_v41 = vadd.f32 %v279_v33, %v273_v40 }
 0x660   : > { %v293_v52 = vrot.slane %v285_v41, 1  ;;  %v318_v24 = vrot.slane %v285_v41, 4 }
 0x661   : > { %v2295_v59 = vpop.permute.xlu1 %1117  ;;  %v1443_v23 = vpop.permute.xlu0 %1442 }
 0x662   : > { %v2298_v36 = vadd.f32 %v1443_v23, %v2183_v14  ;;  %v300_v6 = vadd.f32 %v293_v52, %v285_v41 }
 0x664   : > { %1457 = vrot.lane.b32.xlu0 %v2298_v36, %s1789_s15  ;;  %v308_v15 = vrot.slane %v300_v6, 2 }
 0x665   : > { %v2303_v46 = vpop.permute.xlu1 %1121  ;;  %v429_v48 = vpop.permute.xlu0 %428 }
 0x666   : > { %v436_v31 = vadd.f32 %v429_v48, %v424_v32  ;;  %v425_v48 = vadd.f32 %v419_v29, %v2167_v10 }
 0x668   : > { %1469 = vrot.lane.b32.xlu0 %v2183_v14, %s1794_s18  ;;  %v423_v14 = vadd.f32 %v415_v25, %v2141_v47 }
 0x669   : > { %v277_v55 = vpop.permute.xlu1 %276  ;;  %v2309_v58 = vpop.permute.xlu0 %583 }
 0x66a   : > { %v284_v39 = vadd.f32 %v277_v55, %v272_v50 }
 0x66c   : > { %v291_v3 = vrot.slane %v284_v39, 1  ;;  %v316_v4 = vrot.slane %v284_v39, 4 }
 0x66d   : > { %v427_v11 = vpop.permute.xlu1 %426  ;;  %v2311_v13 = vpop.permute.xlu0 %587 }
 0x66e   : > { %v292_v37 = vsel %vm289_vm6, %v290_v1, %v291_v3  ;;  %v294_v44 = vsel %vm289_vm6, %v291_v3, %v293_v52  ;;  %v2317_v57 = vadd.f32 %v427_v11, %v423_v14  ;;  %v317_v43 = vsel %vm314_vm8, %v315_v56, %v316_v4 }
 0x66f   : > { %v297_v35 = vadd.f32 %v292_v37, %v283_v51  ;;  %v298_v7 = vadd.f32 %v294_v44, %v284_v39  ;;  %v319_v20 = vsel %vm314_vm8, %v316_v4, %v318_v24  ;;  %v442_v52 = vrot.slane %v436_v31, 1 }
 0x670   : > { %v441_v41 = vrot.slane %v2317_v57, 1  ;;  %v464_v32 = vrot.slane %v2317_v57, 4 }
 0x671   : > { %v305_v38 = vrot.slane %v297_v35, 2  ;;  %v306_v61 = vrot.slane %v298_v7, 2  ;;  %v1441_v53 = vpop.permute.xlu1 %1440  ;;  %v983_v2 = vpop.permute.xlu0 %982 }
 0x672   : > { %v2320_v30 = vadd.f32 %v1441_v53, %v2210_v0  ;;  %v443_v6 = vsel %vm289_vm6, %v441_v41, %v442_v52 }
 0x673   : > { %v307_v47 = vsel %vm304_vm7, %v305_v38, %v306_v61  ;;  %v309_v25 = vsel %vm304_vm7, %v306_v61, %v308_v15  ;;  %v448_v29 = vadd.f32 %v443_v6, %v2317_v57  ;;  %v977_v38 = vadd.f32 %v2287_v9, %v2150_v54 }
 0x674   : > { %v312_v33 = vadd.f32 %v307_v47, %v297_v35  ;;  %v313_v23 = vadd.f32 %v309_v25, %v298_v7  ;;  %1455 = vrot.lane.b32.xlu1 %v2320_v30, %s1789_s15  ;;  %v978_v35 = vadd.f32 %v2293_v22, %v2174_v12  ;;  %v1128_v61 = vadd.f32 %v2303_v46, %v2190_v45 }
 0x675   : > { %v1445_v40 = vpop.permute.xlu1 %1444  ;;  %v1130_v0 = vpop.permute.xlu0 %1129  ;;  %v455_v53 = vrot.slane %v448_v29, 2  ;;  %v465_v25 = vrot.slane %v436_v31, 4 }
 0x676   : > { %v322_v49 = vadd.f32 %v317_v43, %v312_v33  ;;  %v323_v50 = vadd.f32 %v319_v20, %v313_v23  ;;  %v2331_v51 = vadd.f32 %v1445_v40, %v2216_v8  ;;  %v979_v23 = vadd.f32 %v2289_v62, %v2156_v63 }
 0x677   : > { %v466_v43 = vsel %vm314_vm8, %v464_v32, %v465_v25  ;;  %v1127_v63 = vadd.f32 %v2291_v28, %v2162_v5  ;;  %v592_v5 = vadd.f32 %v2309_v58, %v2197_v42 }
 0x678   : > { %v2339_v55 = vmul.f32 0.04, %v322_v49  ;;  %v2341_v39 = vmul.f32 0.04, %v323_v50  ;;  %1459 = vrot.lane.b32.xlu1 %v2331_v51, %s1789_s15  ;;  %v1126_v49 = vadd.f32 %v2295_v59, %v2181_v34 }
 0x679   : > { %v431_v1 = vpop.permute.xlu1 %430  ;;  %v1134_v3 = vpop.permute.xlu0 %1133 }
 0x67a   : > { %327 = vst.msk [vmem:[%s2336_s22] sm:$0xff] %vm326_vm9, %v2339_v55  ;;  %328 = vst.msk [vmem:[%s2336_s22 + $0x8] sm:$0xff] %vm326_vm9, %v2341_v39  ;;  %v437_v11 = vadd.f32 %v431_v1, %v425_v48  ;;  %v2375_v9 = vadd.f32 %v1134_v3, %v1128_v61  ;;  %v1138_v62 = vadd.f32 %v1130_v0, %v1126_v49 }
 0x67c   : > { %v444_v10 = vrot.slane %v437_v11, 1  ;;  %1471 = vrot.lane.b32.xlu1 %v2216_v8, %s1794_s18  ;;  %v2366_v8 = vadd.f32 %v983_v2, %v978_v35  ;;  %v467_v24 = vrot.slane %v437_v11, 4 }
 0x67d   : > { %v2355_v37 = vpop.permute.xlu1 %585  ;;  %v2357_v44 = vpop.permute.xlu0 %1288 }
 0x67e   : > { %v445_v7 = vsel %vm289_vm6, %v442_v52, %v444_v10  ;;  %v451_v14 = vadd.f32 %v444_v10, %v437_v11  ;;  %v996_v45 = vrot.slane %v2366_v8, 1  ;;  %v468_v20 = vsel %vm314_vm8, %v465_v25, %v467_v24 }
 0x67f   : > { %v449_v15 = vadd.f32 %v445_v7, %v436_v31  ;;  %v1147_v52 = vrot.slane %v2375_v9, 1  ;;  %v594_v7 = vadd.f32 %v2311_v13, %v2204_v16  ;;  %v1019_v61 = vrot.slane %v2366_v8, 4 }
 0x680   : > { %v458_v4 = vrot.slane %v451_v14, 2  ;;  %v1144_v14 = vrot.slane %v1138_v62, 1  ;;  %v1167_v25 = vrot.slane %v1138_v62, 4 }
 0x681   : > { %v456_v56 = vrot.slane %v449_v15, 2  ;;  %v981_v47 = vpop.permute.xlu1 %980  ;;  %v2369_v12 = vpop.permute.xlu0 %595  ;;  %v1154_v28 = vadd.f32 %v1147_v52, %v2375_v9 }
 0x682   : > { %v2371_v22 = vadd.f32 %v981_v47, %v977_v38 }
 0x683   : > { %v457_v33 = vsel %vm304_vm7, %v455_v53, %v456_v56  ;;  %v459_v54 = vsel %vm304_vm7, %v456_v56, %v458_v4 }
 0x684   : > { %v462_v46 = vadd.f32 %v457_v33, %v448_v29  ;;  %v463_v2 = vadd.f32 %v459_v54, %v449_v15  ;;  %v995_v57 = vrot.slane %v2371_v22, 1  ;;  %v1018_v53 = vrot.slane %v2371_v22, 4 }
 0x685   : > { %v985_v31 = vpop.permute.xlu1 %984  ;;  %v600_v40 = vpop.permute.xlu0 %599  ;;  %v1161_v33 = vrot.slane %v1154_v28, 2 }
 0x686   : > { %v471_v50 = vadd.f32 %v466_v43, %v462_v46  ;;  %v472_v41 = vadd.f32 %v468_v20, %v463_v2  ;;  %v997_v48 = vsel %vm289_vm6, %v995_v57, %v996_v45  ;;  %v991_v1 = vadd.f32 %v985_v31, %v979_v23 }
 0x687   : > { %v1002_v11 = vadd.f32 %v997_v48, %v2371_v22  ;;  %v1170_v31 = vrot.slane %v2375_v9, 4  ;;  %v1020_v49 = vsel %vm314_vm8, %v1018_v53, %v1019_v61 }
 0x688   : > { %v2389_v3 = vmul.f32 0.04, %v471_v50  ;;  %v2391_v6 = vmul.f32 0.04, %v472_v41  ;;  %v998_v10 = vrot.slane %v991_v1, 1  ;;  %v1021_v58 = vrot.slane %v991_v1, 4 }
 0x689   : > { %v1132_v29 = vpop.permute.xlu1 %1131  ;;  %v2400_v59 = vpop.permute.xlu0 %754  ;;  %v1009_v4 = vrot.slane %v1002_v11, 2  ;;  %v604_v50 = vadd.f32 %v2369_v12, %v592_v5 }
 0x68a   : > { %1664 = vst.msk [vmem:[%s2336_s22 + $0x10] sm:$0xff] %vm326_vm9, %v2389_v3  ;;  %1665 = vst.msk [vmem:[%s2336_s22 + $0x18] sm:$0xff] %vm326_vm9, %v2391_v6  ;;  %v1139_v34 = vadd.f32 %v1132_v29, %v1127_v63  ;;  %v999_v0 = vsel %vm289_vm6, %v996_v45, %v998_v10  ;;  %v1005_v35 = vadd.f32 %v998_v10, %v991_v1 }
 0x68b   : > { %v1003_v15 = vadd.f32 %v999_v0, %v2366_v8  ;;  %v2415_v8 = vadd.f32 %v600_v40, %v594_v7  ;;  %v1022_v41 = vsel %vm314_vm8, %v1019_v61, %v1021_v58  ;;  %v593_v63 = vadd.f32 %v2355_v37, %v2230_v21 }
 0x68c   : > { %v1145_v38 = vrot.slane %v1139_v34, 1  ;;  %v1012_v32 = vrot.slane %v1005_v35, 2  ;;  %v1168_v46 = vrot.slane %v1139_v34, 4  ;;  %v610_v21 = vrot.slane %v604_v50, 1 }
 0x68d   : > { %v1287_v56 = vpop.permute.xlu1 %1286  ;;  %v1010_v42 = vrot.slane %v1003_v15, 2  ;;  %v1299_v22 = vpop.permute.xlu0 %1298 }
 0x68e   : > { %v1146_v24 = vsel %vm289_vm6, %v1144_v14, %v1145_v38  ;;  %v1148_v47 = vsel %vm289_vm6, %v1145_v38, %v1147_v52  ;;  %v1169_v29 = vsel %vm314_vm8, %v1167_v25, %v1168_v46  ;;  %v1295_v25 = vadd.f32 %v1287_v56, %v2252_v19 }
 0x68f   : > { %v1151_v16 = vadd.f32 %v1146_v24, %v1138_v62  ;;  %v1152_v13 = vadd.f32 %v1148_v47, %v1139_v34  ;;  %v1011_v54 = vsel %vm304_vm7, %v1009_v4, %v1010_v42  ;;  %v1013_v45 = vsel %vm304_vm7, %v1010_v42, %v1012_v32 }
 0x690   : > { %v1016_v2 = vadd.f32 %v1011_v54, %v1002_v11  ;;  %v1017_v57 = vadd.f32 %v1013_v45, %v1003_v15  ;;  %v613_v62 = vrot.slane %v2415_v8, 1  ;;  %v1171_v34 = vsel %vm314_vm8, %v1168_v46, %v1170_v31 }
 0x691   : > { %v1158_v23 = vrot.slane %v1151_v16, 2  ;;  %v1159_v43 = vrot.slane %v1152_v13, 2  ;;  %v1291_v20 = vpop.permute.xlu1 %1290  ;;  %v1303_v35 = vpop.permute.xlu0 %1302  ;;  %v1296_v31 = vadd.f32 %v2357_v44, %v2227_v17 }
 0x692   : > { %v1025_v48 = vadd.f32 %v1020_v49, %v1016_v2  ;;  %v1026_v52 = vadd.f32 %v1022_v41, %v1017_v57  ;;  %v620_v37 = vadd.f32 %v613_v62, %v2415_v8  ;;  %v1297_v61 = vadd.f32 %v1291_v20, %v2259_v27 }
 0x693   : > { %v1160_v40 = vsel %vm304_vm7, %v1158_v23, %v1159_v43  ;;  %v1162_v1 = vsel %vm304_vm7, %v1159_v43, %v1161_v33  ;;  %v633_v23 = vrot.slane %v604_v50, 4  ;;  %v636_v43 = vrot.slane %v2415_v8, 4 }
 0x694   : > { %v1165_v9 = vadd.f32 %v1160_v40, %v1151_v16  ;;  %v1166_v11 = vadd.f32 %v1162_v1, %v1152_v13  ;;  %v2426_v10 = vmul.f32 0.04, %v1026_v52  ;;  %v2428_v12 = vmul.f32 0.04, %v1025_v48 }
 0x695   : > { %v598_v5 = vpop.permute.xlu1 %597  ;;  %v627_v27 = vrot.slane %v620_v37, 2  ;;  %v765_v33 = vpop.permute.xlu0 %764  ;;  %v1309_v54 = vadd.f32 %v1303_v35, %v1297_v61  ;;  %v1307_v49 = vadd.f32 %v1299_v22, %v1295_v25 }
 0x696   : > { %v1174_v28 = vadd.f32 %v1169_v29, %v1165_v9  ;;  %v1175_v0 = vadd.f32 %v1171_v34, %v1166_v11  ;;  %v605_v7 = vadd.f32 %v598_v5, %v593_v63  ;;  %1689 = vst.msk [vmem:[%s2336_s22 + $0x58] sm:$0xff] %vm326_vm9, %v2426_v10  ;;  %1688 = vst.msk [vmem:[%s2336_s22 + $0x50] sm:$0xff] %vm326_vm9, %v2428_v12 }
 0x697   : > { %v1316_v52 = vrot.slane %v1309_v54, 1  ;;  %v1313_v29 = vrot.slane %v1307_v49, 1 }
 0x698   : > { %v2439_v14 = vmul.f32 0.04, %v1174_v28  ;;  %v2441_v15 = vmul.f32 0.04, %v1175_v0  ;;  %v611_v38 = vrot.slane %v605_v7, 1  ;;  %v634_v2 = vrot.slane %v605_v7, 4 }
 0x699   : > { %v753_v4 = vpop.permute.xlu1 %752  ;;  %v769_v9 = vpop.permute.xlu0 %768  ;;  %v1323_v34 = vadd.f32 %v1316_v52, %v1309_v54  ;;  %v762_v28 = vadd.f32 %v2400_v59, %v2245_v60  ;;  %v1336_v60 = vrot.slane %v1307_v49, 4 }
 0x69a   : > { %1694 = vst.msk [vmem:[%s2336_s22 + $0x60] sm:$0xff] %vm326_vm9, %v2439_v14  ;;  %1695 = vst.msk [vmem:[%s2336_s22 + $0x68] sm:$0xff] %vm326_vm9, %v2441_v15  ;;  %v1181_v53 = vmin.f32 %v2428_v12, %v2439_v14  ;;  %v1182_v32 = vmin.f32 %v2426_v10, %v2441_v15  ;;  %v612_v42 = vsel %vm289_vm6, %v610_v21, %v611_v38 }
 0x69b   : > { %v614_v58 = vsel %vm289_vm6, %v611_v38, %v613_v62  ;;  %v617_v24 = vadd.f32 %v612_v42, %v604_v50  ;;  %v2459_v16 = vadd.f32 %v2439_v14, %v2428_v12  ;;  %v2463_v13 = vadd.f32 %v2441_v15, %v2426_v10 }
 0x69c   : > { %v618_v47 = vadd.f32 %v614_v58, %v605_v7  ;;  %v635_v40 = vsel %vm314_vm8, %v633_v23, %v634_v2  ;;  %v637_v50 = vsel %vm314_vm8, %v634_v2, %v636_v43  ;;  %v761_v62 = vadd.f32 %v753_v4, %v2270_v26 }
 0x69d   : > { %v624_v45 = vrot.slane %v617_v24, 2  ;;  %v757_v57 = vpop.permute.xlu1 %756  ;;  %v1330_v61 = vrot.slane %v1323_v34, 2  ;;  %v480_v10 = vadd.f32 %v2389_v3, %v2339_v55  ;;  %v481_v15 = vadd.f32 %v2391_v6, %v2341_v39 }
 0x69e   : > { %v625_v46 = vrot.slane %v618_v47, 2  ;;  %v763_v56 = vadd.f32 %v757_v57, %v2277_v18  ;;  %v773_v26 = vadd.f32 %v765_v33, %v761_v62 }
 0x6a0   : > { %v626_v20 = vsel %vm304_vm7, %v624_v45, %v625_v46  ;;  %v628_v19 = vsel %vm304_vm7, %v625_v46, %v627_v27  ;;  %v775_v11 = vadd.f32 %v769_v9, %v763_v56  ;;  %v779_v59 = vrot.slane %v773_v26, 1 }
 0x6a1   : > { %v631_v41 = vadd.f32 %v626_v20, %v617_v24  ;;  %v632_v48 = vadd.f32 %v628_v19, %v618_v47  ;;  %v1301_v8 = vpop.permute.xlu1 %1300  ;;  %v1339_v47 = vrot.slane %v1309_v54, 4 }
 0x6a2   : > { %v1308_v18 = vadd.f32 %v1301_v8, %v1296_v31  ;;  %v782_v7 = vrot.slane %v775_v11, 1 }
 0x6a3   : > { %v640_v1 = vadd.f32 %v635_v40, %v631_v41  ;;  %v641_v63 = vadd.f32 %v637_v50, %v632_v48  ;;  %v478_v40 = vmin.f32 %v2339_v55, %v2389_v3 }
 0x6a4   : > { %v1314_v22 = vrot.slane %v1308_v18, 1  ;;  %v1337_v58 = vrot.slane %v1308_v18, 4  ;;  %v789_v27 = vadd.f32 %v782_v7, %v775_v11 }
 0x6a5   : > { %v2474_v17 = vmul.f32 0.04, %v640_v1  ;;  %v2476_v44 = vmul.f32 0.04, %v641_v63  ;;  %v767_v5 = vpop.permute.xlu1 %766  ;;  %v802_v1 = vrot.slane %v773_v26, 4  ;;  %v805_v63 = vrot.slane %v775_v11, 4 }
 0x6a6   : > { %v1315_v0 = vsel %vm289_vm6, %v1313_v29, %v1314_v22  ;;  %v1317_v35 = vsel %vm289_vm6, %v1314_v22, %v1316_v52  ;;  %v774_v38 = vadd.f32 %v767_v5, %v762_v28  ;;  %v1338_v23 = vsel %vm314_vm8, %v1336_v60, %v1337_v58 }
 0x6a7   : > { %1666 = vst.msk [vmem:[%s2336_s22 + $0x20] sm:$0xff] %vm326_vm9, %v2474_v17  ;;  %1667 = vst.msk [vmem:[%s2336_s22 + $0x28] sm:$0xff] %vm326_vm9, %v2476_v44  ;;  %v1320_v21 = vadd.f32 %v1315_v0, %v1307_v49  ;;  %v1321_v37 = vadd.f32 %v1317_v35, %v1308_v18  ;;  %v1340_v43 = vsel %vm314_vm8, %v1337_v58, %v1339_v47  ;;  %v796_v31 = vrot.slane %v789_v27, 2 }
 0x6a8   : > { %v780_v24 = vrot.slane %v774_v38, 1  ;;  %v803_v48 = vrot.slane %v774_v38, 4  ;;  %v479_v52 = vmin.f32 %v2341_v39, %v2391_v6  ;;  %v650_v35 = vadd.f32 %v2476_v44, %v481_v15  ;;  %v824_v39 = vld [vmem:[%s2336_s22] sm:$0xff] }
 0x6a9   : > { %v1327_v4 = vrot.slane %v1320_v21, 2  ;;  %v1328_v42 = vrot.slane %v1321_v37, 2 }
 0x6aa   : > { %v781_v2 = vsel %vm289_vm6, %v779_v59, %v780_v24  ;;  %v783_v57 = vsel %vm289_vm6, %v780_v24, %v782_v7  ;;  %v804_v34 = vsel %vm314_vm8, %v802_v1, %v803_v48  ;;  %v806_v5 = vsel %vm314_vm8, %v803_v48, %v805_v63 }
 0x6ab   : > { %v1329_v25 = vsel %vm304_vm7, %v1327_v4, %v1328_v42  ;;  %v1331_v33 = vsel %vm304_vm7, %v1328_v42, %v1330_v61  ;;  %v786_v20 = vadd.f32 %v781_v2, %v773_v26  ;;  %v787_v19 = vadd.f32 %v783_v57, %v774_v38 }
 0x6ac   : > { %v1334_v45 = vadd.f32 %v1329_v25, %v1320_v21  ;;  %v1335_v46 = vadd.f32 %v1331_v33, %v1321_v37  ;;  %v825_v21 = vld [vmem:[%s2336_s22 + $0x8] sm:$0xff]  ;;  %v1670_v37 = vld [vmem:[%s2336_s22 + $0x10] sm:$0xff] }
 0x6ad   : > { %v793_v49 = vrot.slane %v786_v20, 2  ;;  %v794_v41 = vrot.slane %v787_v19, 2 }
 0x6ae   : > { %v1343_v54 = vadd.f32 %v1338_v23, %v1334_v45  ;;  %v1344_v56 = vadd.f32 %v1340_v43, %v1335_v46  ;;  %v1674_v42 = vld [vmem:[%s2336_s22 + $0x20] sm:$0xff]  ;;  %v1675_v58 = vld [vmem:[%s2336_s22 + $0x28] sm:$0xff] }
 0x6af   : > { %v795_v62 = vsel %vm304_vm7, %v793_v49, %v794_v41  ;;  %v797_v9 = vsel %vm304_vm7, %v794_v41, %v796_v31 }
 0x6b0   : > { %v1345_v50 = vmul.f32 0.04, %v1343_v54  ;;  %v1346_v8 = vmul.f32 0.04, %v1344_v56  ;;  %v800_v22 = vadd.f32 %v795_v62, %v786_v20  ;;  %v801_v11 = vadd.f32 %v797_v9, %v787_v19  ;;  %v1468_v19 = vpop.permute.xlu1 %1467 }
 0x6b2   : > { %1700 = vst.msk [vmem:[%s2336_s22 + $0x70] sm:$0xff] %vm326_vm9, %v1345_v50  ;;  %1701 = vst.msk [vmem:[%s2336_s22 + $0x78] sm:$0xff] %vm326_vm9, %v1346_v8  ;;  %v2507_v18 = vmin.f32 %v1181_v53, %v1345_v50  ;;  %v2512_v29 = vmin.f32 %v1182_v32, %v1346_v8  ;;  %v2517_v28 = vadd.f32 %v1345_v50, %v2459_v16 }
 0x6b3   : > { %v2520_v12 = vadd.f32 %v1346_v8, %v2463_v13  ;;  %v809_v14 = vadd.f32 %v804_v34, %v800_v22  ;;  %v810_v53 = vadd.f32 %v806_v5, %v801_v11  ;;  %v647_v32 = vmin.f32 %v478_v40, %v2474_v17 }
 0x6b4   : > { %v648_v16 = vmin.f32 %v479_v52, %v2476_v44  ;;  %v649_v13 = vadd.f32 %v2474_v17, %v480_v10  ;;  %v1671_v17 = vld [vmem:[%s2336_s22 + $0x18] sm:$0xff] }
 0x6b5   : > { %v811_v26 = vmul.f32 0.04, %v809_v14  ;;  %v812_v0 = vmul.f32 0.04, %v810_v53 }
 0x6b7   : > { %1668 = vst.msk [vmem:[%s2336_s22 + $0x30] sm:$0xff] %vm326_vm9, %v811_v26  ;;  %1669 = vst.msk [vmem:[%s2336_s22 + $0x38] sm:$0xff] %vm326_vm9, %v812_v0  ;;  %v816_v55 = vmin.f32 %v647_v32, %v811_v26  ;;  %v817_v3 = vmin.f32 %v648_v16, %v812_v0  ;;  %v818_v6 = vadd.f32 %v811_v26, %v649_v13 }
 0x6b8   : > { %v819_v7 = vadd.f32 %v812_v0, %v650_v35 }
 0x6b9   : > { %v826_v44 = vsub.f32 %v824_v39, %v816_v55  ;;  %v827_v38 = vsub.f32 %v825_v21, %v817_v3  ;;  %v832_v61 = vsub.f32 %v1670_v37, %v816_v55  ;;  %v833_v4 = vsub.f32 %v1671_v17, %v817_v3  ;;  %v1709_v17 = vld [vmem:[%s2336_s22 + $0x58] sm:$0xff] }
 0x6ba   : > { %v838_v60 = vsub.f32 %v1674_v42, %v816_v55  ;;  %v839_v59 = vsub.f32 %v1675_v58, %v817_v3  ;;  %v820_v24 = vmul.f32 0.25, %v818_v6  ;;  %v821_v47 = vmul.f32 0.25, %v819_v7 }
 0x6bb   : > { %828 = vst.msk [vmem:[%s2336_s22] sm:$0xff] %vm326_vm9, %v826_v44  ;;  %829 = vst.msk [vmem:[%s2336_s22 + $0x8] sm:$0xff] %vm326_vm9, %v827_v38  ;;  %v1713_v44 = vld [vmem:[%s2336_s22 + $0x68] sm:$0xff]  ;;  %v1717_v38 = vld [vmem:[%s2336_s22 + $0x78] sm:$0xff] }
 0x6bc   : > { %1672 = vst.msk [vmem:[%s2336_s22 + $0x10] sm:$0xff] %vm326_vm9, %v832_v61  ;;  %1673 = vst.msk [vmem:[%s2336_s22 + $0x18] sm:$0xff] %vm326_vm9, %v833_v4  ;;  %v822_v27 = vsub.f32 %v820_v24, %v816_v55  ;;  %v823_v25 = vsub.f32 %v821_v47, %v817_v3 }
 0x6bd   : > { %1676 = vst.msk [vmem:[%s2336_s22 + $0x20] sm:$0xff] %vm326_vm9, %v838_v60  ;;  %1677 = vst.msk [vmem:[%s2336_s22 + $0x28] sm:$0xff] %vm326_vm9, %v839_v59 }
 0x6be   : > { %v1678_v33 = vld [vmem:[%s2336_s22 + $0x30] sm:$0xff]  ;;  %v1679_v45 = vld [vmem:[%s2336_s22 + $0x38] sm:$0xff]  ;;  %1683 = vst.msk [vmem:[%s2336_s22 + $0x48] sm:$0xff] %vm326_vm9, %v823_v25  ;;  %v851_v46 = vsel %vm326_vm9, %v822_v27, 0.0  ;;  %v852_v2 = vsel %vm326_vm9, %v823_v25, 0.0  ;;  %1682 = vst.msk [vmem:[%s2336_s22 + $0x40] sm:$0xff] %vm326_vm9, %v822_v27 }
 0x6bf   : > { %v844_v57 = vsub.f32 %v1678_v33, %v816_v55  ;;  %v845_v23 = vsub.f32 %v1679_v45, %v817_v3  ;;  %v853_v43 = vadd.f32 %v852_v2, %v851_v46 }
 0x6c1   : > { %1680 = vst.msk [vmem:[%s2336_s22 + $0x30] sm:$0xff] %vm326_vm9, %v844_v57  ;;  %1681 = vst.msk [vmem:[%s2336_s22 + $0x38] sm:$0xff] %vm326_vm9, %v845_v23  ;;  %854 = vadd.xlane.f32.xlu0 %v853_v43 }
 0x6d6   : > { %v1458_v20 = vpop.permute.xlu0 %1457 }
 0x6d7   : > { %v1465_v31 = vadd.f32 %v1458_v20, %v2298_v36 }
 0x6da   : > { %v1470_v54 = vpop.permute.xlu0 %1469 }
 0x6db   : > { %v1477_v41 = vadd.f32 %v1470_v54, %v1465_v31 }
 0x6dd   : > { %v1483_v50 = vrot.slane %v1477_v41, 1  ;;  %v1506_v15 = vrot.slane %v1477_v41, 4 }
 0x6e6   : > { %v1456_v56 = vpop.permute.xlu1 %1455 }
 0x6e7   : > { %v1464_v49 = vadd.f32 %v1456_v56, %v2320_v30 }
 0x6e9   : > { %v1476_v48 = vadd.f32 %v1468_v19, %v1464_v49 }
 0x6ea   : > { %v1460_v52 = vpop.permute.xlu1 %1459 }
 0x6eb   : > { %v1482_v40 = vrot.slane %v1476_v48, 1  ;;  %v1466_v8 = vadd.f32 %v1460_v52, %v2331_v51  ;;  %v1505_v14 = vrot.slane %v1476_v48, 4 }
 0x6ed   : > { %v1484_v63 = vsel %vm289_vm6, %v1482_v40, %v1483_v50  ;;  %v1507_v0 = vsel %vm314_vm8, %v1505_v14, %v1506_v15 }
 0x6ee   : > { %v1472_v1 = vpop.permute.xlu1 %1471  ;;  %v1489_v22 = vadd.f32 %v1484_v63, %v1476_v48 }
 0x6ef   : > { %v1478_v62 = vadd.f32 %v1472_v1, %v1466_v8 }
 0x6f0   : > { %v1496_v30 = vrot.slane %v1489_v22, 2 }
 0x6f1   : > { %v1485_v9 = vrot.slane %v1478_v62, 1  ;;  %v1508_v10 = vrot.slane %v1478_v62, 4 }
 0x6f3   : > { %v1486_v11 = vsel %vm289_vm6, %v1483_v50, %v1485_v9  ;;  %v1492_v34 = vadd.f32 %v1485_v9, %v1478_v62  ;;  %v1509_v13 = vsel %vm314_vm8, %v1506_v15, %v1508_v10 }
 0x6f4   : > { %v1490_v5 = vadd.f32 %v1486_v11, %v1477_v41 }
 0x6f5   : > { %v1499_v36 = vrot.slane %v1492_v34, 2 }
 0x6f6   : > { %v1497_v53 = vrot.slane %v1490_v5, 2 }
 0x6f8   : > { %v1498_v51 = vsel %vm304_vm7, %v1496_v30, %v1497_v53  ;;  %v1500_v32 = vsel %vm304_vm7, %v1497_v53, %v1499_v36 }
 0x6f9   : > { %v1504_v16 = vadd.f32 %v1500_v32, %v1490_v5  ;;  %v1503_v26 = vadd.f32 %v1498_v51, %v1489_v22 }
 0x6fb   : > { %v1513_v35 = vadd.f32 %v1509_v13, %v1504_v16  ;;  %v1512_v55 = vadd.f32 %v1507_v0, %v1503_v26 }
 0x6fd   : > { %v1515_v3 = vmul.f32 0.04, %v1513_v35  ;;  %v1514_v39 = vmul.f32 0.04, %v1512_v55 }
 0x6ff   : > { %1707 = vst.msk [vmem:[%s2336_s22 + $0x88] sm:$0xff] %vm326_vm9, %v1515_v3  ;;  %v1520_v6 = vmin.f32 %v2512_v29, %v1515_v3  ;;  %v1519_v7 = vmin.f32 %v2507_v18, %v1514_v39  ;;  %v1521_v21 = vadd.f32 %v1514_v39, %v2517_v28  ;;  %v1522_v37 = vadd.f32 %v1515_v3, %v2520_v12  ;;  %v1708_v18 = vld [vmem:[%s2336_s22 + $0x50] sm:$0xff]  ;;  %v1712_v28 = vld [vmem:[%s2336_s22 + $0x60] sm:$0xff] }
 0x700   : > { %1706 = vst.msk [vmem:[%s2336_s22 + $0x80] sm:$0xff] %vm326_vm9, %v1514_v39  ;;  %v1716_v12 = vld [vmem:[%s2336_s22 + $0x70] sm:$0xff] }
 0x701   : > { %v1530_v61 = vsub.f32 %v1709_v17, %v1520_v6  ;;  %v1536_v4 = vsub.f32 %v1713_v44, %v1520_v6  ;;  %v1542_v42 = vsub.f32 %v1717_v38, %v1520_v6  ;;  %v1523_v29 = vmul.f32 0.25, %v1521_v21 }
 0x702   : > { %v1524_v58 = vmul.f32 0.25, %v1522_v37  ;;  %v1529_v60 = vsub.f32 %v1708_v18, %v1519_v7  ;;  %v1535_v59 = vsub.f32 %v1712_v28, %v1519_v7  ;;  %v1541_v24 = vsub.f32 %v1716_v12, %v1519_v7 }
 0x703   : > { %1711 = vst.msk [vmem:[%s2336_s22 + $0x58] sm:$0xff] %vm326_vm9, %v1530_v61  ;;  %1715 = vst.msk [vmem:[%s2336_s22 + $0x68] sm:$0xff] %vm326_vm9, %v1536_v4  ;;  %v1525_v47 = vsub.f32 %v1523_v29, %v1519_v7 }
 0x704   : > { %1719 = vst.msk [vmem:[%s2336_s22 + $0x78] sm:$0xff] %vm326_vm9, %v1542_v42  ;;  %v1526_v27 = vsub.f32 %v1524_v58, %v1520_v6  ;;  %1710 = vst.msk [vmem:[%s2336_s22 + $0x50] sm:$0xff] %vm326_vm9, %v1529_v60 }
 0x705   : > { %1714 = vst.msk [vmem:[%s2336_s22 + $0x60] sm:$0xff] %vm326_vm9, %v1535_v59  ;;  %1718 = vst.msk [vmem:[%s2336_s22 + $0x70] sm:$0xff] %vm326_vm9, %v1541_v24  ;;  %v1554_v25 = vsel %vm326_vm9, %v1525_v47, 0.0 }
 0x706   : > { %1724 = vst.msk [vmem:[%s2336_s22 + $0x90] sm:$0xff] %vm326_vm9, %v1525_v47  ;;  %v1721_v33 = vld [vmem:[%s2336_s22 + $0x88] sm:$0xff]  ;;  %1725 = vst.msk [vmem:[%s2336_s22 + $0x98] sm:$0xff] %vm326_vm9, %v1526_v27  ;;  %v1555_v45 = vsel %vm326_vm9, %v1526_v27, 0.0 }
 0x707   : > { %v1720_v46 = vld [vmem:[%s2336_s22 + $0x80] sm:$0xff]  ;;  %v1548_v2 = vsub.f32 %v1721_v33, %v1520_v6  ;;  %v1556_v57 = vadd.f32 %v1555_v45, %v1554_v25 }
 0x708   : > { %v1547_v23 = vsub.f32 %v1720_v46, %v1519_v7 }
 0x709   : > { %1723 = vst.msk [vmem:[%s2336_s22 + $0x88] sm:$0xff] %vm326_vm9, %v1548_v2  ;;  %1557 = vadd.xlane.f32.xlu1 %v1556_v57 }
 0x70a   : > { %1722 = vst.msk [vmem:[%s2336_s22 + $0x80] sm:$0xff] %vm326_vm9, %v1547_v23 }
 0x74e   : > { %v855_v43 = vpop.xlane.xlu0 %854 }
 0x74f   : > { %v856_v20 = vrot.slane %v855_v43, 4 }
 0x751   : > { %v857_v19 = vadd.f32 %v856_v20, %v855_v43 }
 0x753   : > { %v858_v54 = vrot.slane %v857_v19, 2 }
 0x755   : > { %v859_v56 = vadd.f32 %v858_v54, %v857_v19 }
 0x757   : > { %v860_v31 = vrot.slane %v859_v56, 1 }
 0x759   : > { %v861_v49 = vadd.f32 %v860_v31, %v859_v56 }
 0x75b   : > { %1731 = vpush %v861_v49 }
 0x78c   : > { %s1732_s27 = spop %1731 }
 0x78d   : > { %v863_v41 = vstv %s1732_s27 }
 0x78e   : > { %865 = vst [vmem:[%s154_s26] sm:$0x1] %v863_v41 }
 0x796   : > { %v1558_v48 = vpop.xlane.xlu1 %1557 }
 0x797   : > { %v1559_v52 = vrot.slane %v1558_v48, 4 }
 0x799   : > { %v1560_v40 = vadd.f32 %v1559_v52, %v1558_v48 }
 0x79b   : > { %v1561_v50 = vrot.slane %v1560_v40, 2 }
 0x79d   : > { %v1562_v8 = vadd.f32 %v1561_v50, %v1560_v40 }
 0x79f   : > { %v1563_v1 = vrot.slane %v1562_v8, 1 }
 0x7a1   : > { %v1564_v63 = vadd.f32 %v1563_v1, %v1562_v8 }
 0x7a3   : > { %1733 = vpush %v1564_v63 }
 0x7d4   : > { %s1734_s28 = spop %1733 }
 0x7d5   : > { %v1566_v62 = vstv %s1734_s28 }
 0x7d6   : > { %1726 = vst [vmem:[%s154_s26 + $0x1] sm:$0x1] %v1566_v62 }
 0x7d7 PF: > { %s13_s9 = sadd.s32 1, %s1787_s9  }
 0x7d8   : > { %p10_p4 = scmp.ge.s32.totalorder %s13_s9, 4  }
 0x7da   :  { %12 = sbr.rel (!%p10_p4) target bundleno = 1 (0x1), region = 77 }

</bundles_post_ra>
